<compile_context>
chip_gen: v7x
topology: tpu7x:2x2x1
jax: 0.10.0
libtpu: 0.0.40
codegen_flags: <defaults>
</compile_context>

<pallas_src>
import functools

import jax
import jax.numpy as jnp
import numpy as np
from jax.experimental import pallas as pl
from jax.experimental.pallas import tpu as pltpu

_VMEM_LIMIT_BYTES = 32 * 1024 * 1024   # explicit budget; fits v5e/v6e/v7x


# --------------------------------------------------------------------------
# In-kernel 3x3 "same" conv on one (H, W, Cin) tile.
# --------------------------------------------------------------------------
def _conv3x3_relu_tile(x, pad_ref, w_ref, b_ref):
    """ReLU(conv3x3(x) + b) for one spatial tile, as 9 big MXU matmuls.

    x:       (H, W, Cin) float32 value.
    pad_ref: VMEM scratch (H+2, W+2, Cin), matmul dtype (halo buffer).
    w_ref:   (9*Cin, Cout) ref, matmul dtype (HWIO weights flattened row-major).
    b_ref:   (1, Cout) ref, float32.
    Returns  (H, W, Cout) float32.

    Requires W % 8 == 0 so (H, W, Cin) <-> (H*W, Cin) reshapes are layout no-ops.
    """
    H, W, Cin = x.shape
    Cout = w_ref.shape[-1]
    assert W % 8 == 0, "conv tile width must be a multiple of 8 sublanes"

    # Build the zero-padded tile in VMEM (replaces wrapper-side jnp.pad in HBM).
    pad_ref[...] = jnp.zeros(pad_ref.shape, pad_ref.dtype)
    pad_ref[1:H + 1, 1:W + 1, :] = x.astype(pad_ref.dtype)

    # 9 shifted views -> one (H*W, Cout) f32 accumulator (M = H*W fills the MXU).
    acc = jnp.zeros((H * W, Cout), jnp.float32)
    for t in range(9):
        kh, kw = t // 3, t % 3
        patch = pad_ref[kh:kh + H, kw:kw + W, :].reshape(H * W, Cin)
        acc = acc + jnp.dot(patch, w_ref[t * Cin:(t + 1) * Cin, :],
                            preferred_element_type=jnp.float32)
    acc = acc + b_ref[...].astype(jnp.float32)
    return jnp.maximum(acc, 0.0).reshape(H, W, Cout)


# --------------------------------------------------------------------------
# Pallas kernels
# --------------------------------------------------------------------------
def _conv3x3_relu_kernel(x_ref, w_ref, b_ref, o_ref, pad_ref):
    # Stand-alone conv (only used for the small pooled k2 branch).
    o_ref[0] = _conv3x3_relu_tile(x_ref[0], pad_ref, w_ref, b_ref
                                  ).astype(o_ref.dtype)


def _scconv_fused_kernel(x_ref, k2w_ref, w3_ref, b3_ref, w4_ref, b4_ref,
                         o_ref, pad_ref, *, approx_sigmoid):
    # out = ReLU(conv3x3_w4( ReLU(conv3x3_w3(x)) * sigmoid(x + up(k2) + 1e-8) ))
    # computed entirely in VMEM: k3 / gate / gated product never touch HBM.
    _, H, W, C = x_ref.shape
    Hp = k2w_ref.shape[1]
    r = H // Hp

    x = x_ref[0]                                            # (H, W, C) f32

    # k3 branch.
    k3 = _conv3x3_relu_tile(x, pad_ref, w3_ref, b3_ref)     # (H, W, C) f32

    # Gate: nearest-neighbour H-repeat of k2 (already W-expanded by the wrapper),
    # done in-register via an outer-dim broadcast + leading-dim merge (layout-free).
    k2w = k2w_ref[0]                                        # (Hp, W, C) f32
    up = jnp.broadcast_to(k2w[:, None, :, :], (Hp, r, W, C)).reshape(H, W, C)
    z = x + up + jnp.float32(1e-8)
    # sigmoid(z) = 1 / (1 + exp(-z)); exp and (approx) reciprocal run on the EUP.
    gate = pl.reciprocal(1.0 + jnp.exp(-z), approx=approx_sigmoid)
    prod = k3 * gate                                        # (H, W, C) f32

    # k4 branch (reuses the same halo scratch).
    out = _conv3x3_relu_tile(prod, pad_ref, w4_ref, b4_ref)
    o_ref[0] = out.astype(o_ref.dtype)


# --------------------------------------------------------------------------
# pallas_call wrappers
# --------------------------------------------------------------------------
def conv3x3_relu(x, w_flat, b, *, mm_dtype):
    """x: (N,H,W,Cin) f32; w_flat: (9*Cin,Cout) mm_dtype; b: (1,Cout) f32."""
    N, H, W, Cin = x.shape
    Cout = w_flat.shape[-1]
    return pl.pallas_call(
        _conv3x3_relu_kernel,
        out_shape=jax.ShapeDtypeStruct((N, H, W, Cout), jnp.float32),
        grid=(N,),
        in_specs=[
            pl.BlockSpec((1, H, W, Cin), lambda n: (n, 0, 0, 0)),
            pl.BlockSpec((9 * Cin, Cout), lambda n: (0, 0)),   # constant -> DMA'd once
            pl.BlockSpec((1, Cout), lambda n: (0, 0)),
        ],
        out_specs=pl.BlockSpec((1, H, W, Cout), lambda n: (n, 0, 0, 0)),
        scratch_shapes=[pltpu.VMEM((H + 2, W + 2, Cin), mm_dtype)],
        compiler_params=pltpu.CompilerParams(
            dimension_semantics=("parallel",),
            vmem_limit_bytes=_VMEM_LIMIT_BYTES),
    )(x, w_flat, b)


def scconv_fused(x, k2w, w3, b3, w4, b4, *, mm_dtype, approx_sigmoid):
    """Fused k3-conv + gate + k4-conv.  x: (N,H,W,C); k2w: (N,H//r,W,C)."""
    N, H, W, C = x.shape
    Hp = k2w.shape[1]
    kernel = functools.partial(_scconv_fused_kernel, approx_sigmoid=approx_sigmoid)
    return pl.pallas_call(
        kernel,
        out_shape=jax.ShapeDtypeStruct((N, H, W, C), jnp.float32),
        grid=(N,),
        in_specs=[
            pl.BlockSpec((1, H, W, C), lambda n: (n, 0, 0, 0)),
            pl.BlockSpec((1, Hp, W, C), lambda n: (n, 0, 0, 0)),
            pl.BlockSpec((9 * C, C), lambda n: (0, 0)),
            pl.BlockSpec((1, C), lambda n: (0, 0)),
            pl.BlockSpec((9 * C, C), lambda n: (0, 0)),
            pl.BlockSpec((1, C), lambda n: (0, 0)),
        ],
        out_specs=pl.BlockSpec((1, H, W, C), lambda n: (n, 0, 0, 0)),
        scratch_shapes=[pltpu.VMEM((H + 2, W + 2, C), mm_dtype)],
        compiler_params=pltpu.CompilerParams(
            dimension_semantics=("parallel",),
            vmem_limit_bytes=_VMEM_LIMIT_BYTES),
    )(x, k2w, w3, b3, w4, b4)


def scconv_forward(x_nchw, params, pooling_r, *,
                   mm_dtype=jnp.float32, approx_sigmoid=False):
    """SCConv forward.  x_nchw: (N, C, H, W) -> (N, C, H, W)."""
    r = pooling_r
    x = jnp.transpose(x_nchw, (0, 2, 3, 1)).astype(jnp.float32)   # NCHW -> NHWC
    N, H, W, C = x.shape
    assert H % r == 0 and W % r == 0, "spatial dims must be divisible by pooling_r"
    assert W % 8 == 0, "fused path assumes sublane-aligned width"
    Hp, Wp = H // r, W // r

    # Matmul operands: HWIO -> (9*Cin, Cout) flattened, cast once outside the kernels.
    def _w(name):
        w = params[name]
        return w.reshape(9 * w.shape[2], w.shape[3]).astype(mm_dtype)

    def _b(name):
        return params[name].reshape(1, -1).astype(jnp.float32)

    # ---- k2 branch, entirely at pooled resolution (1/r^2 of full size) ----
    pooled = x.reshape(N, Hp, r, Wp, r, C).mean(axis=(2, 4))      # AvgPool2d(r, r)
    Wp8 = ((Wp + 7) // 8) * 8
    if Wp8 != Wp:
        # Zero columns on the right do not change the first Wp output columns of a
        # zero-padded "same" conv -> pad up to a sublane multiple and slice back.
        pooled = jnp.pad(pooled, ((0, 0), (0, 0), (0, Wp8 - Wp), (0, 0)))
    k2 = conv3x3_relu(pooled, _w("w2"), _b("b2"), mm_dtype=mm_dtype)[:, :, :Wp, :]
    # Nearest-neighbour upsample, W direction only, at pooled H (1/r of a full
    # tensor in HBM).  The H-direction repeat happens inside the fused kernel.
    k2w = jnp.repeat(k2, r, axis=2)                               # (N, Hp, W, C)

    # ---- fused k3-conv + sigmoid gate + k4-conv (single HBM read of x, one write) ----
    out = scconv_fused(x, k2w, _w("w3"), _b("b3"), _w("w4"), _b("b4"),
                       mm_dtype=mm_dtype, approx_sigmoid=approx_sigmoid)
    return jnp.transpose(out, (0, 3, 1, 2))                       # NHWC -> NCHW


# --------------------------------------------------------------------------
# Pure-JAX reference (NCHW, matches PyTorch semantics) for correctness check
# --------------------------------------------------------------------------
def _ref_conv3x3_relu(x_nchw, w_hwio, b):
    w_oihw = jnp.transpose(w_hwio, (3, 2, 0, 1))
    y = jax.lax.conv_general_dilated(
        x_nchw, w_oihw, window_strides=(1, 1), padding=((1, 1), (1, 1)),
        dimension_numbers=("NCHW", "OIHW", "NCHW"))
    return jax.nn.relu(y + b[None, :, None, None])


def ref_scconv(x, params, r):
    N, C, H, W = x.shape
    pooled = x.reshape(N, C, H // r, r, W // r, r).mean(axis=(3, 5))
    k2 = _ref_conv3x3_relu(pooled, params["w2"], params["b2"])
    up = jnp.repeat(jnp.repeat(k2, r, axis=2), r, axis=3)
    gate = jax.nn.sigmoid(x + up + 1e-8)
    k3 = _ref_conv3x3_relu(x, params["w3"], params["b3"])
    return _ref_conv3x3_relu(k3 * gate, params["w4"], params["b4"])


# --------------------------------------------------------------------------
if __name__ == "__main__":
    key = jax.random.PRNGKey(0)
    kx, kw2, kb2, kw3, kb3, kw4, kb4 = jax.random.split(key, 7)

    # input_channels == output_channels is required by the residual add in forward()
    N, C, H, W = 2, 4, 16, 16
    pooling_r = 4

    x = jax.random.normal(kx, (N, C, H, W), jnp.float32)
    params = {
        "w2": 0.1 * jax.random.normal(kw2, (3, 3, C, C), jnp.float32),
        "b2": 0.05 * jax.random.normal(kb2, (C,), jnp.float32),
        "w3": 0.1 * jax.random.normal(kw3, (3, 3, C, C), jnp.float32),
        "b3": 0.05 * jax.random.normal(kb3, (C,), jnp.float32),
        "w4": 0.1 * jax.random.normal(kw4, (3, 3, C, C), jnp.float32),
        "b4": 0.05 * jax.random.normal(kb4, (C,), jnp.float32),
    }

    ref = ref_scconv(x, params, pooling_r)

    # f32 MXU path, exact sigmoid: tight check against the reference.
    fwd = jax.jit(functools.partial(scconv_forward, pooling_r=pooling_r))
    out = jax.block_until_ready(fwd(x, params))
    assert out.shape == (N, C, H, W) and out.dtype == jnp.float32
    np.testing.assert_allclose(np.asarray(out), np.asarray(ref),
                               rtol=1e-3, atol=1e-3)

    # bf16-MXU (f32 accumulation) + EUP approx-reciprocal sigmoid: v6e/v7x fast path.
    fwd_fast = jax.jit(functools.partial(
        scconv_forward, pooling_r=pooling_r,
        mm_dtype=jnp.bfloat16, approx_sigmoid=True))
    out_fast = jax.block_until_ready(fwd_fast(x, params))
    np.testing.assert_allclose(np.asarray(out_fast), np.asarray(ref),
                               rtol=5e-2, atol=5e-2)

    print("KERNEL_OK")
</pallas_src>

<mosaic_0001>
module attributes {stable_mosaic.version = 11 : i64} {
  func.func @_conv3x3_relu_kernel(%arg0: i32, %arg1: memref<1x4x8x4xf32, #tpu.memory_space<vmem>>, %arg2: memref<36x4xf32, #tpu.memory_space<vmem>>, %arg3: memref<1x4xf32, #tpu.memory_space<vmem>>, %arg4: memref<1x4x8x4xf32, #tpu.memory_space<vmem>>, %arg5: memref<6x10x4xf32, #tpu.memory_space<vmem>>) attributes {dimension_semantics = [#tpu.dimension_semantics<parallel>], iteration_bounds = array<i64: 2>, scalar_prefetch = 0 : i64, scratch_operands = 1 : i64, tpu.core_type = #tpu.core_type<tc>, window_params = [{transform_indices = @transform_0, window_bounds = array<i64: 1, 4, 8, 4>}, {pipeline_mode = #tpu.pipeline_mode<synchronous>, transform_indices = @transform_1, window_bounds = array<i64: 36, 4>}, {pipeline_mode = #tpu.pipeline_mode<synchronous>, transform_indices = @transform_2, window_bounds = array<i64: 1, 4>}, {transform_indices = @transform_3, window_bounds = array<i64: 1, 4, 8, 4>}]} {
    %c0 = arith.constant 0 : index
    %c0_0 = arith.constant 0 : index
    %c0_1 = arith.constant 0 : index
    %c0_2 = arith.constant 0 : index
    %0 = vector.load %arg1[%c0, %c0_0, %c0_1, %c0_2] : memref<1x4x8x4xf32, #tpu.memory_space<vmem>>, vector<1x4x8x4xf32>
    %1 = vector.shape_cast %0 : vector<1x4x8x4xf32> to vector<4x8x4xf32>
    %cst = arith.constant 0.000000e+00 : f32
    %2 = vector.broadcast %cst : f32 to vector<6x10x4xf32>
    %c0_3 = arith.constant 0 : index
    %c0_4 = arith.constant 0 : index
    %c0_5 = arith.constant 0 : index
    %3 = vector.load %arg5[%c0_3, %c0_4, %c0_5] : memref<6x10x4xf32, #tpu.memory_space<vmem>>, vector<6x10x4xf32>
    tpu.vector_store %arg5[%c0_3, %c0_4, %c0_5], %2 {strides = array<i32>} : memref<6x10x4xf32, #tpu.memory_space<vmem>>, vector<6x10x4xf32>,
    %c1 = arith.constant 1 : index
    %c1_6 = arith.constant 1 : index
    %c0_7 = arith.constant 0 : index
    %4 = vector.load %arg5[%c1, %c1_6, %c0_7] : memref<6x10x4xf32, #tpu.memory_space<vmem>>, vector<4x8x4xf32>
    tpu.vector_store %arg5[%c1, %c1_6, %c0_7], %1 {strides = array<i32>} : memref<6x10x4xf32, #tpu.memory_space<vmem>>, vector<4x8x4xf32>,
    %cst_8 = arith.constant 0.000000e+00 : f32
    %5 = vector.broadcast %cst_8 : f32 to vector<32x4xf32>
    %c0_9 = arith.constant 0 : index
    %c0_10 = arith.constant 0 : index
    %c0_11 = arith.constant 0 : index
    %6 = vector.load %arg5[%c0_9, %c0_10, %c0_11] : memref<6x10x4xf32, #tpu.memory_space<vmem>>, vector<4x8x4xf32>
    %7 = vector.shape_cast %6 : vector<4x8x4xf32> to vector<32x4xf32>
    %c0_12 = arith.constant 0 : index
    %c0_13 = arith.constant 0 : index
    %8 = vector.load %arg2[%c0_12, %c0_13] : memref<36x4xf32, #tpu.memory_space<vmem>>, vector<4x4xf32>
    %cst_14 = arith.constant dense<0.000000e+00> : vector<32x4xf32>
    %9 = tpu.matmul %7, %8, %cst_14 {dimension_numbers = #tpu.dot_dimension_numbers<[1], [0], [0], [1], [0, 0, 1, 1], [], []>} : vector<32x4xf32>, vector<4x4xf32>, vector<32x4xf32> -> vector<32x4xf32>
    %10 = arith.addf %5, %9 : vector<32x4xf32>
    %c0_15 = arith.constant 0 : index
    %c1_16 = arith.constant 1 : index
    %c0_17 = arith.constant 0 : index
    %11 = vector.load %arg5[%c0_15, %c1_16, %c0_17] : memref<6x10x4xf32, #tpu.memory_space<vmem>>, vector<4x8x4xf32>
    %12 = vector.shape_cast %11 : vector<4x8x4xf32> to vector<32x4xf32>
    %c4 = arith.constant 4 : index
    %c0_18 = arith.constant 0 : index
    %13 = vector.load %arg2[%c4, %c0_18] : memref<36x4xf32, #tpu.memory_space<vmem>>, vector<4x4xf32>
    %cst_19 = arith.constant dense<0.000000e+00> : vector<32x4xf32>
    %14 = tpu.matmul %12, %13, %cst_19 {dimension_numbers = #tpu.dot_dimension_numbers<[1], [0], [0], [1], [0, 0, 1, 1], [], []>} : vector<32x4xf32>, vector<4x4xf32>, vector<32x4xf32> -> vector<32x4xf32>
    %15 = arith.addf %10, %14 : vector<32x4xf32>
    %c0_20 = arith.constant 0 : index
    %c2 = arith.constant 2 : index
    %c0_21 = arith.constant 0 : index
    %16 = vector.load %arg5[%c0_20, %c2, %c0_21] : memref<6x10x4xf32, #tpu.memory_space<vmem>>, vector<4x8x4xf32>
    %17 = vector.shape_cast %16 : vector<4x8x4xf32> to vector<32x4xf32>
    %c8 = arith.constant 8 : index
    %c0_22 = arith.constant 0 : index
    %18 = vector.load %arg2[%c8, %c0_22] : memref<36x4xf32, #tpu.memory_space<vmem>>, vector<4x4xf32>
    %cst_23 = arith.constant dense<0.000000e+00> : vector<32x4xf32>
    %19 = tpu.matmul %17, %18, %cst_23 {dimension_numbers = #tpu.dot_dimension_numbers<[1], [0], [0], [1], [0, 0, 1, 1], [], []>} : vector<32x4xf32>, vector<4x4xf32>, vector<32x4xf32> -> vector<32x4xf32>
    %20 = arith.addf %15, %19 : vector<32x4xf32>
    %c1_24 = arith.constant 1 : index
    %c0_25 = arith.constant 0 : index
    %c0_26 = arith.constant 0 : index
    %21 = vector.load %arg5[%c1_24, %c0_25, %c0_26] : memref<6x10x4xf32, #tpu.memory_space<vmem>>, vector<4x8x4xf32>
    %22 = vector.shape_cast %21 : vector<4x8x4xf32> to vector<32x4xf32>
    %c12 = arith.constant 12 : index
    %c0_27 = arith.constant 0 : index
    %23 = vector.load %arg2[%c12, %c0_27] : memref<36x4xf32, #tpu.memory_space<vmem>>, vector<4x4xf32>
    %cst_28 = arith.constant dense<0.000000e+00> : vector<32x4xf32>
    %24 = tpu.matmul %22, %23, %cst_28 {dimension_numbers = #tpu.dot_dimension_numbers<[1], [0], [0], [1], [0, 0, 1, 1], [], []>} : vector<32x4xf32>, vector<4x4xf32>, vector<32x4xf32> -> vector<32x4xf32>
    %25 = arith.addf %20, %24 : vector<32x4xf32>
    %c1_29 = arith.constant 1 : index
    %c1_30 = arith.constant 1 : index
    %c0_31 = arith.constant 0 : index
    %26 = vector.load %arg5[%c1_29, %c1_30, %c0_31] : memref<6x10x4xf32, #tpu.memory_space<vmem>>, vector<4x8x4xf32>
    %27 = vector.shape_cast %26 : vector<4x8x4xf32> to vector<32x4xf32>
    %c16 = arith.constant 16 : index
    %c0_32 = arith.constant 0 : index
    %28 = vector.load %arg2[%c16, %c0_32] : memref<36x4xf32, #tpu.memory_space<vmem>>, vector<4x4xf32>
    %cst_33 = arith.constant dense<0.000000e+00> : vector<32x4xf32>
    %29 = tpu.matmul %27, %28, %cst_33 {dimension_numbers = #tpu.dot_dimension_numbers<[1], [0], [0], [1], [0, 0, 1, 1], [], []>} : vector<32x4xf32>, vector<4x4xf32>, vector<32x4xf32> -> vector<32x4xf32>
    %30 = arith.addf %25, %29 : vector<32x4xf32>
    %c1_34 = arith.constant 1 : index
    %c2_35 = arith.constant 2 : index
    %c0_36 = arith.constant 0 : index
    %31 = vector.load %arg5[%c1_34, %c2_35, %c0_36] : memref<6x10x4xf32, #tpu.memory_space<vmem>>, vector<4x8x4xf32>
    %32 = vector.shape_cast %31 : vector<4x8x4xf32> to vector<32x4xf32>
    %c20 = arith.constant 20 : index
    %c0_37 = arith.constant 0 : index
    %33 = vector.load %arg2[%c20, %c0_37] : memref<36x4xf32, #tpu.memory_space<vmem>>, vector<4x4xf32>
    %cst_38 = arith.constant dense<0.000000e+00> : vector<32x4xf32>
    %34 = tpu.matmul %32, %33, %cst_38 {dimension_numbers = #tpu.dot_dimension_numbers<[1], [0], [0], [1], [0, 0, 1, 1], [], []>} : vector<32x4xf32>, vector<4x4xf32>, vector<32x4xf32> -> vector<32x4xf32>
    %35 = arith.addf %30, %34 : vector<32x4xf32>
    %c2_39 = arith.constant 2 : index
    %c0_40 = arith.constant 0 : index
    %c0_41 = arith.constant 0 : index
    %36 = vector.load %arg5[%c2_39, %c0_40, %c0_41] : memref<6x10x4xf32, #tpu.memory_space<vmem>>, vector<4x8x4xf32>
    %37 = vector.shape_cast %36 : vector<4x8x4xf32> to vector<32x4xf32>
    %c24 = arith.constant 24 : index
    %c0_42 = arith.constant 0 : index
    %38 = vector.load %arg2[%c24, %c0_42] : memref<36x4xf32, #tpu.memory_space<vmem>>, vector<4x4xf32>
    %cst_43 = arith.constant dense<0.000000e+00> : vector<32x4xf32>
    %39 = tpu.matmul %37, %38, %cst_43 {dimension_numbers = #tpu.dot_dimension_numbers<[1], [0], [0], [1], [0, 0, 1, 1], [], []>} : vector<32x4xf32>, vector<4x4xf32>, vector<32x4xf32> -> vector<32x4xf32>
    %40 = arith.addf %35, %39 : vector<32x4xf32>
    %c2_44 = arith.constant 2 : index
    %c1_45 = arith.constant 1 : index
    %c0_46 = arith.constant 0 : index
    %41 = vector.load %arg5[%c2_44, %c1_45, %c0_46] : memref<6x10x4xf32, #tpu.memory_space<vmem>>, vector<4x8x4xf32>
    %42 = vector.shape_cast %41 : vector<4x8x4xf32> to vector<32x4xf32>
    %c28 = arith.constant 28 : index
    %c0_47 = arith.constant 0 : index
    %43 = vector.load %arg2[%c28, %c0_47] : memref<36x4xf32, #tpu.memory_space<vmem>>, vector<4x4xf32>
    %cst_48 = arith.constant dense<0.000000e+00> : vector<32x4xf32>
    %44 = tpu.matmul %42, %43, %cst_48 {dimension_numbers = #tpu.dot_dimension_numbers<[1], [0], [0], [1], [0, 0, 1, 1], [], []>} : vector<32x4xf32>, vector<4x4xf32>, vector<32x4xf32> -> vector<32x4xf32>
    %45 = arith.addf %40, %44 : vector<32x4xf32>
    %c2_49 = arith.constant 2 : index
    %c2_50 = arith.constant 2 : index
    %c0_51 = arith.constant 0 : index
    %46 = vector.load %arg5[%c2_49, %c2_50, %c0_51] : memref<6x10x4xf32, #tpu.memory_space<vmem>>, vector<4x8x4xf32>
    %47 = vector.shape_cast %46 : vector<4x8x4xf32> to vector<32x4xf32>
    %c32 = arith.constant 32 : index
    %c0_52 = arith.constant 0 : index
    %48 = vector.load %arg2[%c32, %c0_52] : memref<36x4xf32, #tpu.memory_space<vmem>>, vector<4x4xf32>
    %cst_53 = arith.constant dense<0.000000e+00> : vector<32x4xf32>
    %49 = tpu.matmul %47, %48, %cst_53 {dimension_numbers = #tpu.dot_dimension_numbers<[1], [0], [0], [1], [0, 0, 1, 1], [], []>} : vector<32x4xf32>, vector<4x4xf32>, vector<32x4xf32> -> vector<32x4xf32>
    %50 = arith.addf %45, %49 : vector<32x4xf32>
    %c0_54 = arith.constant 0 : index
    %c0_55 = arith.constant 0 : index
    %51 = vector.load %arg3[%c0_54, %c0_55] : memref<1x4xf32, #tpu.memory_space<vmem>>, vector<1x4xf32>
    %52 = vector.broadcast %51 : vector<1x4xf32> to vector<32x4xf32>
    %53 = arith.addf %50, %52 : vector<32x4xf32>
    %cst_56 = arith.constant 0.000000e+00 : f32
    %54 = vector.broadcast %cst_56 : f32 to vector<32x4xf32>
    %55 = arith.maximumf %53, %54 : vector<32x4xf32>
    %56 = vector.shape_cast %55 : vector<32x4xf32> to vector<4x8x4xf32>
    %c0_57 = arith.constant 0 : index
    %c0_58 = arith.constant 0 : index
    %c0_59 = arith.constant 0 : index
    %c0_60 = arith.constant 0 : index
    %57 = vector.load %arg4[%c0_57, %c0_58, %c0_59, %c0_60] : memref<1x4x8x4xf32, #tpu.memory_space<vmem>>, vector<1x4x8x4xf32>
    %58 = vector.shape_cast %57 : vector<1x4x8x4xf32> to vector<4x8x4xf32>
    %59 = vector.shape_cast %56 : vector<4x8x4xf32> to vector<1x4x8x4xf32>
    tpu.vector_store %arg4[%c0_57, %c0_58, %c0_59, %c0_60], %59 {strides = array<i32>} : memref<1x4x8x4xf32, #tpu.memory_space<vmem>>, vector<1x4x8x4xf32>,
    return
  }
  func.func @transform_0(%arg0: i32) -> (i32, i32, i32, i32) {
    %c0_i32 = arith.constant 0 : i32
    %c0_i32_0 = arith.constant 0 : i32
    %c0_i32_1 = arith.constant 0 : i32
    %c0_i32_2 = arith.constant 0 : i32
    return %arg0, %c0_i32, %c0_i32_0, %c0_i32_1 : i32, i32, i32, i32
  }
  func.func @transform_1(%arg0: i32) -> (i32, i32) {
    %c0_i32 = arith.constant 0 : i32
    %c0_i32_0 = arith.constant 0 : i32
    %c0_i32_1 = arith.constant 0 : i32
    return %c0_i32, %c0_i32_0 : i32, i32
  }
  func.func @transform_2(%arg0: i32) -> (i32, i32) {
    %c0_i32 = arith.constant 0 : i32
    %c0_i32_0 = arith.constant 0 : i32
    %c0_i32_1 = arith.constant 0 : i32
    return %c0_i32, %c0_i32_0 : i32, i32
  }
  func.func @transform_3(%arg0: i32) -> (i32, i32, i32, i32) {
    %c0_i32 = arith.constant 0 : i32
    %c0_i32_0 = arith.constant 0 : i32
    %c0_i32_1 = arith.constant 0 : i32
    %c0_i32_2 = arith.constant 0 : i32
    return %arg0, %c0_i32, %c0_i32_0, %c0_i32_1 : i32, i32, i32, i32
  }
}

module attributes {stable_mosaic.version = 11 : i64} {
  func.func @_scconv_fused_kernel(%arg0: i32, %arg1: memref<1x16x16x4xf32, #tpu.memory_space<vmem>>, %arg2: memref<1x4x16x4xf32, #tpu.memory_space<vmem>>, %arg3: memref<36x4xf32, #tpu.memory_space<vmem>>, %arg4: memref<1x4xf32, #tpu.memory_space<vmem>>, %arg5: memref<36x4xf32, #tpu.memory_space<vmem>>, %arg6: memref<1x4xf32, #tpu.memory_space<vmem>>, %arg7: memref<1x16x16x4xf32, #tpu.memory_space<vmem>>, %arg8: memref<18x18x4xf32, #tpu.memory_space<vmem>>) attributes {dimension_semantics = [#tpu.dimension_semantics<parallel>], iteration_bounds = array<i64: 2>, scalar_prefetch = 0 : i64, scratch_operands = 1 : i64, tpu.core_type = #tpu.core_type<tc>, window_params = [{transform_indices = @transform_0, window_bounds = array<i64: 1, 16, 16, 4>}, {transform_indices = @transform_1, window_bounds = array<i64: 1, 4, 16, 4>}, {pipeline_mode = #tpu.pipeline_mode<synchronous>, transform_indices = @transform_2, window_bounds = array<i64: 36, 4>}, {pipeline_mode = #tpu.pipeline_mode<synchronous>, transform_indices = @transform_3, window_bounds = array<i64: 1, 4>}, {pipeline_mode = #tpu.pipeline_mode<synchronous>, transform_indices = @transform_4, window_bounds = array<i64: 36, 4>}, {pipeline_mode = #tpu.pipeline_mode<synchronous>, transform_indices = @transform_5, window_bounds = array<i64: 1, 4>}, {transform_indices = @transform_6, window_bounds = array<i64: 1, 16, 16, 4>}]} {
    %c0 = arith.constant 0 : index
    %c0_0 = arith.constant 0 : index
    %c0_1 = arith.constant 0 : index
    %c0_2 = arith.constant 0 : index
    %0 = vector.load %arg1[%c0, %c0_0, %c0_1, %c0_2] : memref<1x16x16x4xf32, #tpu.memory_space<vmem>>, vector<1x16x16x4xf32>
    %1 = vector.shape_cast %0 : vector<1x16x16x4xf32> to vector<16x16x4xf32>
    %cst = arith.constant 0.000000e+00 : f32
    %2 = vector.broadcast %cst : f32 to vector<18x18x4xf32>
    %c0_3 = arith.constant 0 : index
    %c0_4 = arith.constant 0 : index
    %c0_5 = arith.constant 0 : index
    %3 = vector.load %arg8[%c0_3, %c0_4, %c0_5] : memref<18x18x4xf32, #tpu.memory_space<vmem>>, vector<18x18x4xf32>
    tpu.vector_store %arg8[%c0_3, %c0_4, %c0_5], %2 {strides = array<i32>} : memref<18x18x4xf32, #tpu.memory_space<vmem>>, vector<18x18x4xf32>,
    %c1 = arith.constant 1 : index
    %c1_6 = arith.constant 1 : index
    %c0_7 = arith.constant 0 : index
    %4 = vector.load %arg8[%c1, %c1_6, %c0_7] : memref<18x18x4xf32, #tpu.memory_space<vmem>>, vector<16x16x4xf32>
    tpu.vector_store %arg8[%c1, %c1_6, %c0_7], %1 {strides = array<i32>} : memref<18x18x4xf32, #tpu.memory_space<vmem>>, vector<16x16x4xf32>,
    %cst_8 = arith.constant 0.000000e+00 : f32
    %5 = vector.broadcast %cst_8 : f32 to vector<256x4xf32>
    %c0_9 = arith.constant 0 : index
    %c0_10 = arith.constant 0 : index
    %c0_11 = arith.constant 0 : index
    %6 = vector.load %arg8[%c0_9, %c0_10, %c0_11] : memref<18x18x4xf32, #tpu.memory_space<vmem>>, vector<16x16x4xf32>
    %7 = vector.shape_cast %6 : vector<16x16x4xf32> to vector<256x4xf32>
    %c0_12 = arith.constant 0 : index
    %c0_13 = arith.constant 0 : index
    %8 = vector.load %arg3[%c0_12, %c0_13] : memref<36x4xf32, #tpu.memory_space<vmem>>, vector<4x4xf32>
    %cst_14 = arith.constant dense<0.000000e+00> : vector<256x4xf32>
    %9 = tpu.matmul %7, %8, %cst_14 {dimension_numbers = #tpu.dot_dimension_numbers<[1], [0], [0], [1], [0, 0, 1, 1], [], []>} : vector<256x4xf32>, vector<4x4xf32>, vector<256x4xf32> -> vector<256x4xf32>
    %10 = arith.addf %5, %9 : vector<256x4xf32>
    %c0_15 = arith.constant 0 : index
    %c1_16 = arith.constant 1 : index
    %c0_17 = arith.constant 0 : index
    %11 = vector.load %arg8[%c0_15, %c1_16, %c0_17] : memref<18x18x4xf32, #tpu.memory_space<vmem>>, vector<16x16x4xf32>
    %12 = vector.shape_cast %11 : vector<16x16x4xf32> to vector<256x4xf32>
    %c4 = arith.constant 4 : index
    %c0_18 = arith.constant 0 : index
    %13 = vector.load %arg3[%c4, %c0_18] : memref<36x4xf32, #tpu.memory_space<vmem>>, vector<4x4xf32>
    %cst_19 = arith.constant dense<0.000000e+00> : vector<256x4xf32>
    %14 = tpu.matmul %12, %13, %cst_19 {dimension_numbers = #tpu.dot_dimension_numbers<[1], [0], [0], [1], [0, 0, 1, 1], [], []>} : vector<256x4xf32>, vector<4x4xf32>, vector<256x4xf32> -> vector<256x4xf32>
    %15 = arith.addf %10, %14 : vector<256x4xf32>
    %c0_20 = arith.constant 0 : index
    %c2 = arith.constant 2 : index
    %c0_21 = arith.constant 0 : index
    %16 = vector.load %arg8[%c0_20, %c2, %c0_21] : memref<18x18x4xf32, #tpu.memory_space<vmem>>, vector<16x16x4xf32>
    %17 = vector.shape_cast %16 : vector<16x16x4xf32> to vector<256x4xf32>
    %c8 = arith.constant 8 : index
    %c0_22 = arith.constant 0 : index
    %18 = vector.load %arg3[%c8, %c0_22] : memref<36x4xf32, #tpu.memory_space<vmem>>, vector<4x4xf32>
    %cst_23 = arith.constant dense<0.000000e+00> : vector<256x4xf32>
    %19 = tpu.matmul %17, %18, %cst_23 {dimension_numbers = #tpu.dot_dimension_numbers<[1], [0], [0], [1], [0, 0, 1, 1], [], []>} : vector<256x4xf32>, vector<4x4xf32>, vector<256x4xf32> -> vector<256x4xf32>
    %20 = arith.addf %15, %19 : vector<256x4xf32>
    %c1_24 = arith.constant 1 : index
    %c0_25 = arith.constant 0 : index
    %c0_26 = arith.constant 0 : index
    %21 = vector.load %arg8[%c1_24, %c0_25, %c0_26] : memref<18x18x4xf32, #tpu.memory_space<vmem>>, vector<16x16x4xf32>
    %22 = vector.shape_cast %21 : vector<16x16x4xf32> to vector<256x4xf32>
    %c12 = arith.constant 12 : index
    %c0_27 = arith.constant 0 : index
    %23 = vector.load %arg3[%c12, %c0_27] : memref<36x4xf32, #tpu.memory_space<vmem>>, vector<4x4xf32>
    %cst_28 = arith.constant dense<0.000000e+00> : vector<256x4xf32>
    %24 = tpu.matmul %22, %23, %cst_28 {dimension_numbers = #tpu.dot_dimension_numbers<[1], [0], [0], [1], [0, 0, 1, 1], [], []>} : vector<256x4xf32>, vector<4x4xf32>, vector<256x4xf32> -> vector<256x4xf32>
    %25 = arith.addf %20, %24 : vector<256x4xf32>
    %c1_29 = arith.constant 1 : index
    %c1_30 = arith.constant 1 : index
    %c0_31 = arith.constant 0 : index
    %26 = vector.load %arg8[%c1_29, %c1_30, %c0_31] : memref<18x18x4xf32, #tpu.memory_space<vmem>>, vector<16x16x4xf32>
    %27 = vector.shape_cast %26 : vector<16x16x4xf32> to vector<256x4xf32>
    %c16 = arith.constant 16 : index
    %c0_32 = arith.constant 0 : index
    %28 = vector.load %arg3[%c16, %c0_32] : memref<36x4xf32, #tpu.memory_space<vmem>>, vector<4x4xf32>
    %cst_33 = arith.constant dense<0.000000e+00> : vector<256x4xf32>
    %29 = tpu.matmul %27, %28, %cst_33 {dimension_numbers = #tpu.dot_dimension_numbers<[1], [0], [0], [1], [0, 0, 1, 1], [], []>} : vector<256x4xf32>, vector<4x4xf32>, vector<256x4xf32> -> vector<256x4xf32>
    %30 = arith.addf %25, %29 : vector<256x4xf32>
    %c1_34 = arith.constant 1 : index
    %c2_35 = arith.constant 2 : index
    %c0_36 = arith.constant 0 : index
    %31 = vector.load %arg8[%c1_34, %c2_35, %c0_36] : memref<18x18x4xf32, #tpu.memory_space<vmem>>, vector<16x16x4xf32>
    %32 = vector.shape_cast %31 : vector<16x16x4xf32> to vector<256x4xf32>
    %c20 = arith.constant 20 : index
    %c0_37 = arith.constant 0 : index
    %33 = vector.load %arg3[%c20, %c0_37] : memref<36x4xf32, #tpu.memory_space<vmem>>, vector<4x4xf32>
    %cst_38 = arith.constant dense<0.000000e+00> : vector<256x4xf32>
    %34 = tpu.matmul %32, %33, %cst_38 {dimension_numbers = #tpu.dot_dimension_numbers<[1], [0], [0], [1], [0, 0, 1, 1], [], []>} : vector<256x4xf32>, vector<4x4xf32>, vector<256x4xf32> -> vector<256x4xf32>
    %35 = arith.addf %30, %34 : vector<256x4xf32>
    %c2_39 = arith.constant 2 : index
    %c0_40 = arith.constant 0 : index
    %c0_41 = arith.constant 0 : index
    %36 = vector.load %arg8[%c2_39, %c0_40, %c0_41] : memref<18x18x4xf32, #tpu.memory_space<vmem>>, vector<16x16x4xf32>
    %37 = vector.shape_cast %36 : vector<16x16x4xf32> to vector<256x4xf32>
    %c24 = arith.constant 24 : index
    %c0_42 = arith.constant 0 : index
    %38 = vector.load %arg3[%c24, %c0_42] : memref<36x4xf32, #tpu.memory_space<vmem>>, vector<4x4xf32>
    %cst_43 = arith.constant dense<0.000000e+00> : vector<256x4xf32>
    %39 = tpu.matmul %37, %38, %cst_43 {dimension_numbers = #tpu.dot_dimension_numbers<[1], [0], [0], [1], [0, 0, 1, 1], [], []>} : vector<256x4xf32>, vector<4x4xf32>, vector<256x4xf32> -> vector<256x4xf32>
    %40 = arith.addf %35, %39 : vector<256x4xf32>
    %c2_44 = arith.constant 2 : index
    %c1_45 = arith.constant 1 : index
    %c0_46 = arith.constant 0 : index
    %41 = vector.load %arg8[%c2_44, %c1_45, %c0_46] : memref<18x18x4xf32, #tpu.memory_space<vmem>>, vector<16x16x4xf32>
    %42 = vector.shape_cast %41 : vector<16x16x4xf32> to vector<256x4xf32>
    %c28 = arith.constant 28 : index
    %c0_47 = arith.constant 0 : index
    %43 = vector.load %arg3[%c28, %c0_47] : memref<36x4xf32, #tpu.memory_space<vmem>>, vector<4x4xf32>
    %cst_48 = arith.constant dense<0.000000e+00> : vector<256x4xf32>
    %44 = tpu.matmul %42, %43, %cst_48 {dimension_numbers = #tpu.dot_dimension_numbers<[1], [0], [0], [1], [0, 0, 1, 1], [], []>} : vector<256x4xf32>, vector<4x4xf32>, vector<256x4xf32> -> vector<256x4xf32>
    %45 = arith.addf %40, %44 : vector<256x4xf32>
    %c2_49 = arith.constant 2 : index
    %c2_50 = arith.constant 2 : index
    %c0_51 = arith.constant 0 : index
    %46 = vector.load %arg8[%c2_49, %c2_50, %c0_51] : memref<18x18x4xf32, #tpu.memory_space<vmem>>, vector<16x16x4xf32>
    %47 = vector.shape_cast %46 : vector<16x16x4xf32> to vector<256x4xf32>
    %c32 = arith.constant 32 : index
    %c0_52 = arith.constant 0 : index
    %48 = vector.load %arg3[%c32, %c0_52] : memref<36x4xf32, #tpu.memory_space<vmem>>, vector<4x4xf32>
    %cst_53 = arith.constant dense<0.000000e+00> : vector<256x4xf32>
    %49 = tpu.matmul %47, %48, %cst_53 {dimension_numbers = #tpu.dot_dimension_numbers<[1], [0], [0], [1], [0, 0, 1, 1], [], []>} : vector<256x4xf32>, vector<4x4xf32>, vector<256x4xf32> -> vector<256x4xf32>
    %50 = arith.addf %45, %49 : vector<256x4xf32>
    %c0_54 = arith.constant 0 : index
    %c0_55 = arith.constant 0 : index
    %51 = vector.load %arg4[%c0_54, %c0_55] : memref<1x4xf32, #tpu.memory_space<vmem>>, vector<1x4xf32>
    %52 = vector.broadcast %51 : vector<1x4xf32> to vector<256x4xf32>
    %53 = arith.addf %50, %52 : vector<256x4xf32>
    %cst_56 = arith.constant 0.000000e+00 : f32
    %54 = vector.broadcast %cst_56 : f32 to vector<256x4xf32>
    %55 = arith.maximumf %53, %54 : vector<256x4xf32>
    %56 = vector.shape_cast %55 : vector<256x4xf32> to vector<16x16x4xf32>
    %c0_57 = arith.constant 0 : index
    %c0_58 = arith.constant 0 : index
    %c0_59 = arith.constant 0 : index
    %c0_60 = arith.constant 0 : index
    %57 = vector.load %arg2[%c0_57, %c0_58, %c0_59, %c0_60] : memref<1x4x16x4xf32, #tpu.memory_space<vmem>>, vector<1x4x16x4xf32>
    %58 = vector.shape_cast %57 : vector<1x4x16x4xf32> to vector<4x16x4xf32>
    %59 = vector.shape_cast %58 : vector<4x16x4xf32> to vector<4x1x16x4xf32>
    %60 = vector.shape_cast %59 : vector<4x1x16x4xf32> to vector<4x1x16x4xf32>
    %61 = vector.broadcast %60 : vector<4x1x16x4xf32> to vector<4x4x16x4xf32>
    %62 = vector.shape_cast %61 : vector<4x4x16x4xf32> to vector<16x16x4xf32>
    %63 = arith.addf %1, %62 : vector<16x16x4xf32>
    %cst_61 = arith.constant 9.99999993E-9 : f32
    %64 = vector.broadcast %cst_61 : f32 to vector<16x16x4xf32>
    %65 = arith.addf %63, %64 : vector<16x16x4xf32>
    %cst_62 = arith.constant 0.000000e+00 : f32
    %66 = vector.broadcast %cst_62 : f32 to vector<16x16x4xf32>
    %67 = arith.subf %66, %65 : vector<16x16x4xf32>
    %68 = math.exp %67 : vector<16x16x4xf32>
    %cst_63 = arith.constant 1.000000e+00 : f32
    %69 = vector.broadcast %cst_63 : f32 to vector<16x16x4xf32>
    %70 = arith.addf %69, %68 : vector<16x16x4xf32>
    %71 = tpu.reciprocal %70 : vector<16x16x4xf32> -> vector<16x16x4xf32>
    %72 = arith.mulf %56, %71 : vector<16x16x4xf32>
    %cst_64 = arith.constant 0.000000e+00 : f32
    %73 = vector.broadcast %cst_64 : f32 to vector<18x18x4xf32>
    %c0_65 = arith.constant 0 : index
    %c0_66 = arith.constant 0 : index
    %c0_67 = arith.constant 0 : index
    %74 = vector.load %arg8[%c0_65, %c0_66, %c0_67] : memref<18x18x4xf32, #tpu.memory_space<vmem>>, vector<18x18x4xf32>
    tpu.vector_store %arg8[%c0_65, %c0_66, %c0_67], %73 {strides = array<i32>} : memref<18x18x4xf32, #tpu.memory_space<vmem>>, vector<18x18x4xf32>,
    %c1_68 = arith.constant 1 : index
    %c1_69 = arith.constant 1 : index
    %c0_70 = arith.constant 0 : index
    %75 = vector.load %arg8[%c1_68, %c1_69, %c0_70] : memref<18x18x4xf32, #tpu.memory_space<vmem>>, vector<16x16x4xf32>
    tpu.vector_store %arg8[%c1_68, %c1_69, %c0_70], %72 {strides = array<i32>} : memref<18x18x4xf32, #tpu.memory_space<vmem>>, vector<16x16x4xf32>,
    %cst_71 = arith.constant 0.000000e+00 : f32
    %76 = vector.broadcast %cst_71 : f32 to vector<256x4xf32>
    %c0_72 = arith.constant 0 : index
    %c0_73 = arith.constant 0 : index
    %c0_74 = arith.constant 0 : index
    %77 = vector.load %arg8[%c0_72, %c0_73, %c0_74] : memref<18x18x4xf32, #tpu.memory_space<vmem>>, vector<16x16x4xf32>
    %78 = vector.shape_cast %77 : vector<16x16x4xf32> to vector<256x4xf32>
    %c0_75 = arith.constant 0 : index
    %c0_76 = arith.constant 0 : index
    %79 = vector.load %arg5[%c0_75, %c0_76] : memref<36x4xf32, #tpu.memory_space<vmem>>, vector<4x4xf32>
    %cst_77 = arith.constant dense<0.000000e+00> : vector<256x4xf32>
    %80 = tpu.matmul %78, %79, %cst_77 {dimension_numbers = #tpu.dot_dimension_numbers<[1], [0], [0], [1], [0, 0, 1, 1], [], []>} : vector<256x4xf32>, vector<4x4xf32>, vector<256x4xf32> -> vector<256x4xf32>
    %81 = arith.addf %76, %80 : vector<256x4xf32>
    %c0_78 = arith.constant 0 : index
    %c1_79 = arith.constant 1 : index
    %c0_80 = arith.constant 0 : index
    %82 = vector.load %arg8[%c0_78, %c1_79, %c0_80] : memref<18x18x4xf32, #tpu.memory_space<vmem>>, vector<16x16x4xf32>
    %83 = vector.shape_cast %82 : vector<16x16x4xf32> to vector<256x4xf32>
    %c4_81 = arith.constant 4 : index
    %c0_82 = arith.constant 0 : index
    %84 = vector.load %arg5[%c4_81, %c0_82] : memref<36x4xf32, #tpu.memory_space<vmem>>, vector<4x4xf32>
    %cst_83 = arith.constant dense<0.000000e+00> : vector<256x4xf32>
    %85 = tpu.matmul %83, %84, %cst_83 {dimension_numbers = #tpu.dot_dimension_numbers<[1], [0], [0], [1], [0, 0, 1, 1], [], []>} : vector<256x4xf32>, vector<4x4xf32>, vector<256x4xf32> -> vector<256x4xf32>
    %86 = arith.addf %81, %85 : vector<256x4xf32>
    %c0_84 = arith.constant 0 : index
    %c2_85 = arith.constant 2 : index
    %c0_86 = arith.constant 0 : index
    %87 = vector.load %arg8[%c0_84, %c2_85, %c0_86] : memref<18x18x4xf32, #tpu.memory_space<vmem>>, vector<16x16x4xf32>
    %88 = vector.shape_cast %87 : vector<16x16x4xf32> to vector<256x4xf32>
    %c8_87 = arith.constant 8 : index
    %c0_88 = arith.constant 0 : index
    %89 = vector.load %arg5[%c8_87, %c0_88] : memref<36x4xf32, #tpu.memory_space<vmem>>, vector<4x4xf32>
    %cst_89 = arith.constant dense<0.000000e+00> : vector<256x4xf32>
    %90 = tpu.matmul %88, %89, %cst_89 {dimension_numbers = #tpu.dot_dimension_numbers<[1], [0], [0], [1], [0, 0, 1, 1], [], []>} : vector<256x4xf32>, vector<4x4xf32>, vector<256x4xf32> -> vector<256x4xf32>
    %91 = arith.addf %86, %90 : vector<256x4xf32>
    %c1_90 = arith.constant 1 : index
    %c0_91 = arith.constant 0 : index
    %c0_92 = arith.constant 0 : index
    %92 = vector.load %arg8[%c1_90, %c0_91, %c0_92] : memref<18x18x4xf32, #tpu.memory_space<vmem>>, vector<16x16x4xf32>
    %93 = vector.shape_cast %92 : vector<16x16x4xf32> to vector<256x4xf32>
    %c12_93 = arith.constant 12 : index
    %c0_94 = arith.constant 0 : index
    %94 = vector.load %arg5[%c12_93, %c0_94] : memref<36x4xf32, #tpu.memory_space<vmem>>, vector<4x4xf32>
    %cst_95 = arith.constant dense<0.000000e+00> : vector<256x4xf32>
    %95 = tpu.matmul %93, %94, %cst_95 {dimension_numbers = #tpu.dot_dimension_numbers<[1], [0], [0], [1], [0, 0, 1, 1], [], []>} : vector<256x4xf32>, vector<4x4xf32>, vector<256x4xf32> -> vector<256x4xf32>
    %96 = arith.addf %91, %95 : vector<256x4xf32>
    %c1_96 = arith.constant 1 : index
    %c1_97 = arith.constant 1 : index
    %c0_98 = arith.constant 0 : index
    %97 = vector.load %arg8[%c1_96, %c1_97, %c0_98] : memref<18x18x4xf32, #tpu.memory_space<vmem>>, vector<16x16x4xf32>
    %98 = vector.shape_cast %97 : vector<16x16x4xf32> to vector<256x4xf32>
    %c16_99 = arith.constant 16 : index
    %c0_100 = arith.constant 0 : index
    %99 = vector.load %arg5[%c16_99, %c0_100] : memref<36x4xf32, #tpu.memory_space<vmem>>, vector<4x4xf32>
    %cst_101 = arith.constant dense<0.000000e+00> : vector<256x4xf32>
    %100 = tpu.matmul %98, %99, %cst_101 {dimension_numbers = #tpu.dot_dimension_numbers<[1], [0], [0], [1], [0, 0, 1, 1], [], []>} : vector<256x4xf32>, vector<4x4xf32>, vector<256x4xf32> -> vector<256x4xf32>
    %101 = arith.addf %96, %100 : vector<256x4xf32>
    %c1_102 = arith.constant 1 : index
    %c2_103 = arith.constant 2 : index
    %c0_104 = arith.constant 0 : index
    %102 = vector.load %arg8[%c1_102, %c2_103, %c0_104] : memref<18x18x4xf32, #tpu.memory_space<vmem>>, vector<16x16x4xf32>
    %103 = vector.shape_cast %102 : vector<16x16x4xf32> to vector<256x4xf32>
    %c20_105 = arith.constant 20 : index
    %c0_106 = arith.constant 0 : index
    %104 = vector.load %arg5[%c20_105, %c0_106] : memref<36x4xf32, #tpu.memory_space<vmem>>, vector<4x4xf32>
    %cst_107 = arith.constant dense<0.000000e+00> : vector<256x4xf32>
    %105 = tpu.matmul %103, %104, %cst_107 {dimension_numbers = #tpu.dot_dimension_numbers<[1], [0], [0], [1], [0, 0, 1, 1], [], []>} : vector<256x4xf32>, vector<4x4xf32>, vector<256x4xf32> -> vector<256x4xf32>
    %106 = arith.addf %101, %105 : vector<256x4xf32>
    %c2_108 = arith.constant 2 : index
    %c0_109 = arith.constant 0 : index
    %c0_110 = arith.constant 0 : index
    %107 = vector.load %arg8[%c2_108, %c0_109, %c0_110] : memref<18x18x4xf32, #tpu.memory_space<vmem>>, vector<16x16x4xf32>
    %108 = vector.shape_cast %107 : vector<16x16x4xf32> to vector<256x4xf32>
    %c24_111 = arith.constant 24 : index
    %c0_112 = arith.constant 0 : index
    %109 = vector.load %arg5[%c24_111, %c0_112] : memref<36x4xf32, #tpu.memory_space<vmem>>, vector<4x4xf32>
    %cst_113 = arith.constant dense<0.000000e+00> : vector<256x4xf32>
    %110 = tpu.matmul %108, %109, %cst_113 {dimension_numbers = #tpu.dot_dimension_numbers<[1], [0], [0], [1], [0, 0, 1, 1], [], []>} : vector<256x4xf32>, vector<4x4xf32>, vector<256x4xf32> -> vector<256x4xf32>
    %111 = arith.addf %106, %110 : vector<256x4xf32>
    %c2_114 = arith.constant 2 : index
    %c1_115 = arith.constant 1 : index
    %c0_116 = arith.constant 0 : index
    %112 = vector.load %arg8[%c2_114, %c1_115, %c0_116] : memref<18x18x4xf32, #tpu.memory_space<vmem>>, vector<16x16x4xf32>
    %113 = vector.shape_cast %112 : vector<16x16x4xf32> to vector<256x4xf32>
    %c28_117 = arith.constant 28 : index
    %c0_118 = arith.constant 0 : index
    %114 = vector.load %arg5[%c28_117, %c0_118] : memref<36x4xf32, #tpu.memory_space<vmem>>, vector<4x4xf32>
    %cst_119 = arith.constant dense<0.000000e+00> : vector<256x4xf32>
    %115 = tpu.matmul %113, %114, %cst_119 {dimension_numbers = #tpu.dot_dimension_numbers<[1], [0], [0], [1], [0, 0, 1, 1], [], []>} : vector<256x4xf32>, vector<4x4xf32>, vector<256x4xf32> -> vector<256x4xf32>
    %116 = arith.addf %111, %115 : vector<256x4xf32>
    %c2_120 = arith.constant 2 : index
    %c2_121 = arith.constant 2 : index
    %c0_122 = arith.constant 0 : index
    %117 = vector.load %arg8[%c2_120, %c2_121, %c0_122] : memref<18x18x4xf32, #tpu.memory_space<vmem>>, vector<16x16x4xf32>
    %118 = vector.shape_cast %117 : vector<16x16x4xf32> to vector<256x4xf32>
    %c32_123 = arith.constant 32 : index
    %c0_124 = arith.constant 0 : index
    %119 = vector.load %arg5[%c32_123, %c0_124] : memref<36x4xf32, #tpu.memory_space<vmem>>, vector<4x4xf32>
    %cst_125 = arith.constant dense<0.000000e+00> : vector<256x4xf32>
    %120 = tpu.matmul %118, %119, %cst_125 {dimension_numbers = #tpu.dot_dimension_numbers<[1], [0], [0], [1], [0, 0, 1, 1], [], []>} : vector<256x4xf32>, vector<4x4xf32>, vector<256x4xf32> -> vector<256x4xf32>
    %121 = arith.addf %116, %120 : vector<256x4xf32>
    %c0_126 = arith.constant 0 : index
    %c0_127 = arith.constant 0 : index
    %122 = vector.load %arg6[%c0_126, %c0_127] : memref<1x4xf32, #tpu.memory_space<vmem>>, vector<1x4xf32>
    %123 = vector.broadcast %122 : vector<1x4xf32> to vector<256x4xf32>
    %124 = arith.addf %121, %123 : vector<256x4xf32>
    %cst_128 = arith.constant 0.000000e+00 : f32
    %125 = vector.broadcast %cst_128 : f32 to vector<256x4xf32>
    %126 = arith.maximumf %124, %125 : vector<256x4xf32>
    %127 = vector.shape_cast %126 : vector<256x4xf32> to vector<16x16x4xf32>
    %c0_129 = arith.constant 0 : index
    %c0_130 = arith.constant 0 : index
    %c0_131 = arith.constant 0 : index
    %c0_132 = arith.constant 0 : index
    %128 = vector.load %arg7[%c0_129, %c0_130, %c0_131, %c0_132] : memref<1x16x16x4xf32, #tpu.memory_space<vmem>>, vector<1x16x16x4xf32>
    %129 = vector.shape_cast %128 : vector<1x16x16x4xf32> to vector<16x16x4xf32>
    %130 = vector.shape_cast %127 : vector<16x16x4xf32> to vector<1x16x16x4xf32>
    tpu.vector_store %arg7[%c0_129, %c0_130, %c0_131, %c0_132], %130 {strides = array<i32>} : memref<1x16x16x4xf32, #tpu.memory_space<vmem>>, vector<1x16x16x4xf32>,
    return
  }
  func.func @transform_0(%arg0: i32) -> (i32, i32, i32, i32) {
    %c0_i32 = arith.constant 0 : i32
    %c0_i32_0 = arith.constant 0 : i32
    %c0_i32_1 = arith.constant 0 : i32
    %c0_i32_2 = arith.constant 0 : i32
    return %arg0, %c0_i32, %c0_i32_0, %c0_i32_1 : i32, i32, i32, i32
  }
  func.func @transform_1(%arg0: i32) -> (i32, i32, i32, i32) {
    %c0_i32 = arith.constant 0 : i32
    %c0_i32_0 = arith.constant 0 : i32
    %c0_i32_1 = arith.constant 0 : i32
    %c0_i32_2 = arith.constant 0 : i32
    return %arg0, %c0_i32, %c0_i32_0, %c0_i32_1 : i32, i32, i32, i32
  }
  func.func @transform_2(%arg0: i32) -> (i32, i32) {
    %c0_i32 = arith.constant 0 : i32
    %c0_i32_0 = arith.constant 0 : i32
    %c0_i32_1 = arith.constant 0 : i32
    return %c0_i32, %c0_i32_0 : i32, i32
  }
  func.func @transform_3(%arg0: i32) -> (i32, i32) {
    %c0_i32 = arith.constant 0 : i32
    %c0_i32_0 = arith.constant 0 : i32
    %c0_i32_1 = arith.constant 0 : i32
    return %c0_i32, %c0_i32_0 : i32, i32
  }
  func.func @transform_4(%arg0: i32) -> (i32, i32) {
    %c0_i32 = arith.constant 0 : i32
    %c0_i32_0 = arith.constant 0 : i32
    %c0_i32_1 = arith.constant 0 : i32
    return %c0_i32, %c0_i32_0 : i32, i32
  }
  func.func @transform_5(%arg0: i32) -> (i32, i32) {
    %c0_i32 = arith.constant 0 : i32
    %c0_i32_0 = arith.constant 0 : i32
    %c0_i32_1 = arith.constant 0 : i32
    return %c0_i32, %c0_i32_0 : i32, i32
  }
  func.func @transform_6(%arg0: i32) -> (i32, i32, i32, i32) {
    %c0_i32 = arith.constant 0 : i32
    %c0_i32_0 = arith.constant 0 : i32
    %c0_i32_1 = arith.constant 0 : i32
    %c0_i32_2 = arith.constant 0 : i32
    return %arg0, %c0_i32, %c0_i32_0, %c0_i32_1 : i32, i32, i32, i32
  }
}

</mosaic_0001>

<bundles_post_ra>
// kernel: scconv_forward.2
= control target key start
LH: loop header
LB: loop body
LE: loop exit
PB: predicated region body
PF: predicated region fallthrough
CT: control target
= control target key end

     0   :  { %s1491_s12 = smov 0   ;;  %s1637_s0 = inlined_call_operand.vmem [shape: f32[2,4,8,4], index: 0, kind: input, shape index: {}]   ;;  %s1638_s1 = inlined_call_operand.vmem [shape: f32[36,4], index: 1, kind: input, shape index: {}]   ;;  %s1639_s2 = inlined_call_operand.vmem [shape: f32[1,4], index: 2, kind: input, shape index: {}]   ;;  %s1640_s3 = inlined_call_operand.vmem [shape: f32[2,4,8,4], index: 3, kind: output, shape index: {}]  }
   0x1 LB: > { %s1243_s13 = sadd.s32 4294967295, %s1468_s12   ;;  %p1247_p0 = scmp.ge.s32.totalorder %s1468_s12, 1  ;;  %s1468_s12 = sphi %s1491_s12, %s13_s12  }
   0x2   : > { %p137_p1 = scmp.lt.s32.totalorder %s1468_s12, 3 }
   0x4   : > { %p138_p2 = pnand %p1247_p0, %p137_p1 }
   0x5   : > { %v203_v0 = vld [vmem:[%s1638_s1 + $0x4] sm:$0xf] (!%p138_p2)  ;;  %vm216_vm0 = vcmask (!%p138_p2), 1043456   ;;  %v1505_v1 = vld [vmem:[%s1638_s1 + $0x10] sm:$0xf] (!%p138_p2)  ;;  %vm175_vm1 = vcmask (!%p138_p2), 31744  }
   0x6   : > { %141 = sbr.rel (%p138_p2) target bundleno = 282 (0x11a), region = 32  ;;  %1347 = vmatprep.subr.msk.mxu1 (!%p138_p2), %vm216_vm0, %v203_v0  ;;  %1379 = vmatprep.subr.msk.mxu0 (!%p138_p2), %vm216_vm0, %v1505_v1  ;;  %vm177_vm2 = vcmask (!%p138_p2), 25600   ;;  %p1512_p3 = scmp.lt.s32.totalorder (!%p138_p2), %s1243_s13, 1  ;;  %v198_v2 = vld [vmem:[%s1638_s1] sm:$0xf] (!%p138_p2)  ;;  %v1470_v3 = vmov (!%p138_p2), 0.0  }
   0x7   : > { %1348 = vmatpush3.msk.msra.mxu1 (!%p138_p2), %vm216_vm0, %v203_v0  ;;  %176 = vst.msk [vmem:[#allocation2] sm:$0xff] (!%p138_p2), %vm175_vm1, %v1470_v3  ;;  %179 = vst.msk [vmem:[#allocation2 + $0x10] sm:$0xff] (!%p138_p2), %vm175_vm1, %v1470_v3  ;;  %1380 = vmatpush3.msk.msra.mxu0 (!%p138_p2), %vm216_vm0, %v1505_v1  ;;  %v736_v4 = vld [vmem:[%s1638_s1 + $0x14] sm:$0xf] (!%p138_p2)  ;;  %v409_v12 = vld [vmem:[%s1638_s1 + $0x8] sm:$0xf] (!%p138_p2) }
   0x8   : > { %178 = vst.msk [vmem:[#allocation2 + $0x8] sm:$0x3] (!%p138_p2), %vm177_vm2, %v1470_v3  ;;  %180 = vst.msk [vmem:[#allocation2 + $0x18] sm:$0x3] (!%p138_p2), %vm177_vm2, %v1470_v3  ;;  %1355 = vmatprep.subr.msk.mxu1 (!%p138_p2), %vm216_vm0, %v198_v2  ;;  %1387 = vmatprep.subr.msk.mxu0 (!%p138_p2), %vm216_vm0, %v736_v4  ;;  %v846_v15 = vld [vmem:[%s1638_s1 + $0x18] sm:$0xf] (!%p138_p2) }
   0x9   : > { %181 = vst.msk [vmem:[#allocation2 + $0x20] sm:$0xff] (!%p138_p2), %vm175_vm1, %v1470_v3  ;;  %183 = vst.msk [vmem:[#allocation2 + $0x30] sm:$0xff] (!%p138_p2), %vm175_vm1, %v1470_v3  ;;  %v518_v21 = vld [vmem:[%s1638_s1 + $0xc] sm:$0xf] (!%p138_p2)  ;;  %v955_v23 = vld [vmem:[%s1638_s1 + $0x1c] sm:$0xf] (!%p138_p2) }
   0xa   : > { %182 = vst.msk [vmem:[#allocation2 + $0x28] sm:$0x3] (!%p138_p2), %vm177_vm2, %v1470_v3  ;;  %184 = vst.msk [vmem:[#allocation2 + $0x38] sm:$0x3] (!%p138_p2), %vm177_vm2, %v1470_v3  ;;  %v1064_v27 = vld [vmem:[%s1638_s1 + $0x20] sm:$0xf] (!%p138_p2) }
   0xb   : > { %185 = vst.msk [vmem:[#allocation2 + $0x40] sm:$0xff] (!%p138_p2), %vm175_vm1, %v1470_v3  ;;  %187 = vst.msk [vmem:[#allocation2 + $0x50] sm:$0xff] (!%p138_p2), %vm175_vm1, %v1470_v3  ;;  %v1297_v35 = vld [vmem:[%s1639_s2] ss:$0 sm:$0xff] (!%p138_p2) }
   0xc   : > { %186 = vst.msk [vmem:[#allocation2 + $0x48] sm:$0x3] (!%p138_p2), %vm177_vm2, %v1470_v3  ;;  %188 = vst.msk [vmem:[#allocation2 + $0x58] sm:$0x3] (!%p138_p2), %vm177_vm2, %v1470_v3 }
   0xd   : > { %s1643_s13 = smov (!%p1512_p3, %s1243_s13), 1 }
   0xe   : > { %s1300_s23 = sshll.u32 %s1643_s13, 5  ;;  %v194_v16 = vld [vmem:[#allocation2] sm:$0xff] }
   0xf   : > { %s165_s26 = scalar_lea.vmem %s1637_s0, %s1300_s23  ;;  %v199_v9 = vld [vmem:[#allocation2 + $0x1] sm:$0xff]  ;;  %s170_s16 = scalar_lea.vmem %s1640_s3, %s1300_s23 }
  0x10   : > { %v171_v5 = vld [vmem:[%s165_s26] sm:$0xff]  ;;  %v172_v6 = vld [vmem:[%s165_s26 + $0x8] sm:$0xff]  ;;  %v173_v7 = vld [vmem:[%s165_s26 + $0x10] sm:$0xff]  ;;  %1349 = vmatprep.mubr.msk.f32.mxu1 %vm175_vm1, %v199_v9 }
  0x11   : > { %190 = vst.msk [vmem:[#allocation2 + $0x11] sm:$0xff] %vm175_vm1, %v171_v5  ;;  %191 = vst.msk [vmem:[#allocation2 + $0x21] sm:$0xff] %vm175_vm1, %v172_v6  ;;  %v174_v8 = vld [vmem:[%s165_s26 + $0x18] sm:$0xff]  ;;  %v405_v25 = vld [vmem:[#allocation2 + $0x2] sm:$0xff] }
  0x12   : > { %192 = vst.msk [vmem:[#allocation2 + $0x31] sm:$0xff] %vm175_vm1, %v173_v7  ;;  %193 = vst.msk [vmem:[#allocation2 + $0x41] sm:$0xff] %vm175_vm1, %v174_v8  ;;  %v845_v28 = vld [vmem:[#allocation2 + $0x50] sm:$0xff] }
  0x13   : > { %v954_v30 = vld [vmem:[#allocation2 + $0x51] sm:$0xff] }
  0x14   : > { %v1063_v31 = vld [vmem:[#allocation2 + $0x52] sm:$0xff] }
  0x18   : > { %v200_v10 = vld [vmem:[#allocation2 + $0x11] sm:$0xff]  ;;  %v624_v11 = vld [vmem:[#allocation2 + $0x21] sm:$0xff] }
  0x19   : > { %1350 = vmatmul.mubr.msk.f32.vlgmr.msra.gmra.mrb[0].mxu1 %vm175_vm1, %v200_v10  ;;  %1381 = vmatprep.mubr.msk.f32.mxu0 %vm175_vm1, %v200_v10  ;;  %v732_v13 = vld [vmem:[#allocation2 + $0x12] sm:$0xff]  ;;  %v733_v18 = vld [vmem:[#allocation2 + $0x22] sm:$0xff] }
  0x1a   : > { %1356 = vmatpush3.msk.msra.mxu1 %vm216_vm0, %v198_v2  ;;  %1382 = vmatmul.mubr.msk.f32.vlgmr.msra.gmra.mrb[0].mxu0 %vm175_vm1, %v624_v11  ;;  %v202_v14 = vld [vmem:[#allocation2 + $0x31] sm:$0xff]  ;;  %v196_v19 = vld [vmem:[#allocation2 + $0x20] sm:$0xff] }
  0x1b   : > { %1388 = vmatpush3.msk.msra.mxu0 %vm216_vm0, %v736_v4  ;;  %1352 = vmatprep.mubr.msk.f32.mxu1 %vm175_vm1, %v624_v11  ;;  %v195_v17 = vld [vmem:[#allocation2 + $0x10] sm:$0xff]  ;;  %v735_v24 = vld [vmem:[#allocation2 + $0x42] sm:$0xff] }
  0x1c   : > { %1363 = vmatprep.subr.msk.mxu1 %vm216_vm0, %v409_v12  ;;  %1389 = vmatprep.mubr.msk.f32.mxu0 %vm175_vm1, %v732_v13  ;;  %v734_v20 = vld [vmem:[#allocation2 + $0x32] sm:$0xff]  ;;  %v844_v26 = vld [vmem:[#allocation2 + $0x40] sm:$0xff] }
  0x1d   : > { %1353 = vmatmul.mubr.msk.f32.gmra.mrb[2].mxu1 %vm175_vm1, %v202_v14  ;;  %1395 = vmatprep.subr.msk.mxu0 %vm216_vm0, %v846_v15  ;;  %v197_v22 = vld [vmem:[#allocation2 + $0x30] sm:$0xff]  ;;  %v953_v29 = vld [vmem:[#allocation2 + $0x41] sm:$0xff] }
  0x1e   : > { %1357 = vmatprep.mubr.msk.f32.mxu1 %vm175_vm1, %v194_v16 }
  0x21   : > { %1358 = vmatmul.mubr.msk.f32.vlgmr.msra.gmra.mrb[0].mxu1 %vm175_vm1, %v195_v17 }
  0x22   : > { %1364 = vmatpush3.msk.msra.mxu1 %vm216_vm0, %v409_v12  ;;  %1390 = vmatmul.mubr.msk.f32.vlgmr.msra.gmra.mrb[0].mxu0 %vm175_vm1, %v733_v18 }
  0x23   : > { %1396 = vmatpush3.msk.msra.mxu0 %vm216_vm0, %v846_v15  ;;  %1360 = vmatprep.mubr.msk.f32.mxu1 %vm175_vm1, %v196_v19 }
  0x24   : > { %1392 = vmatprep.mubr.msk.f32.mxu0 %vm175_vm1, %v734_v20  ;;  %1371 = vmatprep.subr.msk.mxu1 %vm216_vm0, %v518_v21 }
  0x25   : > { %1361 = vmatmul.mubr.msk.f32.gmra.mrb[2].mxu1 %vm175_vm1, %v197_v22  ;;  %1403 = vmatprep.subr.msk.mxu0 %vm216_vm0, %v955_v23 }
  0x26   : > { %1393 = vmatmul.mubr.msk.f32.gmra.mrb[2].mxu0 %vm175_vm1, %v735_v24  ;;  %1365 = vmatprep.mubr.msk.f32.mxu1 %vm175_vm1, %v405_v25 }
  0x27   : > { %1397 = vmatprep.mubr.msk.f32.mxu0 %vm175_vm1, %v196_v19 }
  0x29   : > { %1366 = vmatmul.mubr.msk.f32.vlgmr.msra.gmra.mrb[0].mxu1 %vm175_vm1, %v732_v13 }
  0x2a   : > { %1372 = vmatpush3.msk.msra.mxu1 %vm216_vm0, %v518_v21  ;;  %1398 = vmatmul.mubr.msk.f32.vlgmr.msra.gmra.mrb[0].mxu0 %vm175_vm1, %v197_v22 }
  0x2b   : > { %1404 = vmatpush3.msk.msra.mxu0 %vm216_vm0, %v955_v23  ;;  %1368 = vmatprep.mubr.msk.f32.mxu1 %vm175_vm1, %v733_v18 }
  0x2c   : > { %1400 = vmatprep.mubr.msk.f32.mxu0 %vm175_vm1, %v844_v26  ;;  %1419 = vmatprep.subr.msk.mxu1 %vm216_vm0, %v1505_v1 }
  0x2d   : > { %1369 = vmatmul.mubr.msk.f32.gmra.mrb[2].mxu1 %vm175_vm1, %v734_v20  ;;  %1411 = vmatprep.subr.msk.mxu0 %vm216_vm0, %v1064_v27 }
  0x2e   : > { %1401 = vmatmul.mubr.msk.f32.gmra.mrb[2].mxu0 %vm175_vm1, %v845_v28  ;;  %1373 = vmatprep.mubr.msk.f32.mxu1 %vm175_vm1, %v195_v17 }
  0x2f   : > { %1405 = vmatprep.mubr.msk.f32.mxu0 %vm175_vm1, %v624_v11 }
  0x31   : > { %1374 = vmatmul.mubr.msk.f32.vlgmr.msra.gmra.mrb[0].mxu1 %vm175_vm1, %v196_v19 }
  0x32   : > { %1420 = vmatpush3.msk.msra.mxu1 %vm216_vm0, %v1505_v1  ;;  %1406 = vmatmul.mubr.msk.f32.vlgmr.msra.gmra.mrb[0].mxu0 %vm175_vm1, %v202_v14 }
  0x33   : > { %1412 = vmatpush3.msk.msra.mxu0 %vm216_vm0, %v1064_v27  ;;  %1376 = vmatprep.mubr.msk.f32.mxu1 %vm175_vm1, %v197_v22 }
  0x34   : > { %1408 = vmatprep.mubr.msk.f32.mxu0 %vm175_vm1, %v953_v29 }
  0x35   : > { %1377 = vmatmul.mubr.msk.f32.gmra.mrb[2].mxu1 %vm175_vm1, %v844_v26 }
  0x36   : > { %1409 = vmatmul.mubr.msk.f32.gmra.mrb[2].mxu0 %vm175_vm1, %v954_v30  ;;  %1384 = vmatprep.mubr.msk.f32.mxu1 %vm175_vm1, %v202_v14 }
  0x37   : > { %1413 = vmatprep.mubr.msk.f32.mxu0 %vm175_vm1, %v733_v18 }
  0x3a   : > { %1414 = vmatmul.mubr.msk.f32.vlgmr.msra.gmra.mrb[0].mxu0 %vm175_vm1, %v734_v20 }
  0x3b   : > { %1416 = vmatprep.mubr.msk.f32.mxu0 %vm175_vm1, %v735_v24 }
  0x3d   : > { %1385 = vmatmul.mubr.msk.f32.vlgmr.msra.gmra.mrb[2].mxu1 %vm175_vm1, %v953_v29 }
  0x3e   : > { %1417 = vmatmul.mubr.msk.f32.gmra.mrb[2].mxu0 %vm175_vm1, %v1063_v31 }
 0x104   : > { %v1375_v32 = vpop.f32.mrb[0].mxu1 }
 0x105   : > { %v600_v33 = vpop.f32.mrb[1].mxu1 }
 0x10d   : > { %v1415_v34 = vpop.f32.mrb[0].mxu0 }
 0x10e   : > { %v1421_v36 = vadd.f32 %v1415_v34, %v1375_v32  ;;  %v1146_v37 = vpop.f32.mrb[1].mxu0 }
 0x10f   : > { %v1422_v38 = vadd.f32 %v1146_v37, %v600_v33 }
 0x110   : > { %v1177_v39 = vadd.f32 %v1421_v36, %v1297_v35  ;;  %v1386_v40 = vpop.f32.mrb[2].mxu1 }
 0x111   : > { %v1176_v41 = vadd.f32 %v1422_v38, %v1297_v35  ;;  %v719_v42 = vpop.f32.mrb[3].mxu1  ;;  %v1418_v43 = vpop.f32.mrb[2].mxu0 }
 0x112   : > { %v1181_v44 = vmax.f32 %v1177_v39, 0.0  ;;  %v1423_v45 = vadd.f32 %v1418_v43, %v1386_v40  ;;  %v1156_v46 = vpop.f32.mrb[3].mxu0 }
 0x113   : > { %v1180_v47 = vmax.f32 %v1176_v41, 0.0  ;;  %v1424_v48 = vadd.f32 %v1156_v46, %v719_v42 }
 0x114   : > { %1185 = vst.msk [vmem:[%s170_s16 + $0x8] sm:$0xff] %vm175_vm1, %v1181_v44  ;;  %v1179_v49 = vadd.f32 %v1423_v45, %v1297_v35 }
 0x115   : > { %1184 = vst.msk [vmem:[%s170_s16] sm:$0xff] %vm175_vm1, %v1180_v47  ;;  %v1178_v50 = vadd.f32 %v1424_v48, %v1297_v35 }
 0x116   : > { %v1183_v51 = vmax.f32 %v1179_v49, 0.0 }
 0x117   : > { %v1182_v52 = vmax.f32 %v1178_v50, 0.0 }
 0x118   : > { %1187 = vst.msk [vmem:[%s170_s16 + $0x18] sm:$0xff] %vm175_vm1, %v1183_v51 }
 0x119   : > { %1186 = vst.msk [vmem:[%s170_s16 + $0x10] sm:$0xff] %vm175_vm1, %v1182_v52 }
 0x11a PF: > { %s13_s12 = sadd.s32 1, %s1468_s12  }
 0x11b   : > { %p10_p4 = scmp.ge.s32.totalorder %s13_s12, 4  }
 0x11d   :  { %12 = sbr.rel (!%p10_p4) target bundleno = 1 (0x1), region = 64 }

// kernel: scconv_forward.3
= control target key start
LH: loop header
LB: loop body
LE: loop exit
PB: predicated region body
PF: predicated region fallthrough
CT: control target
= control target key end

     0   :  { %s10660_s21 = smov 0   ;;  %s12965_s0 = inlined_call_operand.vmem [shape: f32[2,16,16,4], index: 0, kind: input, shape index: {}]   ;;  %s12966_s1 = inlined_call_operand.vmem [shape: f32[2,4,16,4], index: 1, kind: input, shape index: {}]   ;;  %s12967_s2 = inlined_call_operand.vmem [shape: f32[36,4], index: 2, kind: input, shape index: {}]   ;;  %s12968_s3 = inlined_call_operand.vmem [shape: f32[1,4], index: 3, kind: input, shape index: {}]   ;;  %s12969_s4 = inlined_call_operand.vmem [shape: f32[36,4], index: 4, kind: input, shape index: {}]   ;;  %s12970_s5 = inlined_call_operand.vmem [shape: f32[1,4], index: 5, kind: input, shape index: {}]   ;;  %s12971_s6 = inlined_call_operand.vmem [shape: f32[2,16,16,4], index: 6, kind: output, shape index: {}]  }
   0x1 LB: > { %s7860_s22 = sadd.s32 4294967295, %s10622_s21   ;;  %p7864_p0 = scmp.ge.s32.totalorder %s10622_s21, 1  ;;  %s10622_s21 = sphi %s10660_s21, %s16_s21  }
   0x2   : > { %p222_p1 = scmp.lt.s32.totalorder %s10622_s21, 3 }
   0x4   : > { %p223_p2 = pnand %p7864_p0, %p222_p1 }
   0x6   : > { %226 = sbr.rel (%p223_p2) target bundleno = 1573 (0x625), region = 44 }
   0xd   : > { %v458_v0 = vld [vmem:[%s12967_s2 + $0x4] sm:$0xf]  ;;  %vm555_vm0 = vcmask 1043456   ;;  %vm304_vm1 = vcmask 31744   ;;  %vm307_vm2 = vcmask 25600   ;;  %v12972_v1 = vmov 0.0  }
   0xe   : > { %9066 = vmatprep.subr.msk.mxu0 %vm555_vm0, %v458_v0  ;;  %305 = vst.msk [vmem:[#allocation2] sm:$0xff] %vm304_vm1, %v12972_v1  ;;  %306 = vst.msk [vmem:[#allocation2 + $0x8] sm:$0xff] %vm304_vm1, %v12972_v1  ;;  %v425_v2 = vld [vmem:[%s12967_s2] sm:$0xf]  ;;  %p257_p3 = scmp.lt.s32.totalorder %s7860_s22, 1 }
   0xf   : > { %309 = vst.msk [vmem:[#allocation2 + $0x18] sm:$0xff] %vm304_vm1, %v12972_v1  ;;  %310 = vst.msk [vmem:[#allocation2 + $0x20] sm:$0xff] %vm304_vm1, %v12972_v1  ;;  %9067 = vmatpush3.msk.msra.mxu0 %vm555_vm0, %v458_v0  ;;  %v10811_v6 = vld [vmem:[%s12967_s2 + $0x8] sm:$0xf] }
  0x10   : > { %312 = vst.msk [vmem:[#allocation2 + $0x30] sm:$0xff] %vm304_vm1, %v12972_v1  ;;  %313 = vst.msk [vmem:[#allocation2 + $0x38] sm:$0xff] %vm304_vm1, %v12972_v1  ;;  %9116 = vmatprep.subr.msk.mxu0 %vm555_vm0, %v425_v2  ;;  %s13354_s22 = smov (!%p257_p3, %s7860_s22), 1 }
  0x11   : > { %315 = vst.msk [vmem:[#allocation2 + $0x48] sm:$0xff] %vm304_vm1, %v12972_v1  ;;  %316 = vst.msk [vmem:[#allocation2 + $0x50] sm:$0xff] %vm304_vm1, %v12972_v1  ;;  %s8469_s27 = sshll.u32 %s13354_s22, 8  ;;  %s8470_s28 = sshll.u32 %s13354_s22, 6 }
  0x12   : > { %318 = vst.msk [vmem:[#allocation2 + $0x60] sm:$0xff] %vm304_vm1, %v12972_v1  ;;  %319 = vst.msk [vmem:[#allocation2 + $0x68] sm:$0xff] %vm304_vm1, %v12972_v1  ;;  %s10797_s30 = scalar_lea.vmem %s12965_s0, %s8469_s27  ;;  %s11911_s7 = scalar_lea.vmem %s12966_s1, %s8470_s28 }
  0x13   : > { %321 = vst.msk [vmem:[#allocation2 + $0x78] sm:$0xff] %vm304_vm1, %v12972_v1  ;;  %322 = vst.msk [vmem:[#allocation2 + $0x80] sm:$0xff] %vm304_vm1, %v12972_v1  ;;  %v10800_v3 = vld [vmem:[%s10797_s30] sm:$0xff]  ;;  %v10803_v4 = vld [vmem:[%s10797_s30 + $0x8] sm:$0xff]  ;;  %s12865_s9 = scalar_lea.vmem %s12971_s6, %s8469_s27 }
  0x14   : > { %324 = vst.msk [vmem:[#allocation2 + $0x90] sm:$0xff] %vm304_vm1, %v12972_v1  ;;  %325 = vst.msk [vmem:[#allocation2 + $0x98] sm:$0xff] %vm304_vm1, %v12972_v1  ;;  %v10806_v5 = vld [vmem:[%s10797_s30 + $0x10] sm:$0xff]  ;;  %v10820_v9 = vld [vmem:[%s10797_s30 + $0x18] sm:$0xff] }
  0x15   : > { %327 = vst.msk [vmem:[#allocation2 + $0xa8] sm:$0xff] %vm304_vm1, %v12972_v1  ;;  %328 = vst.msk [vmem:[#allocation2 + $0xb0] sm:$0xff] %vm304_vm1, %v12972_v1  ;;  %v426_v7 = vld [vmem:[#allocation2 + $0x1] sm:$0xff]  ;;  %v10832_v12 = vld [vmem:[%s10797_s30 + $0x30] sm:$0xff] }
  0x16   : > { %330 = vst.msk [vmem:[#allocation2 + $0xc0] sm:$0xff] %vm304_vm1, %v12972_v1  ;;  %331 = vst.msk [vmem:[#allocation2 + $0xc8] sm:$0xff] %vm304_vm1, %v12972_v1  ;;  %9068 = vmatprep.mubr.msk.f32.mxu0 %vm304_vm1, %v426_v7  ;;  %v10826_v10 = vld [vmem:[%s10797_s30 + $0x20] sm:$0xff]  ;;  %v10829_v11 = vld [vmem:[%s10797_s30 + $0x28] sm:$0xff] }
  0x17   : > { %333 = vst.msk [vmem:[#allocation2 + $0xd8] sm:$0xff] %vm304_vm1, %v12972_v1  ;;  %334 = vst.msk [vmem:[#allocation2 + $0xe0] sm:$0xff] %vm304_vm1, %v12972_v1  ;;  %v10842_v13 = vld [vmem:[%s10797_s30 + $0x38] sm:$0xff]  ;;  %v10845_v14 = vld [vmem:[%s10797_s30 + $0x40] sm:$0xff] }
  0x18   : > { %336 = vst.msk [vmem:[#allocation2 + $0xf0] sm:$0xff] %vm304_vm1, %v12972_v1  ;;  %337 = vst.msk [vmem:[#allocation2 + $0xf8] sm:$0xff] %vm304_vm1, %v12972_v1  ;;  %v10848_v15 = vld [vmem:[%s10797_s30 + $0x48] sm:$0xff]  ;;  %v10858_v16 = vld [vmem:[%s10797_s30 + $0x50] sm:$0xff] }
  0x19   : > { %339 = vst.msk [vmem:[#allocation2 + $0x108] sm:$0xff] %vm304_vm1, %v12972_v1  ;;  %340 = vst.msk [vmem:[#allocation2 + $0x110] sm:$0xff] %vm304_vm1, %v12972_v1  ;;  %v10861_v17 = vld [vmem:[%s10797_s30 + $0x58] sm:$0xff]  ;;  %v10864_v18 = vld [vmem:[%s10797_s30 + $0x60] sm:$0xff] }
  0x1a   : > { %342 = vst.msk [vmem:[#allocation2 + $0x120] sm:$0xff] %vm304_vm1, %v12972_v1  ;;  %343 = vst.msk [vmem:[#allocation2 + $0x128] sm:$0xff] %vm304_vm1, %v12972_v1  ;;  %v10873_v19 = vld [vmem:[%s10797_s30 + $0x68] sm:$0xff]  ;;  %v10876_v20 = vld [vmem:[%s10797_s30 + $0x70] sm:$0xff] }
  0x1b   : > { %345 = vst.msk [vmem:[#allocation2 + $0x138] sm:$0xff] %vm304_vm1, %v12972_v1  ;;  %346 = vst.msk [vmem:[#allocation2 + $0x140] sm:$0xff] %vm304_vm1, %v12972_v1  ;;  %v10879_v21 = vld [vmem:[%s10797_s30 + $0x78] sm:$0xff]  ;;  %v10890_v22 = vld [vmem:[%s10797_s30 + $0x80] sm:$0xff] }
  0x1c   : > { %348 = vst.msk [vmem:[#allocation2 + $0x150] sm:$0xff] %vm304_vm1, %v12972_v1  ;;  %349 = vst.msk [vmem:[#allocation2 + $0x158] sm:$0xff] %vm304_vm1, %v12972_v1  ;;  %v10893_v23 = vld [vmem:[%s10797_s30 + $0x88] sm:$0xff]  ;;  %v10896_v24 = vld [vmem:[%s10797_s30 + $0x90] sm:$0xff] }
  0x1d   : > { %351 = vst.msk [vmem:[#allocation2 + $0x168] sm:$0xff] %vm304_vm1, %v12972_v1  ;;  %352 = vst.msk [vmem:[#allocation2 + $0x170] sm:$0xff] %vm304_vm1, %v12972_v1  ;;  %v10905_v25 = vld [vmem:[%s10797_s30 + $0x98] sm:$0xff]  ;;  %v10908_v26 = vld [vmem:[%s10797_s30 + $0xa0] sm:$0xff] }
  0x1e   : > { %354 = vst.msk [vmem:[#allocation2 + $0x180] sm:$0xff] %vm304_vm1, %v12972_v1  ;;  %355 = vst.msk [vmem:[#allocation2 + $0x188] sm:$0xff] %vm304_vm1, %v12972_v1  ;;  %v10911_v27 = vld [vmem:[%s10797_s30 + $0xa8] sm:$0xff]  ;;  %v10928_v31 = vld [vmem:[%s10797_s30 + $0xb0] sm:$0xff] }
  0x1f   : > { %357 = vst.msk [vmem:[#allocation2 + $0x198] sm:$0xff] %vm304_vm1, %v12972_v1  ;;  %358 = vst.msk [vmem:[#allocation2 + $0x1a0] sm:$0xff] %vm304_vm1, %v12972_v1  ;;  %v10931_v32 = vld [vmem:[%s10797_s30 + $0xb8] sm:$0xff]  ;;  %v10954_v37 = vld [vmem:[%s10797_s30 + $0xc0] sm:$0xff] }
  0x20   : > { %308 = vst.msk [vmem:[#allocation2 + $0x10] sm:$0x3] %vm307_vm2, %v12972_v1  ;;  %311 = vst.msk [vmem:[#allocation2 + $0x28] sm:$0x3] %vm307_vm2, %v12972_v1  ;;  %v10957_v38 = vld [vmem:[%s10797_s30 + $0xc8] sm:$0xff]  ;;  %v10960_v39 = vld [vmem:[%s10797_s30 + $0xd0] sm:$0xff] }
  0x21   : > { %314 = vst.msk [vmem:[#allocation2 + $0x40] sm:$0x3] %vm307_vm2, %v12972_v1  ;;  %317 = vst.msk [vmem:[#allocation2 + $0x58] sm:$0x3] %vm307_vm2, %v12972_v1  ;;  %v10969_v40 = vld [vmem:[%s10797_s30 + $0xd8] sm:$0xff]  ;;  %v10976_v41 = vld [vmem:[%s10797_s30 + $0xe0] sm:$0xff] }
  0x22   : > { %320 = vst.msk [vmem:[#allocation2 + $0x70] sm:$0x3] %vm307_vm2, %v12972_v1  ;;  %323 = vst.msk [vmem:[#allocation2 + $0x88] sm:$0x3] %vm307_vm2, %v12972_v1  ;;  %v10979_v42 = vld [vmem:[%s10797_s30 + $0xe8] sm:$0xff]  ;;  %v11013_v51 = vld [vmem:[#allocation2] sm:$0xff] }
  0x23   : > { %326 = vst.msk [vmem:[#allocation2 + $0xa0] sm:$0x3] %vm307_vm2, %v12972_v1  ;;  %329 = vst.msk [vmem:[#allocation2 + $0xb8] sm:$0x3] %vm307_vm2, %v12972_v1  ;;  %v11015_v52 = vld [vmem:[#allocation2 + $0x8] sm:$0xff] }
  0x24   : > { %332 = vst.msk [vmem:[#allocation2 + $0xd0] sm:$0x3] %vm307_vm2, %v12972_v1  ;;  %335 = vst.msk [vmem:[#allocation2 + $0xe8] sm:$0x3] %vm307_vm2, %v12972_v1  ;;  %v11023_v55 = vld [vmem:[#allocation2 + $0x2] sm:$0xff] }
  0x25   : > { %338 = vst.msk [vmem:[#allocation2 + $0x100] sm:$0x3] %vm307_vm2, %v12972_v1  ;;  %341 = vst.msk [vmem:[#allocation2 + $0x118] sm:$0x3] %vm307_vm2, %v12972_v1 }
  0x26   : > { %344 = vst.msk [vmem:[#allocation2 + $0x130] sm:$0x3] %vm307_vm2, %v12972_v1  ;;  %347 = vst.msk [vmem:[#allocation2 + $0x148] sm:$0x3] %vm307_vm2, %v12972_v1 }
  0x27   : > { %350 = vst.msk [vmem:[#allocation2 + $0x160] sm:$0x3] %vm307_vm2, %v12972_v1  ;;  %353 = vst.msk [vmem:[#allocation2 + $0x178] sm:$0x3] %vm307_vm2, %v12972_v1  ;;  %v427_v8 = vld [vmem:[#allocation2 + $0x9] sm:$0xff] }
  0x28   : > { %356 = vst.msk [vmem:[#allocation2 + $0x190] sm:$0x3] %vm307_vm2, %v12972_v1  ;;  %359 = vst.msk [vmem:[#allocation2 + $0x1a8] sm:$0x3] %vm307_vm2, %v12972_v1  ;;  %9069 = vmatmul.mubr.msk.f32.vlgmr.msra.gmra.mrb[0].mxu0 %vm304_vm1, %v427_v8  ;;  %v11027_v56 = vld [vmem:[#allocation2 + $0xa] sm:$0xff] }
  0x29   : > { %13123 = vst [vmem:[#allocation3_spill] sm:$0xff] %v10800_v3  ;;  %13124 = vst [vmem:[#allocation4_spill] sm:$0xff] %v10803_v4  ;;  %9117 = vmatpush3.msk.msra.mxu0 %vm555_vm0, %v425_v2 }
  0x2a   : > { %13125 = vst [vmem:[#allocation5_spill] sm:$0xff] %v10806_v5  ;;  %361 = vst.msk [vmem:[#allocation2 + $0x19] sm:$0xff] %vm304_vm1, %v10800_v3  ;;  %9166 = vmatprep.subr.msk.mxu0 %vm555_vm0, %v10811_v6 }
  0x2b   : > { %362 = vst.msk [vmem:[#allocation2 + $0x21] sm:$0xff] %vm304_vm1, %v10803_v4  ;;  %363 = vst.msk [vmem:[#allocation2 + $0x31] sm:$0xff] %vm304_vm1, %v10806_v5 }
  0x2c   : > { %13126 = vst [vmem:[#allocation6_spill] sm:$0xff] %v10820_v9  ;;  %364 = vst.msk [vmem:[#allocation2 + $0x39] sm:$0xff] %vm304_vm1, %v10820_v9 }
  0x2d   : > { %13127 = vst [vmem:[#allocation7_spill] sm:$0xff] %v10826_v10  ;;  %13128 = vst [vmem:[#allocation8_spill] sm:$0xff] %v10829_v11 }
  0x2e   : > { %13129 = vst [vmem:[#allocation9_spill] sm:$0xff] %v10832_v12  ;;  %365 = vst.msk [vmem:[#allocation2 + $0x49] sm:$0xff] %vm304_vm1, %v10826_v10 }
  0x2f   : > { %366 = vst.msk [vmem:[#allocation2 + $0x51] sm:$0xff] %vm304_vm1, %v10829_v11  ;;  %367 = vst.msk [vmem:[#allocation2 + $0x61] sm:$0xff] %vm304_vm1, %v10832_v12 }
  0x30   : > { %13130 = vst [vmem:[#allocation10_spill] sm:$0xff] %v10842_v13  ;;  %13131 = vst [vmem:[#allocation11_spill] sm:$0xff] %v10845_v14 }
  0x31   : > { %13132 = vst [vmem:[#allocation12_spill] sm:$0xff] %v10848_v15  ;;  %368 = vst.msk [vmem:[#allocation2 + $0x69] sm:$0xff] %vm304_vm1, %v10842_v13  ;;  %v10913_v28 = vld [vmem:[#allocation2 + $0x19] sm:$0xff] }
  0x32   : > { %369 = vst.msk [vmem:[#allocation2 + $0x79] sm:$0xff] %vm304_vm1, %v10845_v14  ;;  %370 = vst.msk [vmem:[#allocation2 + $0x81] sm:$0xff] %vm304_vm1, %v10848_v15  ;;  %v10915_v29 = vld [vmem:[#allocation2 + $0x21] sm:$0xff]  ;;  %v10917_v30 = vld [vmem:[#allocation2 + $0x31] sm:$0xff]  ;;  %9071 = vmatprep.mubr.msk.f32.mxu0 %vm304_vm1, %v10913_v28 }
  0x33   : > { %13133 = vst [vmem:[#allocation13_spill] sm:$0xff] %v10858_v16  ;;  %13134 = vst [vmem:[#allocation14_spill] sm:$0xff] %v10861_v17  ;;  %9072 = vmatmul.mubr.msk.f32.gmra.mrb[2].mxu0 %vm304_vm1, %v10915_v29  ;;  %v10941_v33 = vld [vmem:[#allocation2 + $0x39] sm:$0xff]  ;;  %v11031_v58 = vld [vmem:[#allocation2 + $0x22] sm:$0xff] }
  0x34   : > { %13135 = vst [vmem:[#allocation15_spill] sm:$0xff] %v10864_v18  ;;  %371 = vst.msk [vmem:[#allocation2 + $0x91] sm:$0xff] %vm304_vm1, %v10858_v16  ;;  %9074 = vmatprep.mubr.msk.f32.mxu0 %vm304_vm1, %v10917_v30  ;;  %v11019_v53 = vld [vmem:[#allocation2 + $0x18] sm:$0xff]  ;;  %v11021_v54 = vld [vmem:[#allocation2 + $0x20] sm:$0xff] }
  0x35   : > { %372 = vst.msk [vmem:[#allocation2 + $0x99] sm:$0xff] %vm304_vm1, %v10861_v17  ;;  %373 = vst.msk [vmem:[#allocation2 + $0xa9] sm:$0xff] %vm304_vm1, %v10864_v18  ;;  %v10943_v34 = vld [vmem:[#allocation2 + $0x49] sm:$0xff]  ;;  %v11029_v57 = vld [vmem:[#allocation2 + $0x1a] sm:$0xff] }
  0x36   : > { %13136 = vst [vmem:[#allocation16_spill] sm:$0xff] %v10873_v19  ;;  %13137 = vst [vmem:[#allocation17_spill] sm:$0xff] %v10876_v20  ;;  %v10949_v35 = vld [vmem:[#allocation2 + $0x51] sm:$0xff]  ;;  %v10951_v36 = vld [vmem:[#allocation2 + $0x61] sm:$0xff] }
  0x37   : > { %13138 = vst [vmem:[#allocation18_spill] sm:$0xff] %v10879_v21  ;;  %374 = vst.msk [vmem:[#allocation2 + $0xb1] sm:$0xff] %vm304_vm1, %v10873_v19  ;;  %9075 = vmatmul.mubr.msk.f32.gmra.mrb[4].mxu0 %vm304_vm1, %v10941_v33 }
  0x38   : > { %375 = vst.msk [vmem:[#allocation2 + $0xc1] sm:$0xff] %vm304_vm1, %v10876_v20  ;;  %376 = vst.msk [vmem:[#allocation2 + $0xc9] sm:$0xff] %vm304_vm1, %v10879_v21  ;;  %9077 = vmatprep.mubr.msk.f32.mxu0 %vm304_vm1, %v10943_v34  ;;  %v10983_v43 = vld [vmem:[#allocation2 + $0x69] sm:$0xff] }
  0x39   : > { %13139 = vst [vmem:[#allocation19_spill] sm:$0xff] %v10890_v22  ;;  %13140 = vst [vmem:[#allocation20_spill] sm:$0xff] %v10893_v23  ;;  %v10989_v44 = vld [vmem:[#allocation2 + $0x79] sm:$0xff]  ;;  %v10995_v45 = vld [vmem:[#allocation2 + $0x81] sm:$0xff] }
  0x3a   : > { %13141 = vst [vmem:[#allocation21_spill] sm:$0xff] %v10896_v24  ;;  %377 = vst.msk [vmem:[#allocation2 + $0xd9] sm:$0xff] %vm304_vm1, %v10890_v22  ;;  %v11061_v7 = vld [vmem:[#allocation2 + $0x82] sm:$0xff] }
  0x3b   : > { %378 = vst.msk [vmem:[#allocation2 + $0xe1] sm:$0xff] %vm304_vm1, %v10893_v23  ;;  %379 = vst.msk [vmem:[#allocation2 + $0xf1] sm:$0xff] %vm304_vm1, %v10896_v24  ;;  %9078 = vmatmul.mubr.msk.f32.gmra.mrb[6].mxu0 %vm304_vm1, %v10949_v35  ;;  %v10997_v46 = vld [vmem:[#allocation2 + $0x91] sm:$0xff] }
  0x3c   : > { %13142 = vst [vmem:[#allocation22_spill] sm:$0xff] %v10905_v25  ;;  %13143 = vst [vmem:[#allocation23_spill] sm:$0xff] %v10908_v26  ;;  %9080 = vmatprep.mubr.msk.f32.mxu0 %vm304_vm1, %v10951_v36  ;;  %v11003_v47 = vld [vmem:[#allocation2 + $0x99] sm:$0xff]  ;;  %v11005_v48 = vld [vmem:[#allocation2 + $0xa9] sm:$0xff] }
  0x3d   : > { %13144 = vst [vmem:[#allocation24_spill] sm:$0xff] %v10911_v27  ;;  %380 = vst.msk [vmem:[#allocation2 + $0xf9] sm:$0xff] %vm304_vm1, %v10905_v25  ;;  %v11035_v60 = vld [vmem:[#allocation2 + $0x90] sm:$0xff]  ;;  %v11051_v62 = vld [vmem:[#allocation2 + $0x98] sm:$0xff] }
  0x3e   : > { %381 = vst.msk [vmem:[#allocation2 + $0x109] sm:$0xff] %vm304_vm1, %v10908_v26  ;;  %382 = vst.msk [vmem:[#allocation2 + $0x111] sm:$0xff] %vm304_vm1, %v10911_v27  ;;  %v11007_v49 = vld [vmem:[#allocation2 + $0xb1] sm:$0xff]  ;;  %v11053_v63 = vld [vmem:[#allocation2 + $0xa8] sm:$0xff] }
  0x3f   : > { %13145 = vst [vmem:[#allocation25_spill] sm:$0xff] %v10928_v31  ;;  %13146 = vst [vmem:[#allocation26_spill] sm:$0xff] %v10931_v32  ;;  %9081 = vmatmul.mubr.msk.f32.gmra.mrb[8].mxu0 %vm304_vm1, %v10983_v43  ;;  %v11011_v50 = vld [vmem:[#allocation2 + $0xc1] sm:$0xff]  ;;  %v11033_v59 = vld [vmem:[#allocation2 + $0xc9] sm:$0xff] }
  0x40   : > { %383 = vst.msk [vmem:[#allocation2 + $0x121] sm:$0xff] %vm304_vm1, %v10928_v31  ;;  %384 = vst.msk [vmem:[#allocation2 + $0x129] sm:$0xff] %vm304_vm1, %v10931_v32  ;;  %9083 = vmatprep.mubr.msk.f32.mxu0 %vm304_vm1, %v10989_v44  ;;  %v11055_v0 = vld [vmem:[#allocation2 + $0xb0] sm:$0xff]  ;;  %v11059_v2 = vld [vmem:[#allocation2 + $0xc0] sm:$0xff] }
  0x41   : > { %13147 = vst [vmem:[#allocation27_spill] sm:$0xff] %v10943_v34  ;;  %13148 = vst [vmem:[#allocation28_spill] sm:$0xff] %v10949_v35  ;;  %v11049_v61 = vld [vmem:[#allocation2 + $0xd9] sm:$0xff]  ;;  %v11366_v34 = vld [vmem:[#allocation2 + $0x4a] sm:$0xff] }
  0x42   : > { %13149 = vst [vmem:[#allocation29_spill] sm:$0xff] %v10951_v36  ;;  %13150 = vst [vmem:[#allocation30_spill] sm:$0xff] %v10954_v37  ;;  %v11063_v8 = vld [vmem:[#allocation2 + $0x92] sm:$0xff]  ;;  %v11095_v32 = vld [vmem:[#allocation2 + $0xda] sm:$0xff] }
  0x43   : > { %13151 = vst [vmem:[#allocation31_spill] sm:$0xff] %v10957_v38  ;;  %13152 = vst [vmem:[#allocation32_spill] sm:$0xff] %v10960_v39  ;;  %9084 = vmatmul.mubr.msk.f32.gmra.mrb[10].mxu0 %vm304_vm1, %v10995_v45  ;;  %v11093_v31 = vld [vmem:[#allocation2 + $0xd8] sm:$0xff]  ;;  %v11105_v26 = vld [vmem:[#allocation2 + $0xe1] sm:$0xff] }
  0x44   : > { %385 = vst.msk [vmem:[#allocation2 + $0x139] sm:$0xff] %vm304_vm1, %v10954_v37  ;;  %386 = vst.msk [vmem:[#allocation2 + $0x141] sm:$0xff] %vm304_vm1, %v10957_v38  ;;  %9086 = vmatprep.mubr.msk.f32.mxu0 %vm304_vm1, %v10997_v46  ;;  %v11077_v37 = vld [vmem:[#allocation2 + $0xc2] sm:$0xff]  ;;  %v11079_v38 = vld [vmem:[#allocation2 + $0xca] sm:$0xff] }
  0x45   : > { %387 = vst.msk [vmem:[#allocation2 + $0x151] sm:$0xff] %vm304_vm1, %v10960_v39  ;;  %13153 = vst [vmem:[#allocation33_spill] sm:$0xff] %v10969_v40  ;;  %v13167_v39 = vmov 0.0   ;;  %v11107_v27 = vld [vmem:[#allocation2 + $0xe0] sm:$0xff]  ;;  %v11113_v25 = vld [vmem:[#allocation2 + $0xf1] sm:$0xff] }
  0x46   : > { %388 = vst.msk [vmem:[#allocation2 + $0x159] sm:$0xff] %vm304_vm1, %v10969_v40  ;;  %13154 = vst [vmem:[#allocation34_spill] sm:$0xff] %v10976_v41  ;;  %v11075_v40 = vld [vmem:[#allocation2 + $0xc8] sm:$0xff]  ;;  %v11121_v22 = vld [vmem:[#allocation2 + $0xf0] sm:$0xff] }
  0x47   : > { %13155 = vst [vmem:[#allocation35_spill] sm:$0xff] %v10979_v42  ;;  %13156 = vst [vmem:[#allocation36_spill] sm:$0xff] %v10983_v43  ;;  %9087 = vmatmul.mubr.msk.f32.gmra.mrb[12].mxu0 %vm304_vm1, %v11003_v47  ;;  %v11109_v24 = vld [vmem:[#allocation2 + $0xe2] sm:$0xff]  ;;  %v11123_v23 = vld [vmem:[#allocation2 + $0xf2] sm:$0xff] }
  0x48   : > { %389 = vst.msk [vmem:[#allocation2 + $0x169] sm:$0xff] %vm304_vm1, %v10976_v41  ;;  %390 = vst.msk [vmem:[#allocation2 + $0x171] sm:$0xff] %vm304_vm1, %v10979_v42  ;;  %9089 = vmatprep.mubr.msk.f32.mxu0 %vm304_vm1, %v11005_v48  ;;  %v11067_v41 = vld [vmem:[#allocation2 + $0xaa] sm:$0xff]  ;;  %v11069_v42 = vld [vmem:[#allocation2 + $0xb2] sm:$0xff] }
  0x49   : > { %13157 = vst [vmem:[#allocation37_spill] sm:$0xff] %v10989_v44  ;;  %13158 = vst [vmem:[#allocation38_spill] sm:$0xff] %v10995_v45  ;;  %v11127_v20 = vld [vmem:[#allocation2 + $0xf9] sm:$0xff]  ;;  %v11135_v19 = vld [vmem:[#allocation2 + $0x109] sm:$0xff] }
  0x4a   : > { %13159 = vst [vmem:[#allocation39_spill] sm:$0xff] %v10997_v46  ;;  %13160 = vst [vmem:[#allocation40_spill] sm:$0xff] %v11003_v47  ;;  %v11129_v21 = vld [vmem:[#allocation2 + $0xf8] sm:$0xff]  ;;  %v11143_v16 = vld [vmem:[#allocation2 + $0x108] sm:$0xff] }
  0x4b   : > { %13161 = vst [vmem:[#allocation41_spill] sm:$0xff] %v11005_v48  ;;  %13162 = vst [vmem:[#allocation42_spill] sm:$0xff] %v11007_v49  ;;  %9090 = vmatmul.mubr.msk.f32.gmra.mrb[14].mxu0 %vm304_vm1, %v11007_v49  ;;  %v11131_v18 = vld [vmem:[#allocation2 + $0xfa] sm:$0xff]  ;;  %v11145_v17 = vld [vmem:[#allocation2 + $0x10a] sm:$0xff] }
  0x4c   : > { %13163 = vst [vmem:[#allocation43_spill] sm:$0xff] %v11011_v50  ;;  %4167 = vst.msk [vmem:[#allocation2] sm:$0xff] %vm304_vm1, %v12972_v1  ;;  %9092 = vmatprep.mubr.msk.f32.mxu0 %vm304_vm1, %v11011_v50  ;;  %v11149_v14 = vld [vmem:[#allocation2 + $0x111] sm:$0xff]  ;;  %v11157_v13 = vld [vmem:[#allocation2 + $0x121] sm:$0xff] }
  0x4d   : > { %13164 = vst [vmem:[#allocation44_spill] sm:$0xff] %v11031_v58  ;;  %13165 = vst [vmem:[#allocation45_spill] sm:$0xff] %v11033_v59  ;;  %v11151_v15 = vld [vmem:[#allocation2 + $0x110] sm:$0xff]  ;;  %v11165_v10 = vld [vmem:[#allocation2 + $0x120] sm:$0xff] }
  0x4e   : > { %4168 = vst.msk [vmem:[#allocation2 + $0x8] sm:$0xff] %vm304_vm1, %v12972_v1  ;;  %4170 = vst.msk [vmem:[#allocation2 + $0x18] sm:$0xff] %vm304_vm1, %v12972_v1  ;;  %v11153_v12 = vld [vmem:[#allocation2 + $0x112] sm:$0xff]  ;;  %v11167_v11 = vld [vmem:[#allocation2 + $0x122] sm:$0xff] }
  0x4f   : > { %4169 = vst.msk [vmem:[#allocation2 + $0x10] sm:$0x3] %vm307_vm2, %v12972_v1  ;;  %4172 = vst.msk [vmem:[#allocation2 + $0x28] sm:$0x3] %vm307_vm2, %v12972_v1  ;;  %9093 = vmatmul.mubr.msk.f32.gmra.mrb[16].mxu0 %vm304_vm1, %v11033_v59  ;;  %v11171_v5 = vld [vmem:[#allocation2 + $0x129] sm:$0xff]  ;;  %v11179_v4 = vld [vmem:[#allocation2 + $0x139] sm:$0xff] }
  0x50   : > { %4171 = vst.msk [vmem:[#allocation2 + $0x20] sm:$0xff] %vm304_vm1, %v12972_v1  ;;  %13166 = vst [vmem:[#allocation46_spill] sm:$0xff] %v11049_v61  ;;  %v11065_v1 = vld [vmem:[#allocation2 + $0x9a] sm:$0xff]  ;;  %9095 = vmatprep.mubr.msk.f32.mxu0 %vm304_vm1, %v11049_v61  ;;  %v11173_v9 = vld [vmem:[#allocation2 + $0x128] sm:$0xff] }
  0x51   : > { %4184 = vst.msk [vmem:[#allocation2 + $0x88] sm:$0x3] %vm307_vm2, %v13167_v39  ;;  %4187 = vst.msk [vmem:[#allocation2 + $0xa0] sm:$0x3] %vm307_vm2, %v13167_v39  ;;  %v11175_v3 = vld [vmem:[#allocation2 + $0x12a] sm:$0xff]  ;;  %v11215_v61 = vld [vmem:[#allocation2 + $0x159] sm:$0xff] }
  0x52   : > { %4185 = vst.msk [vmem:[#allocation2 + $0x90] sm:$0xff] %vm304_vm1, %v13167_v39  ;;  %4186 = vst.msk [vmem:[#allocation2 + $0x98] sm:$0xff] %vm304_vm1, %v13167_v39  ;;  %v11217_v59 = vld [vmem:[#allocation2 + $0x158] sm:$0xff]  ;;  %v11223_v49 = vld [vmem:[#allocation2 + $0x169] sm:$0xff] }
  0x53   : > { %4188 = vst.msk [vmem:[#allocation2 + $0xa8] sm:$0xff] %vm304_vm1, %v13167_v39  ;;  %4189 = vst.msk [vmem:[#allocation2 + $0xb0] sm:$0xff] %vm304_vm1, %v13167_v39  ;;  %9096 = vmatmul.mubr.msk.f32.gmra.mrb[18].mxu0 %vm304_vm1, %v11105_v26  ;;  %v11219_v50 = vld [vmem:[#allocation2 + $0x15a] sm:$0xff]  ;;  %v11237_v48 = vld [vmem:[#allocation2 + $0x171] sm:$0xff] }
  0x54   : > { %4190 = vst.msk [vmem:[#allocation2 + $0xb8] sm:$0x3] %vm307_vm2, %v13167_v39  ;;  %13168 = vst [vmem:[#allocation47_spill] sm:$0xff] %v11095_v32  ;;  %9098 = vmatprep.mubr.msk.f32.mxu0 %vm304_vm1, %v11113_v25  ;;  %v11239_v47 = vld [vmem:[#allocation2 + $0x170] sm:$0xff]  ;;  %v11285_v45 = vld [vmem:[#allocation2 + $0x68] sm:$0xff] }
  0x55   : > { %4191 = vst.msk [vmem:[#allocation2 + $0xc0] sm:$0xff] %vm304_vm1, %v13167_v39  ;;  %4192 = vst.msk [vmem:[#allocation2 + $0xc8] sm:$0xff] %vm304_vm1, %v13167_v39  ;;  %v11241_v46 = vld [vmem:[#allocation2 + $0x172] sm:$0xff]  ;;  %v11293_v43 = vld [vmem:[#allocation2 + $0x80] sm:$0xff] }
  0x56   : > { %4193 = vst.msk [vmem:[#allocation2 + $0xd0] sm:$0x3] %vm307_vm2, %v13167_v39  ;;  %13169 = vst [vmem:[#allocation48_spill] sm:$0xff] %v11105_v26  ;;  %v11201_v26 = vld [vmem:[#allocation2 + $0x151] sm:$0xff] }
  0x57   : > { %4194 = vst.msk [vmem:[#allocation2 + $0xd8] sm:$0xff] %vm304_vm1, %v13167_v39  ;;  %13170 = vst [vmem:[#allocation49_spill] sm:$0xff] %v11113_v25  ;;  %9099 = vmatmul.mubr.msk.f32.gmra.mrb[20].mxu0 %vm304_vm1, %v11127_v20  ;;  %v11197_v25 = vld [vmem:[#allocation2 + $0x142] sm:$0xff]  ;;  %v11287_v44 = vld [vmem:[#allocation2 + $0x78] sm:$0xff] }
  0x58   : > { %4196 = vst.msk [vmem:[#allocation2 + $0xe8] sm:$0x3] %vm307_vm2, %v13167_v39  ;;  %13171 = vst [vmem:[#allocation50_spill] sm:$0xff] %v11127_v20  ;;  %9101 = vmatprep.mubr.msk.f32.mxu0 %vm304_vm1, %v11135_v19  ;;  %v11195_v20 = vld [vmem:[#allocation2 + $0x140] sm:$0xff]  ;;  %v11328_v36 = vld [vmem:[%s10797_s30 + $0xf0] sm:$0xff] }
  0x59   : > { %4195 = vst.msk [vmem:[#allocation2 + $0xe0] sm:$0xff] %vm304_vm1, %v13167_v39  ;;  %4197 = vst.msk [vmem:[#allocation2 + $0xf0] sm:$0xff] %vm304_vm1, %v13167_v39  ;;  %v11333_v35 = vld [vmem:[%s10797_s30 + $0xf8] sm:$0xff] }
  0x5a   : > { %13172 = vst [vmem:[#allocation51_spill] sm:$0xff] %v11135_v19  ;;  %4199 = vst.msk [vmem:[#allocation2 + $0x100] sm:$0x3] %vm307_vm2, %v13167_v39  ;;  %v11193_v19 = vld [vmem:[#allocation2 + $0x141] sm:$0xff] }
  0x5b   : > { %4198 = vst.msk [vmem:[#allocation2 + $0xf8] sm:$0xff] %vm304_vm1, %v13167_v39  ;;  %13173 = vst [vmem:[#allocation52_spill] sm:$0xff] %v11149_v14  ;;  %9102 = vmatmul.mubr.msk.f32.gmra.mrb[22].mxu0 %vm304_vm1, %v11149_v14  ;;  %v11189_v14 = vld [vmem:[#allocation2 + $0x13a] sm:$0xff] }
  0x5c   : > { %4200 = vst.msk [vmem:[#allocation2 + $0x108] sm:$0xff] %vm304_vm1, %v13167_v39  ;;  %13174 = vst [vmem:[#allocation53_spill] sm:$0xff] %v11157_v13  ;;  %9104 = vmatprep.mubr.msk.f32.mxu0 %vm304_vm1, %v11157_v13  ;;  %v11187_v13 = vld [vmem:[#allocation2 + $0x138] sm:$0xff] }
  0x5d   : > { %4202 = vst.msk [vmem:[#allocation2 + $0x118] sm:$0x3] %vm307_vm2, %v13167_v39  ;;  %13175 = vst [vmem:[#allocation54_spill] sm:$0xff] %v11171_v5 }
  0x5e   : > { %4201 = vst.msk [vmem:[#allocation2 + $0x110] sm:$0xff] %vm304_vm1, %v13167_v39  ;;  %4203 = vst.msk [vmem:[#allocation2 + $0x120] sm:$0xff] %vm304_vm1, %v13167_v39 }
  0x5f   : > { %13176 = vst [vmem:[#allocation55_spill] sm:$0xff] %v11179_v4  ;;  %4205 = vst.msk [vmem:[#allocation2 + $0x130] sm:$0x3] %vm307_vm2, %v13167_v39  ;;  %9105 = vmatmul.mubr.msk.f32.gmra.mrb[24].mxu0 %vm304_vm1, %v11171_v5  ;;  %v11211_v5 = vld [vmem:[#allocation2 + $0x152] sm:$0xff] }
  0x60   : > { %4204 = vst.msk [vmem:[#allocation2 + $0x128] sm:$0xff] %vm304_vm1, %v13167_v39  ;;  %13177 = vst [vmem:[#allocation56_spill] sm:$0xff] %v11189_v14  ;;  %9107 = vmatprep.mubr.msk.f32.mxu0 %vm304_vm1, %v11179_v4  ;;  %v11209_v4 = vld [vmem:[#allocation2 + $0x150] sm:$0xff] }
  0x61   : > { %13178 = vst [vmem:[#allocation57_spill] sm:$0xff] %v11193_v19  ;;  %13179 = vst [vmem:[#allocation58_spill] sm:$0xff] %v11195_v20 }
  0x62   : > { %4206 = vst.msk [vmem:[#allocation2 + $0x138] sm:$0xff] %vm304_vm1, %v13167_v39  ;;  %13180 = vst [vmem:[#allocation59_spill] sm:$0xff] %v11201_v26 }
  0x63   : > { %4208 = vst.msk [vmem:[#allocation2 + $0x148] sm:$0x3] %vm307_vm2, %v13167_v39  ;;  %9108 = vmatmul.mubr.msk.f32.gmra.mrb[26].mxu0 %vm304_vm1, %v11193_v19  ;;  %13181 = vst [vmem:[#allocation60_spill] sm:$0xff] %v11209_v4  ;;  %v11233_v19 = vld [vmem:[#allocation2 + $0x16a] sm:$0xff] }
  0x64   : > { %4207 = vst.msk [vmem:[#allocation2 + $0x140] sm:$0xff] %vm304_vm1, %v13167_v39  ;;  %13182 = vst [vmem:[#allocation61_spill] sm:$0xff] %v11211_v5  ;;  %9110 = vmatprep.mubr.msk.f32.mxu0 %vm304_vm1, %v11201_v26  ;;  %v11231_v26 = vld [vmem:[#allocation2 + $0x168] sm:$0xff] }
  0x65   : > { %13183 = vst [vmem:[#allocation62_spill] sm:$0xff] %v11215_v61  ;;  %13184 = vst [vmem:[#allocation63_spill] sm:$0xff] %v11217_v59 }
  0x66   : > { %4209 = vst.msk [vmem:[#allocation2 + $0x150] sm:$0xff] %vm304_vm1, %v13167_v39  ;;  %13185 = vst [vmem:[#allocation64_spill] sm:$0xff] %v11223_v49 }
  0x67   : > { %4211 = vst.msk [vmem:[#allocation2 + $0x160] sm:$0x3] %vm307_vm2, %v13167_v39  ;;  %9111 = vmatmul.mubr.msk.f32.gmra.mrb[28].mxu0 %vm304_vm1, %v11215_v61  ;;  %13186 = vst [vmem:[#allocation65_spill] sm:$0xff] %v11231_v26  ;;  %v11262_v61 = vld [vmem:[#allocation2 + $0x30] sm:$0xff] }
  0x68   : > { %4210 = vst.msk [vmem:[#allocation2 + $0x158] sm:$0xff] %vm304_vm1, %v13167_v39  ;;  %9113 = vmatprep.mubr.msk.f32.mxu0 %vm304_vm1, %v11223_v49  ;;  %13187 = vst [vmem:[#allocation66_spill] sm:$0xff] %v11237_v48  ;;  %v1529_v49 = vld [vmem:[%s12967_s2 + $0xc] sm:$0xf] }
  0x69   : > { %13188 = vst [vmem:[#allocation67_spill] sm:$0xff] %v11239_v47  ;;  %4212 = vst.msk [vmem:[#allocation2 + $0x168] sm:$0xff] %vm304_vm1, %v13167_v39 }
  0x6a   : > { %4214 = vst.msk [vmem:[#allocation2 + $0x178] sm:$0x3] %vm307_vm2, %v13167_v39  ;;  %13189 = vst [vmem:[#allocation68_spill] sm:$0xff] %v11328_v36 }
  0x6b   : > { %4213 = vst.msk [vmem:[#allocation2 + $0x170] sm:$0xff] %vm304_vm1, %v13167_v39  ;;  %9114 = vmatmul.mubr.msk.f32.gmra.mrb[30].mxu0 %vm304_vm1, %v11237_v48  ;;  %v11271_v48 = vld [vmem:[#allocation2 + $0x48] sm:$0xff]  ;;  %391 = vst.msk [vmem:[#allocation2 + $0x181] sm:$0xff] %vm304_vm1, %v11328_v36  ;;  %v1918_v36 = vld [vmem:[%s12967_s2 + $0x10] sm:$0xf] }
  0x6c   : > { %9118 = vmatprep.mubr.msk.f32.mxu0 %vm304_vm1, %v11013_v51  ;;  %v11269_v51 = vld [vmem:[#allocation2 + $0x38] sm:$0xff]  ;;  %13190 = vst [vmem:[#allocation69_spill] sm:$0xff] %v11333_v35  ;;  %392 = vst.msk [vmem:[#allocation2 + $0x189] sm:$0xff] %vm304_vm1, %v11333_v35 }
  0x6d   : > { %v11357_v35 = vld [vmem:[#allocation2 + $0x32] sm:$0xff] }
  0x6e   : > { %13191 = vst [vmem:[#allocation70_spill] sm:$0xff] %v11357_v35 }
  0x6f   : > { %9119 = vmatmul.mubr.msk.f32.vlgmr.msra.gmra.mrb[0].mxu0 %vm304_vm1, %v11015_v52  ;;  %v11279_v52 = vld [vmem:[#allocation2 + $0x60] sm:$0xff] }
  0x70   : > { %9167 = vmatpush3.msk.msra.mxu0 %vm555_vm0, %v10811_v6  ;;  %9121 = vmatprep.mubr.msk.f32.mxu0 %vm304_vm1, %v11019_v53  ;;  %v11277_v6 = vld [vmem:[#allocation2 + $0x50] sm:$0xff] }
  0x71   : > { %9216 = vmatprep.subr.msk.mxu0 %vm555_vm0, %v1529_v49 }
  0x73   : > { %9122 = vmatmul.mubr.msk.f32.gmra.mrb[2].mxu0 %vm304_vm1, %v11021_v54 }
  0x74   : > { %9124 = vmatprep.mubr.msk.f32.mxu0 %vm304_vm1, %v11262_v61 }
  0x77   : > { %9125 = vmatmul.mubr.msk.f32.gmra.mrb[4].mxu0 %vm304_vm1, %v11269_v51 }
  0x78   : > { %9127 = vmatprep.mubr.msk.f32.mxu0 %vm304_vm1, %v11271_v48 }
  0x7b   : > { %9128 = vmatmul.mubr.msk.f32.gmra.mrb[6].mxu0 %vm304_vm1, %v11277_v6 }
  0x7c   : > { %9130 = vmatprep.mubr.msk.f32.mxu0 %vm304_vm1, %v11279_v52 }
  0x7f   : > { %9131 = vmatmul.mubr.msk.f32.gmra.mrb[8].mxu0 %vm304_vm1, %v11285_v45 }
  0x80   : > { %9133 = vmatprep.mubr.msk.f32.mxu0 %vm304_vm1, %v11287_v44 }
  0x83   : > { %9134 = vmatmul.mubr.msk.f32.gmra.mrb[10].mxu0 %vm304_vm1, %v11293_v43 }
  0x84   : > { %9136 = vmatprep.mubr.msk.f32.mxu0 %vm304_vm1, %v11035_v60 }
  0x87   : > { %9137 = vmatmul.mubr.msk.f32.gmra.mrb[12].mxu0 %vm304_vm1, %v11051_v62 }
  0x88   : > { %9139 = vmatprep.mubr.msk.f32.mxu0 %vm304_vm1, %v11053_v63 }
  0x8b   : > { %9140 = vmatmul.mubr.msk.f32.gmra.mrb[14].mxu0 %vm304_vm1, %v11055_v0 }
  0x8c   : > { %9142 = vmatprep.mubr.msk.f32.mxu0 %vm304_vm1, %v11059_v2 }
  0x8f   : > { %9143 = vmatmul.mubr.msk.f32.gmra.mrb[16].mxu0 %vm304_vm1, %v11075_v40 }
  0x90   : > { %9145 = vmatprep.mubr.msk.f32.mxu0 %vm304_vm1, %v11093_v31 }
  0x93   : > { %9146 = vmatmul.mubr.msk.f32.gmra.mrb[18].mxu0 %vm304_vm1, %v11107_v27 }
  0x94   : > { %9148 = vmatprep.mubr.msk.f32.mxu0 %vm304_vm1, %v11121_v22 }
  0x97   : > { %9149 = vmatmul.mubr.msk.f32.gmra.mrb[20].mxu0 %vm304_vm1, %v11129_v21 }
  0x98   : > { %9151 = vmatprep.mubr.msk.f32.mxu0 %vm304_vm1, %v11143_v16 }
  0x9b   : > { %9152 = vmatmul.mubr.msk.f32.gmra.mrb[22].mxu0 %vm304_vm1, %v11151_v15 }
  0x9c   : > { %9154 = vmatprep.mubr.msk.f32.mxu0 %vm304_vm1, %v11165_v10 }
  0x9f   : > { %9155 = vmatmul.mubr.msk.f32.gmra.mrb[24].mxu0 %vm304_vm1, %v11173_v9 }
  0xa0   : > { %9157 = vmatprep.mubr.msk.f32.mxu0 %vm304_vm1, %v11187_v13 }
  0xa3   : > { %9158 = vmatmul.mubr.msk.f32.gmra.mrb[26].mxu0 %vm304_vm1, %v11195_v20 }
  0xa4   : > { %9160 = vmatprep.mubr.msk.f32.mxu0 %vm304_vm1, %v11209_v4 }
  0xa7   : > { %9161 = vmatmul.mubr.msk.f32.gmra.mrb[28].mxu0 %vm304_vm1, %v11217_v59 }
  0xa8   : > { %9163 = vmatprep.mubr.msk.f32.mxu0 %vm304_vm1, %v11231_v26 }
  0xab   : > { %9164 = vmatmul.mubr.msk.f32.gmra.mrb[30].mxu0 %vm304_vm1, %v11239_v47 }
  0xac   : > { %9168 = vmatprep.mubr.msk.f32.mxu0 %vm304_vm1, %v11023_v55  ;;  %v11364_v55 = vld [vmem:[#allocation2 + $0x3a] sm:$0xff] }
  0xad   : > { %13192 = vst [vmem:[#allocation71_spill] sm:$0xff] %v11364_v55 }
  0xaf   : > { %9169 = vmatmul.mubr.msk.f32.vlgmr.msra.gmra.mrb[0].mxu0 %vm304_vm1, %v11027_v56  ;;  %v11374_v56 = vld [vmem:[#allocation2 + $0x62] sm:$0xff] }
  0xb0   : > { %9217 = vmatpush3.msk.msra.mxu0 %vm555_vm0, %v1529_v49  ;;  %9171 = vmatprep.mubr.msk.f32.mxu0 %vm304_vm1, %v11029_v57  ;;  %v11372_v49 = vld [vmem:[#allocation2 + $0x52] sm:$0xff] }
  0xb1   : > { %9266 = vmatprep.subr.msk.mxu0 %vm555_vm0, %v1918_v36 }
  0xb3   : > { %9172 = vmatmul.mubr.msk.f32.gmra.mrb[2].mxu0 %vm304_vm1, %v11031_v58  ;;  %v11382_v58 = vld [vmem:[#allocation2 + $0x7a] sm:$0xff] }
  0xb4   : > { %9174 = vmatprep.mubr.msk.f32.mxu0 %vm304_vm1, %v11357_v35  ;;  %v11380_v35 = vld [vmem:[#allocation2 + $0x6a] sm:$0xff] }
  0xb7   : > { %9175 = vmatmul.mubr.msk.f32.gmra.mrb[4].mxu0 %vm304_vm1, %v11364_v55 }
  0xb8   : > { %9177 = vmatprep.mubr.msk.f32.mxu0 %vm304_vm1, %v11366_v34 }
  0xbb   : > { %9178 = vmatmul.mubr.msk.f32.gmra.mrb[6].mxu0 %vm304_vm1, %v11372_v49 }
  0xbc   : > { %9180 = vmatprep.mubr.msk.f32.mxu0 %vm304_vm1, %v11374_v56 }
  0xbf   : > { %9181 = vmatmul.mubr.msk.f32.gmra.mrb[8].mxu0 %vm304_vm1, %v11380_v35 }
  0xc0   : > { %9183 = vmatprep.mubr.msk.f32.mxu0 %vm304_vm1, %v11382_v58 }
  0xc3   : > { %9184 = vmatmul.mubr.msk.f32.gmra.mrb[10].mxu0 %vm304_vm1, %v11061_v7 }
  0xc4   : > { %9186 = vmatprep.mubr.msk.f32.mxu0 %vm304_vm1, %v11063_v8 }
  0xc7   : > { %9187 = vmatmul.mubr.msk.f32.gmra.mrb[12].mxu0 %vm304_vm1, %v11065_v1 }
  0xc8   : > { %9189 = vmatprep.mubr.msk.f32.mxu0 %vm304_vm1, %v11067_v41 }
  0xcb   : > { %9190 = vmatmul.mubr.msk.f32.gmra.mrb[14].mxu0 %vm304_vm1, %v11069_v42 }
  0xcc   : > { %9192 = vmatprep.mubr.msk.f32.mxu0 %vm304_vm1, %v11077_v37 }
  0xcf   : > { %9193 = vmatmul.mubr.msk.f32.gmra.mrb[16].mxu0 %vm304_vm1, %v11079_v38 }
  0xd0   : > { %9195 = vmatprep.mubr.msk.f32.mxu0 %vm304_vm1, %v11095_v32 }
  0xd3   : > { %9196 = vmatmul.mubr.msk.f32.gmra.mrb[18].mxu0 %vm304_vm1, %v11109_v24 }
  0xd4   : > { %9198 = vmatprep.mubr.msk.f32.mxu0 %vm304_vm1, %v11123_v23 }
  0xd7   : > { %9199 = vmatmul.mubr.msk.f32.gmra.mrb[20].mxu0 %vm304_vm1, %v11131_v18 }
  0xd8   : > { %9201 = vmatprep.mubr.msk.f32.mxu0 %vm304_vm1, %v11145_v17 }
  0xdb   : > { %9202 = vmatmul.mubr.msk.f32.gmra.mrb[22].mxu0 %vm304_vm1, %v11153_v12 }
  0xdc   : > { %9204 = vmatprep.mubr.msk.f32.mxu0 %vm304_vm1, %v11167_v11 }
  0xdf   : > { %9205 = vmatmul.mubr.msk.f32.gmra.mrb[24].mxu0 %vm304_vm1, %v11175_v3 }
  0xe0   : > { %9207 = vmatprep.mubr.msk.f32.mxu0 %vm304_vm1, %v11189_v14  ;;  %v2307_v14 = vld [vmem:[%s12967_s2 + $0x14] sm:$0xf] }
  0xe3   : > { %9208 = vmatmul.mubr.msk.f32.gmra.mrb[26].mxu0 %vm304_vm1, %v11197_v25 }
  0xe4   : > { %9210 = vmatprep.mubr.msk.f32.mxu0 %vm304_vm1, %v11211_v5 }
  0xe7   : > { %9211 = vmatmul.mubr.msk.f32.gmra.mrb[28].mxu0 %vm304_vm1, %v11219_v50 }
  0xe8   : > { %9213 = vmatprep.mubr.msk.f32.mxu0 %vm304_vm1, %v11233_v19 }
  0xeb   : > { %9214 = vmatmul.mubr.msk.f32.gmra.mrb[30].mxu0 %vm304_vm1, %v11241_v46 }
  0xec   : > { %9218 = vmatprep.mubr.msk.f32.mxu0 %vm304_vm1, %v11019_v53  ;;  %v11497_v53 = vld [vmem:[#allocation2 + $0x181] sm:$0xff] }
  0xed   : > { %13194 = vst [vmem:[#allocation73_spill] sm:$0xff] %v11497_v53 }
  0xef   : > { %9219 = vmatmul.mubr.msk.f32.vlgmr.msra.gmra.mrb[0].mxu0 %vm304_vm1, %v11021_v54  ;;  %v11499_v54 = vld [vmem:[#allocation2 + $0x182] sm:$0xff] }
  0xf0   : > { %9267 = vmatpush3.msk.msra.mxu0 %vm555_vm0, %v1918_v36  ;;  %9221 = vmatprep.mubr.msk.f32.mxu0 %vm304_vm1, %v11262_v61  ;;  %v11493_v36 = vld [vmem:[#allocation2 + $0x180] sm:$0xff] }
  0xf1   : > { %9316 = vmatprep.subr.msk.mxu0 %vm555_vm0, %v2307_v14  ;;  %13193 = vst [vmem:[#allocation72_spill] sm:$0xff] %v11493_v36  ;;  %4215 = vst.msk [vmem:[#allocation2 + $0x180] sm:$0xff] %vm304_vm1, %v13167_v39 }
  0xf3   : > { %9222 = vmatmul.mubr.msk.f32.gmra.mrb[2].mxu0 %vm304_vm1, %v11269_v51 }
  0xf4   : > { %9224 = vmatprep.mubr.msk.f32.mxu0 %vm304_vm1, %v11271_v48 }
  0xf7   : > { %9225 = vmatmul.mubr.msk.f32.gmra.mrb[4].mxu0 %vm304_vm1, %v11277_v6 }
  0xf8   : > { %9227 = vmatprep.mubr.msk.f32.mxu0 %vm304_vm1, %v11279_v52 }
  0xfb   : > { %9228 = vmatmul.mubr.msk.f32.gmra.mrb[6].mxu0 %vm304_vm1, %v11285_v45 }
  0xfc   : > { %9230 = vmatprep.mubr.msk.f32.mxu0 %vm304_vm1, %v11287_v44 }
  0xff   : > { %9231 = vmatmul.mubr.msk.f32.gmra.mrb[8].mxu0 %vm304_vm1, %v11293_v43 }
 0x100   : > { %9233 = vmatprep.mubr.msk.f32.mxu0 %vm304_vm1, %v11035_v60 }
 0x103   : > { %9234 = vmatmul.mubr.msk.f32.gmra.mrb[10].mxu0 %vm304_vm1, %v11051_v62 }
 0x104   : > { %9236 = vmatprep.mubr.msk.f32.mxu0 %vm304_vm1, %v11053_v63 }
 0x107   : > { %9237 = vmatmul.mubr.msk.f32.gmra.mrb[12].mxu0 %vm304_vm1, %v11055_v0 }
 0x108   : > { %9239 = vmatprep.mubr.msk.f32.mxu0 %vm304_vm1, %v11059_v2 }
 0x10b   : > { %9240 = vmatmul.mubr.msk.f32.gmra.mrb[14].mxu0 %vm304_vm1, %v11075_v40 }
 0x10c   : > { %9242 = vmatprep.mubr.msk.f32.mxu0 %vm304_vm1, %v11093_v31 }
 0x10f   : > { %9243 = vmatmul.mubr.msk.f32.gmra.mrb[16].mxu0 %vm304_vm1, %v11107_v27 }
 0x110   : > { %9245 = vmatprep.mubr.msk.f32.mxu0 %vm304_vm1, %v11121_v22 }
 0x113   : > { %9246 = vmatmul.mubr.msk.f32.gmra.mrb[18].mxu0 %vm304_vm1, %v11129_v21 }
 0x114   : > { %9248 = vmatprep.mubr.msk.f32.mxu0 %vm304_vm1, %v11143_v16 }
 0x117   : > { %9249 = vmatmul.mubr.msk.f32.gmra.mrb[20].mxu0 %vm304_vm1, %v11151_v15 }
 0x118   : > { %9251 = vmatprep.mubr.msk.f32.mxu0 %vm304_vm1, %v11165_v10 }
 0x11b   : > { %9252 = vmatmul.mubr.msk.f32.gmra.mrb[22].mxu0 %vm304_vm1, %v11173_v9 }
 0x11c   : > { %9254 = vmatprep.mubr.msk.f32.mxu0 %vm304_vm1, %v11187_v13 }
 0x11f   : > { %9255 = vmatmul.mubr.msk.f32.gmra.mrb[24].mxu0 %vm304_vm1, %v11195_v20  ;;  %v11503_v20 = vld [vmem:[#allocation2 + $0x188] sm:$0xff] }
 0x120   : > { %9257 = vmatprep.mubr.msk.f32.mxu0 %vm304_vm1, %v11209_v4  ;;  %13195 = vst [vmem:[#allocation74_spill] sm:$0xff] %v11503_v20  ;;  %v11505_v4 = vld [vmem:[#allocation2 + $0x189] sm:$0xff] }
 0x121   : > { %13196 = vst [vmem:[#allocation75_spill] sm:$0xff] %v11505_v4 }
 0x123   : > { %9258 = vmatmul.mubr.msk.f32.gmra.mrb[26].mxu0 %vm304_vm1, %v11217_v59  ;;  %v11507_v59 = vld [vmem:[#allocation2 + $0x18a] sm:$0xff] }
 0x124   : > { %9260 = vmatprep.mubr.msk.f32.mxu0 %vm304_vm1, %v11231_v26  ;;  %4217 = vst.msk [vmem:[#allocation2 + $0x190] sm:$0x3] %vm307_vm2, %v13167_v39  ;;  %v13203_v26 = vld [vmem:[#allocation39_spill] sm:$0xff] }
 0x125   : > { %4216 = vst.msk [vmem:[#allocation2 + $0x188] sm:$0xff] %vm304_vm1, %v13167_v39 }
 0x127   : > { %9261 = vmatmul.mubr.msk.f32.gmra.mrb[28].mxu0 %vm304_vm1, %v11239_v47  ;;  %v13199_v47 = vld [vmem:[#allocation29_spill] sm:$0xff] }
 0x128   : > { %9263 = vmatprep.mubr.msk.f32.mxu0 %vm304_vm1, %v11493_v36  ;;  %v2697_v36 = vld [vmem:[%s12967_s2 + $0x18] sm:$0xf] }
 0x12b   : > { %9264 = vmatmul.mubr.msk.f32.gmra.mrb[30].mxu0 %vm304_vm1, %v11503_v20  ;;  %v13197_v20 = vld [vmem:[#allocation27_spill] sm:$0xff] }
 0x12c   : > { %9268 = vmatprep.mubr.msk.f32.mxu0 %vm304_vm1, %v10913_v28  ;;  %v13198_v28 = vld [vmem:[#allocation28_spill] sm:$0xff] }
 0x12f   : > { %9269 = vmatmul.mubr.msk.f32.vlgmr.msra.gmra.mrb[0].mxu0 %vm304_vm1, %v10915_v29  ;;  %v13200_v29 = vld [vmem:[#allocation36_spill] sm:$0xff] }
 0x130   : > { %9317 = vmatpush3.msk.msra.mxu0 %vm555_vm0, %v2307_v14  ;;  %9271 = vmatprep.mubr.msk.f32.mxu0 %vm304_vm1, %v10917_v30  ;;  %v13201_v14 = vld [vmem:[#allocation37_spill] sm:$0xff]  ;;  %v13202_v30 = vld [vmem:[#allocation38_spill] sm:$0xff] }
 0x131   : > { %9366 = vmatprep.subr.msk.mxu0 %vm555_vm0, %v2697_v36 }
 0x133   : > { %9272 = vmatmul.mubr.msk.f32.gmra.mrb[2].mxu0 %vm304_vm1, %v10941_v33  ;;  %v13204_v33 = vld [vmem:[#allocation40_spill] sm:$0xff] }
 0x134   : > { %9274 = vmatprep.mubr.msk.f32.mxu0 %vm304_vm1, %v13197_v20  ;;  %v13205_v20 = vld [vmem:[#allocation41_spill] sm:$0xff] }
 0x137   : > { %9275 = vmatmul.mubr.msk.f32.gmra.mrb[4].mxu0 %vm304_vm1, %v13198_v28  ;;  %v13206_v28 = vld [vmem:[#allocation42_spill] sm:$0xff] }
 0x138   : > { %9277 = vmatprep.mubr.msk.f32.mxu0 %vm304_vm1, %v13199_v47  ;;  %v13207_v47 = vld [vmem:[#allocation43_spill] sm:$0xff] }
 0x13b   : > { %9278 = vmatmul.mubr.msk.f32.gmra.mrb[6].mxu0 %vm304_vm1, %v13200_v29  ;;  %v13208_v29 = vld [vmem:[#allocation45_spill] sm:$0xff] }
 0x13c   : > { %9280 = vmatprep.mubr.msk.f32.mxu0 %vm304_vm1, %v13201_v14  ;;  %v13209_v14 = vld [vmem:[#allocation46_spill] sm:$0xff] }
 0x13f   : > { %9281 = vmatmul.mubr.msk.f32.gmra.mrb[8].mxu0 %vm304_vm1, %v13202_v30  ;;  %v13210_v30 = vld [vmem:[#allocation48_spill] sm:$0xff] }
 0x140   : > { %9283 = vmatprep.mubr.msk.f32.mxu0 %vm304_vm1, %v13203_v26  ;;  %v13211_v26 = vld [vmem:[#allocation49_spill] sm:$0xff] }
 0x143   : > { %9284 = vmatmul.mubr.msk.f32.gmra.mrb[10].mxu0 %vm304_vm1, %v13204_v33  ;;  %v13212_v33 = vld [vmem:[#allocation50_spill] sm:$0xff] }
 0x144   : > { %9286 = vmatprep.mubr.msk.f32.mxu0 %vm304_vm1, %v13205_v20  ;;  %v13213_v20 = vld [vmem:[#allocation51_spill] sm:$0xff] }
 0x147   : > { %9287 = vmatmul.mubr.msk.f32.gmra.mrb[12].mxu0 %vm304_vm1, %v13206_v28  ;;  %v13214_v28 = vld [vmem:[#allocation52_spill] sm:$0xff] }
 0x148   : > { %9289 = vmatprep.mubr.msk.f32.mxu0 %vm304_vm1, %v13207_v47  ;;  %v13215_v47 = vld [vmem:[#allocation53_spill] sm:$0xff] }
 0x14b   : > { %9290 = vmatmul.mubr.msk.f32.gmra.mrb[14].mxu0 %vm304_vm1, %v13208_v29  ;;  %v13216_v29 = vld [vmem:[#allocation54_spill] sm:$0xff] }
 0x14c   : > { %9292 = vmatprep.mubr.msk.f32.mxu0 %vm304_vm1, %v13209_v14  ;;  %v13217_v14 = vld [vmem:[#allocation55_spill] sm:$0xff] }
 0x14f   : > { %9293 = vmatmul.mubr.msk.f32.gmra.mrb[16].mxu0 %vm304_vm1, %v13210_v30  ;;  %v13218_v30 = vld [vmem:[#allocation57_spill] sm:$0xff] }
 0x150   : > { %9295 = vmatprep.mubr.msk.f32.mxu0 %vm304_vm1, %v13211_v26  ;;  %v13219_v26 = vld [vmem:[#allocation59_spill] sm:$0xff] }
 0x153   : > { %9296 = vmatmul.mubr.msk.f32.gmra.mrb[18].mxu0 %vm304_vm1, %v13212_v33  ;;  %v13220_v33 = vld [vmem:[#allocation62_spill] sm:$0xff] }
 0x154   : > { %9298 = vmatprep.mubr.msk.f32.mxu0 %vm304_vm1, %v13213_v20  ;;  %v13221_v20 = vld [vmem:[#allocation64_spill] sm:$0xff] }
 0x157   : > { %9299 = vmatmul.mubr.msk.f32.gmra.mrb[20].mxu0 %vm304_vm1, %v13214_v28  ;;  %v13222_v28 = vld [vmem:[#allocation66_spill] sm:$0xff] }
 0x158   : > { %9301 = vmatprep.mubr.msk.f32.mxu0 %vm304_vm1, %v13215_v47 }
 0x15b   : > { %9302 = vmatmul.mubr.msk.f32.gmra.mrb[22].mxu0 %vm304_vm1, %v13216_v29 }
 0x15c   : > { %9304 = vmatprep.mubr.msk.f32.mxu0 %vm304_vm1, %v13217_v14  ;;  %v11586_v14 = vld [vmem:[#allocation2 + $0x31] sm:$0xff] }
 0x15d   : > { %4173 = vst.msk [vmem:[#allocation2 + $0x30] sm:$0xff] %vm304_vm1, %v13167_v39 }
 0x15f   : > { %9305 = vmatmul.mubr.msk.f32.gmra.mrb[24].mxu0 %vm304_vm1, %v13218_v30 }
 0x160   : > { %9307 = vmatprep.mubr.msk.f32.mxu0 %vm304_vm1, %v13219_v26  ;;  %v11590_v26 = vld [vmem:[#allocation2 + $0x39] sm:$0xff] }
 0x161   : > { %4175 = vst.msk [vmem:[#allocation2 + $0x40] sm:$0x3] %vm307_vm2, %v13167_v39 }
 0x162   : > { %4174 = vst.msk [vmem:[#allocation2 + $0x38] sm:$0xff] %vm304_vm1, %v13167_v39 }
 0x163   : > { %9308 = vmatmul.mubr.msk.f32.gmra.mrb[26].mxu0 %vm304_vm1, %v13220_v33 }
 0x164   : > { %9310 = vmatprep.mubr.msk.f32.mxu0 %vm304_vm1, %v13221_v20  ;;  %v11608_v20 = vld [vmem:[#allocation2 + $0x51] sm:$0xff] }
 0x165   : > { %4178 = vst.msk [vmem:[#allocation2 + $0x58] sm:$0x3] %vm307_vm2, %v13167_v39 }
 0x167   : > { %9311 = vmatmul.mubr.msk.f32.gmra.mrb[28].mxu0 %vm304_vm1, %v13222_v28  ;;  %v11606_v28 = vld [vmem:[#allocation2 + $0x49] sm:$0xff] }
 0x168   : > { %9313 = vmatprep.mubr.msk.f32.mxu0 %vm304_vm1, %v11497_v53  ;;  %v13223_v53 = vld [vmem:[#allocation44_spill] sm:$0xff]  ;;  %4176 = vst.msk [vmem:[#allocation2 + $0x48] sm:$0xff] %vm304_vm1, %v13167_v39  ;;  %4177 = vst.msk [vmem:[#allocation2 + $0x50] sm:$0xff] %vm304_vm1, %v13167_v39 }
 0x16b   : > { %9314 = vmatmul.mubr.msk.f32.gmra.mrb[30].mxu0 %vm304_vm1, %v11505_v4  ;;  %v3086_v4 = vld [vmem:[%s12967_s2 + $0x1c] sm:$0xf] }
 0x16c   : > { %9318 = vmatprep.mubr.msk.f32.mxu0 %vm304_vm1, %v11029_v57  ;;  %v13224_v57 = vld [vmem:[#allocation70_spill] sm:$0xff] }
 0x16f   : > { %9319 = vmatmul.mubr.msk.f32.vlgmr.msra.gmra.mrb[0].mxu0 %vm304_vm1, %v13223_v53  ;;  %v11623_v53 = vld [vmem:[#allocation2 + $0x69] sm:$0xff] }
 0x170   : > { %9367 = vmatpush3.msk.msra.mxu0 %vm555_vm0, %v2697_v36  ;;  %9321 = vmatprep.mubr.msk.f32.mxu0 %vm304_vm1, %v13224_v57  ;;  %v11619_v36 = vld [vmem:[#allocation2 + $0x61] sm:$0xff]  ;;  %4181 = vst.msk [vmem:[#allocation2 + $0x70] sm:$0x3] %vm307_vm2, %v13167_v39 }
 0x171   : > { %9416 = vmatprep.subr.msk.mxu0 %vm555_vm0, %v3086_v4  ;;  %4179 = vst.msk [vmem:[#allocation2 + $0x60] sm:$0xff] %vm304_vm1, %v13167_v39  ;;  %4180 = vst.msk [vmem:[#allocation2 + $0x68] sm:$0xff] %vm304_vm1, %v13167_v39 }
 0x173   : > { %9322 = vmatmul.mubr.msk.f32.gmra.mrb[2].mxu0 %vm304_vm1, %v11364_v55  ;;  %v11633_v55 = vld [vmem:[#allocation2 + $0x79] sm:$0xff] }
 0x174   : > { %9324 = vmatprep.mubr.msk.f32.mxu0 %vm304_vm1, %v11366_v34  ;;  %4182 = vst.msk [vmem:[#allocation2 + $0x78] sm:$0xff] %vm304_vm1, %v13167_v39  ;;  %4183 = vst.msk [vmem:[#allocation2 + $0x80] sm:$0xff] %vm304_vm1, %v13167_v39 }
 0x177   : > { %9325 = vmatmul.mubr.msk.f32.gmra.mrb[4].mxu0 %vm304_vm1, %v11372_v49 }
 0x178   : > { %9327 = vmatprep.mubr.msk.f32.mxu0 %vm304_vm1, %v11374_v56 }
 0x17b   : > { %9328 = vmatmul.mubr.msk.f32.gmra.mrb[6].mxu0 %vm304_vm1, %v11380_v35 }
 0x17c   : > { %9330 = vmatprep.mubr.msk.f32.mxu0 %vm304_vm1, %v11382_v58 }
 0x17f   : > { %9331 = vmatmul.mubr.msk.f32.gmra.mrb[8].mxu0 %vm304_vm1, %v11061_v7 }
 0x180   : > { %9333 = vmatprep.mubr.msk.f32.mxu0 %vm304_vm1, %v11063_v8 }
 0x183   : > { %9334 = vmatmul.mubr.msk.f32.gmra.mrb[10].mxu0 %vm304_vm1, %v11065_v1 }
 0x184   : > { %9336 = vmatprep.mubr.msk.f32.mxu0 %vm304_vm1, %v11067_v41 }
 0x187   : > { %9337 = vmatmul.mubr.msk.f32.gmra.mrb[12].mxu0 %vm304_vm1, %v11069_v42 }
 0x188   : > { %9339 = vmatprep.mubr.msk.f32.mxu0 %vm304_vm1, %v11077_v37 }
 0x18b   : > { %9340 = vmatmul.mubr.msk.f32.gmra.mrb[14].mxu0 %vm304_vm1, %v11079_v38 }
 0x18c   : > { %9342 = vmatprep.mubr.msk.f32.mxu0 %vm304_vm1, %v11095_v32  ;;  %v13225_v32 = vld [vmem:[#allocation56_spill] sm:$0xff] }
 0x18f   : > { %9343 = vmatmul.mubr.msk.f32.gmra.mrb[16].mxu0 %vm304_vm1, %v11109_v24 }
 0x190   : > { %9345 = vmatprep.mubr.msk.f32.mxu0 %vm304_vm1, %v11123_v23 }
 0x193   : > { %9346 = vmatmul.mubr.msk.f32.gmra.mrb[18].mxu0 %vm304_vm1, %v11131_v18 }
 0x194   : > { %9348 = vmatprep.mubr.msk.f32.mxu0 %vm304_vm1, %v11145_v17 }
 0x197   : > { %9349 = vmatmul.mubr.msk.f32.gmra.mrb[20].mxu0 %vm304_vm1, %v11153_v12 }
 0x198   : > { %9351 = vmatprep.mubr.msk.f32.mxu0 %vm304_vm1, %v11167_v11 }
 0x19b   : > { %9352 = vmatmul.mubr.msk.f32.gmra.mrb[22].mxu0 %vm304_vm1, %v11175_v3 }
 0x19c   : > { %9354 = vmatprep.mubr.msk.f32.mxu0 %vm304_vm1, %v13225_v32 }
 0x19f   : > { %9355 = vmatmul.mubr.msk.f32.gmra.mrb[24].mxu0 %vm304_vm1, %v11197_v25 }
 0x1a0   : > { %9357 = vmatprep.mubr.msk.f32.mxu0 %vm304_vm1, %v11211_v5  ;;  %v3475_v5 = vld [vmem:[%s12967_s2 + $0x20] sm:$0xf] }
 0x1a3   : > { %9358 = vmatmul.mubr.msk.f32.gmra.mrb[26].mxu0 %vm304_vm1, %v11219_v50 }
 0x1a4   : > { %9360 = vmatprep.mubr.msk.f32.mxu0 %vm304_vm1, %v11233_v19 }
 0x1a7   : > { %9361 = vmatmul.mubr.msk.f32.gmra.mrb[28].mxu0 %vm304_vm1, %v11241_v46 }
 0x1a8   : > { %9363 = vmatprep.mubr.msk.f32.mxu0 %vm304_vm1, %v11499_v54 }
 0x1ab   : > { %9364 = vmatmul.mubr.msk.f32.gmra.mrb[30].mxu0 %vm304_vm1, %v11507_v59 }
 0x1ac   : > { %9368 = vmatprep.mubr.msk.f32.mxu0 %vm304_vm1, %v11262_v61  ;;  %v13239_v61 = vld [vmem:[#allocation45_spill] sm:$0xff] }
 0x1af   : > { %9369 = vmatmul.mubr.msk.f32.vlgmr.msra.gmra.mrb[0].mxu0 %vm304_vm1, %v11269_v51  ;;  %v13244_v51 = vld [vmem:[#allocation51_spill] sm:$0xff] }
 0x1b0   : > { %9417 = vmatpush3.msk.msra.mxu0 %vm555_vm0, %v3086_v4  ;;  %9371 = vmatprep.mubr.msk.f32.mxu0 %vm304_vm1, %v11271_v48  ;;  %v13226_v4 = vld [vmem:[#allocation58_spill] sm:$0xff] }
 0x1b1   : > { %9466 = vmatprep.subr.msk.mxu0 %vm555_vm0, %v3475_v5  ;;  %v13237_v48 = vld [vmem:[#allocation42_spill] sm:$0xff] }
 0x1b3   : > { %9372 = vmatmul.mubr.msk.f32.gmra.mrb[2].mxu0 %vm304_vm1, %v11277_v6  ;;  %v13245_v6 = vld [vmem:[#allocation52_spill] sm:$0xff] }
 0x1b4   : > { %9374 = vmatprep.mubr.msk.f32.mxu0 %vm304_vm1, %v11279_v52  ;;  %v13246_v52 = vld [vmem:[#allocation55_spill] sm:$0xff] }
 0x1b7   : > { %9375 = vmatmul.mubr.msk.f32.gmra.mrb[4].mxu0 %vm304_vm1, %v11285_v45  ;;  %v13236_v45 = vld [vmem:[#allocation41_spill] sm:$0xff] }
 0x1b8   : > { %9377 = vmatprep.mubr.msk.f32.mxu0 %vm304_vm1, %v11287_v44  ;;  %v11761_v44 = vld [vmem:[#allocation2 + $0x1a2] sm:$0xff] }
 0x1bb   : > { %9378 = vmatmul.mubr.msk.f32.gmra.mrb[6].mxu0 %vm304_vm1, %v11293_v43  ;;  %v3085_v43 = vld [vmem:[#allocation2 + $0x1a1] sm:$0xff] }
 0x1bc   : > { %9380 = vmatprep.mubr.msk.f32.mxu0 %vm304_vm1, %v11035_v60  ;;  %4220 = vst.msk [vmem:[#allocation2 + $0x1a8] sm:$0x3] %vm307_vm2, %v13167_v39  ;;  %v13238_v60 = vld [vmem:[#allocation43_spill] sm:$0xff] }
 0x1bf   : > { %9381 = vmatmul.mubr.msk.f32.gmra.mrb[8].mxu0 %vm304_vm1, %v11051_v62  ;;  %v13240_v62 = vld [vmem:[#allocation46_spill] sm:$0xff] }
 0x1c0   : > { %9383 = vmatprep.mubr.msk.f32.mxu0 %vm304_vm1, %v11053_v63  ;;  %v13241_v63 = vld [vmem:[#allocation48_spill] sm:$0xff] }
 0x1c3   : > { %9384 = vmatmul.mubr.msk.f32.gmra.mrb[10].mxu0 %vm304_vm1, %v11055_v0  ;;  %v13242_v0 = vld [vmem:[#allocation49_spill] sm:$0xff] }
 0x1c4   : > { %9386 = vmatprep.mubr.msk.f32.mxu0 %vm304_vm1, %v11059_v2  ;;  %v13243_v2 = vld [vmem:[#allocation50_spill] sm:$0xff] }
 0x1c7   : > { %9387 = vmatmul.mubr.msk.f32.gmra.mrb[12].mxu0 %vm304_vm1, %v11075_v40  ;;  %v2696_v40 = vld [vmem:[#allocation2 + $0x1a0] sm:$0xff] }
 0x1c8   : > { %9389 = vmatprep.mubr.msk.f32.mxu0 %vm304_vm1, %v11093_v31  ;;  %v11756_v31 = vld [vmem:[#allocation2 + $0x19a] sm:$0xff] }
 0x1cb   : > { %9390 = vmatmul.mubr.msk.f32.gmra.mrb[14].mxu0 %vm304_vm1, %v11107_v27  ;;  %v3084_v27 = vld [vmem:[#allocation2 + $0x199] sm:$0xff] }
 0x1cc   : > { %9392 = vmatprep.mubr.msk.f32.mxu0 %vm304_vm1, %v11121_v22  ;;  %v13227_v22 = vld [vmem:[#allocation60_spill] sm:$0xff]  ;;  %4219 = vst.msk [vmem:[#allocation2 + $0x1a0] sm:$0xff] %vm304_vm1, %v13167_v39 }
 0x1cf   : > { %9393 = vmatmul.mubr.msk.f32.gmra.mrb[16].mxu0 %vm304_vm1, %v11129_v21  ;;  %v13228_v21 = vld [vmem:[#allocation63_spill] sm:$0xff] }
 0x1d0   : > { %9395 = vmatprep.mubr.msk.f32.mxu0 %vm304_vm1, %v11143_v16  ;;  %v13229_v16 = vld [vmem:[#allocation65_spill] sm:$0xff] }
 0x1d3   : > { %9396 = vmatmul.mubr.msk.f32.gmra.mrb[18].mxu0 %vm304_vm1, %v11151_v15  ;;  %v13230_v15 = vld [vmem:[#allocation67_spill] sm:$0xff] }
 0x1d4   : > { %9398 = vmatprep.mubr.msk.f32.mxu0 %vm304_vm1, %v11165_v10  ;;  %v13231_v10 = vld [vmem:[#allocation72_spill] sm:$0xff] }
 0x1d7   : > { %9399 = vmatmul.mubr.msk.f32.gmra.mrb[20].mxu0 %vm304_vm1, %v11173_v9  ;;  %v2695_v9 = vld [vmem:[#allocation2 + $0x198] sm:$0xff] }
 0x1d8   : > { %9401 = vmatprep.mubr.msk.f32.mxu0 %vm304_vm1, %v11187_v13  ;;  %v13232_v13 = vld [vmem:[#allocation74_spill] sm:$0xff]  ;;  %4218 = vst.msk [vmem:[#allocation2 + $0x198] sm:$0xff] %vm304_vm1, %v13167_v39 }
 0x1d9   : > { %v13233_v39 = vld [vmem:[#allocation38_spill] sm:$0xff] }
 0x1db   : > { %9402 = vmatmul.mubr.msk.f32.gmra.mrb[22].mxu0 %vm304_vm1, %v13226_v4 }
 0x1dc   : > { %9404 = vmatprep.mubr.msk.f32.mxu0 %vm304_vm1, %v13227_v22 }
 0x1df   : > { %9405 = vmatmul.mubr.msk.f32.gmra.mrb[24].mxu0 %vm304_vm1, %v13228_v21  ;;  %v3905_v21 = vld [vmem:[%s11911_s7 + $0x10] sm:$0xff] }
 0x1e0   : > { %9407 = vmatprep.mubr.msk.f32.mxu0 %vm304_vm1, %v13229_v16 }
 0x1e3   : > { %9408 = vmatmul.mubr.msk.f32.gmra.mrb[26].mxu0 %vm304_vm1, %v13230_v15 }
 0x1e4   : > { %9410 = vmatprep.mubr.msk.f32.mxu0 %vm304_vm1, %v13231_v10 }
 0x1e7   : > { %9411 = vmatmul.mubr.msk.f32.gmra.mrb[28].mxu0 %vm304_vm1, %v13232_v13 }
 0x1e8   : > { %9413 = vmatprep.mubr.msk.f32.mxu0 %vm304_vm1, %v2695_v9  ;;  %v13263_v9 = vld [vmem:[#allocation12_spill] sm:$0xff] }
 0x1eb   : > { %9414 = vmatmul.mubr.msk.f32.gmra.mrb[30].mxu0 %vm304_vm1, %v2696_v40 }
 0x1ec   : > { %9418 = vmatprep.mubr.msk.f32.mxu0 %vm304_vm1, %v11586_v14 }
 0x1ef   : > { %9419 = vmatmul.mubr.msk.f32.vlgmr.msra.gmra.mrb[0].mxu0 %vm304_vm1, %v11590_v26  ;;  %v13234_v26 = vld [vmem:[#allocation39_spill] sm:$0xff] }
 0x1f0   : > { %9467 = vmatpush3.msk.msra.mxu0 %vm555_vm0, %v3475_v5  ;;  %9421 = vmatprep.mubr.msk.f32.mxu0 %vm304_vm1, %v11606_v28  ;;  %v13235_v5 = vld [vmem:[#allocation40_spill] sm:$0xff]  ;;  %v13249_v28 = vld [vmem:[#allocation66_spill] sm:$0xff] }
 0x1f3   : > { %9422 = vmatmul.mubr.msk.f32.gmra.mrb[2].mxu0 %vm304_vm1, %v11608_v20  ;;  %v13248_v20 = vld [vmem:[#allocation64_spill] sm:$0xff] }
 0x1f4   : > { %9424 = vmatprep.mubr.msk.f32.mxu0 %vm304_vm1, %v11619_v36  ;;  %v13262_v36 = vld [vmem:[#allocation9_spill] sm:$0xff] }
 0x1f7   : > { %9425 = vmatmul.mubr.msk.f32.gmra.mrb[4].mxu0 %vm304_vm1, %v11623_v53 }
 0x1f8   : > { %9427 = vmatprep.mubr.msk.f32.mxu0 %vm304_vm1, %v11633_v55  ;;  %v13247_v55 = vld [vmem:[#allocation59_spill] sm:$0xff] }
 0x1fb   : > { %9428 = vmatmul.mubr.msk.f32.gmra.mrb[6].mxu0 %vm304_vm1, %v13233_v39 }
 0x1fc   : > { %9430 = vmatprep.mubr.msk.f32.mxu0 %vm304_vm1, %v13234_v26 }
 0x1ff   : > { %9431 = vmatmul.mubr.msk.f32.gmra.mrb[8].mxu0 %vm304_vm1, %v13235_v5  ;;  %v13265_v5 = vld [vmem:[#allocation14_spill] sm:$0xff] }
 0x200   : > { %9433 = vmatprep.mubr.msk.f32.mxu0 %vm304_vm1, %v13236_v45 }
 0x203   : > { %9434 = vmatmul.mubr.msk.f32.gmra.mrb[10].mxu0 %vm304_vm1, %v13237_v48 }
 0x204   : > { %9436 = vmatprep.mubr.msk.f32.mxu0 %vm304_vm1, %v13238_v60 }
 0x207   : > { %9437 = vmatmul.mubr.msk.f32.gmra.mrb[12].mxu0 %vm304_vm1, %v13239_v61 }
 0x208   : > { %9439 = vmatprep.mubr.msk.f32.mxu0 %vm304_vm1, %v13240_v62 }
 0x20b   : > { %9440 = vmatmul.mubr.msk.f32.gmra.mrb[14].mxu0 %vm304_vm1, %v13241_v63 }
 0x20c   : > { %9442 = vmatprep.mubr.msk.f32.mxu0 %vm304_vm1, %v13242_v0 }
 0x20f   : > { %9443 = vmatmul.mubr.msk.f32.gmra.mrb[16].mxu0 %vm304_vm1, %v13243_v2 }
 0x210   : > { %9445 = vmatprep.mubr.msk.f32.mxu0 %vm304_vm1, %v13244_v51  ;;  %v13266_v51 = vld [vmem:[#allocation13_spill] sm:$0xff] }
 0x213   : > { %9446 = vmatmul.mubr.msk.f32.gmra.mrb[18].mxu0 %vm304_vm1, %v13245_v6  ;;  %v3921_v6 = vadd.f32 %v3905_v21, %v13266_v51 }
 0x214   : > { %9448 = vmatprep.mubr.msk.f32.mxu0 %vm304_vm1, %v13215_v47  ;;  %v13250_v47 = vld [vmem:[#allocation73_spill] sm:$0xff] }
 0x217   : > { %9449 = vmatmul.mubr.msk.f32.gmra.mrb[20].mxu0 %vm304_vm1, %v13216_v29  ;;  %v13251_v29 = vld [vmem:[#allocation75_spill] sm:$0xff] }
 0x218   : > { %9451 = vmatprep.mubr.msk.f32.mxu0 %vm304_vm1, %v13246_v52 }
 0x21b   : > { %9452 = vmatmul.mubr.msk.f32.gmra.mrb[22].mxu0 %vm304_vm1, %v13218_v30  ;;  %v13252_v30 = vld [vmem:[#allocation71_spill] sm:$0xff] }
 0x21c   : > { %9454 = vmatprep.mubr.msk.f32.mxu0 %vm304_vm1, %v13247_v55 }
 0x21f   : > { %9455 = vmatmul.mubr.msk.f32.gmra.mrb[24].mxu0 %vm304_vm1, %v13220_v33  ;;  %v13261_v33 = vld [vmem:[#allocation10_spill] sm:$0xff] }
 0x220   : > { %9457 = vmatprep.mubr.msk.f32.mxu0 %vm304_vm1, %v13248_v20  ;;  %v13267_v20 = vld [vmem:[#allocation16_spill] sm:$0xff] }
 0x223   : > { %9458 = vmatmul.mubr.msk.f32.gmra.mrb[26].mxu0 %vm304_vm1, %v13249_v28 }
 0x224   : > { %9460 = vmatprep.mubr.msk.f32.mxu0 %vm304_vm1, %v13250_v47 }
 0x227   : > { %9461 = vmatmul.mubr.msk.f32.gmra.mrb[28].mxu0 %vm304_vm1, %v13251_v29 }
 0x228   : > { %9463 = vmatprep.mubr.msk.f32.mxu0 %vm304_vm1, %v3084_v27 }
 0x22b   : > { %9464 = vmatmul.mubr.msk.f32.gmra.mrb[30].mxu0 %vm304_vm1, %v3085_v43  ;;  %v13264_v43 = vld [vmem:[#allocation11_spill] sm:$0xff] }
 0x22c   : > { %9468 = vmatprep.mubr.msk.f32.mxu0 %vm304_vm1, %v13224_v57  ;;  %v3906_v57 = vld [vmem:[%s11911_s7 + $0x18] sm:$0xff] }
 0x22d   : > { %v3920_v13 = vadd.f32 %v3906_v57, %v13263_v9  ;;  %v3922_v45 = vadd.f32 %v3906_v57, %v13265_v5  ;;  %v3924_v28 = vadd.f32 %v3906_v57, %v13267_v20 }
 0x22f   : > { %9469 = vmatmul.mubr.msk.f32.vlgmr.msra.gmra.mrb[0].mxu0 %vm304_vm1, %v13252_v30  ;;  %v3952_v61 = vadd.f32 1e-08, %v3920_v13  ;;  %v3954_v55 = vadd.f32 1e-08, %v3922_v45 }
 0x230   : > { %9471 = vmatprep.mubr.msk.f32.mxu0 %vm304_vm1, %v11366_v34  ;;  %v13253_v34 = vld [vmem:[#allocation47_spill] sm:$0xff] }
 0x231   : > { %v3984_v29 = vsub.f32 0.0, %v3952_v61 }
 0x233   : > { %9472 = vmatmul.mubr.msk.f32.gmra.mrb[2].mxu0 %vm304_vm1, %v11372_v49  ;;  %v13260_v49 = vld [vmem:[#allocation7_spill] sm:$0xff] }
 0x234   : > { %9474 = vmatprep.mubr.msk.f32.mxu0 %vm304_vm1, %v11374_v56 }
 0x237   : > { %9475 = vmatmul.mubr.msk.f32.gmra.mrb[4].mxu0 %vm304_vm1, %v11380_v35 }
 0x238   : > { %9477 = vmatprep.mubr.msk.f32.mxu0 %vm304_vm1, %v11382_v58  ;;  %v13259_v58 = vld [vmem:[#allocation8_spill] sm:$0xff] }
 0x23b   : > { %9478 = vmatmul.mubr.msk.f32.gmra.mrb[6].mxu0 %vm304_vm1, %v11061_v7 }
 0x23c   : > { %9480 = vmatprep.mubr.msk.f32.mxu0 %vm304_vm1, %v11063_v8 }
 0x23f   : > { %9481 = vmatmul.mubr.msk.f32.gmra.mrb[8].mxu0 %vm304_vm1, %v11065_v1  ;;  %v13254_v1 = vld [vmem:[#allocation61_spill] sm:$0xff] }
 0x240   : > { %9483 = vmatprep.mubr.msk.f32.mxu0 %vm304_vm1, %v11067_v41 }
 0x243   : > { %9484 = vmatmul.mubr.msk.f32.gmra.mrb[10].mxu0 %vm304_vm1, %v11069_v42  ;;  %v13258_v42 = vld [vmem:[#allocation5_spill] sm:$0xff] }
 0x244   : > { %9486 = vmatprep.mubr.msk.f32.mxu0 %vm304_vm1, %v11077_v37 }
 0x247   : > { %9487 = vmatmul.mubr.msk.f32.gmra.mrb[12].mxu0 %vm304_vm1, %v11079_v38  ;;  %v13257_v38 = vld [vmem:[#allocation6_spill] sm:$0xff] }
 0x248   : > { %9489 = vmatprep.mubr.msk.f32.mxu0 %vm304_vm1, %v13253_v34 }
 0x24b   : > { %9490 = vmatmul.mubr.msk.f32.gmra.mrb[14].mxu0 %vm304_vm1, %v11109_v24 }
 0x24c   : > { %9492 = vmatprep.mubr.msk.f32.mxu0 %vm304_vm1, %v11123_v23  ;;  %v13255_v23 = vld [vmem:[#allocation4_spill] sm:$0xff] }
 0x24f   : > { %9493 = vmatmul.mubr.msk.f32.gmra.mrb[16].mxu0 %vm304_vm1, %v11131_v18  ;;  %v4999_v18 = vld [vmem:[%s12969_s4 + $0x8] sm:$0xf] }
 0x250   : > { %9495 = vmatprep.mubr.msk.f32.mxu0 %vm304_vm1, %v11145_v17  ;;  %v4285_v17 = vld [vmem:[%s12969_s4] sm:$0xf] }
 0x253   : > { %9496 = vmatmul.mubr.msk.f32.gmra.mrb[18].mxu0 %vm304_vm1, %v11153_v12  ;;  %v4287_v12 = vld [vmem:[#allocation2 + $0x9] sm:$0xff] }
 0x254   : > { %9498 = vmatprep.mubr.msk.f32.mxu0 %vm304_vm1, %v11167_v11  ;;  %v4286_v11 = vld [vmem:[#allocation2 + $0x1] sm:$0xff] }
 0x255   : > { %9518 = vmatprep.mubr.msk.f32.mxu1 %vm304_vm1, %v4286_v11  ;;  %v13268_v11 = vld [vmem:[#allocation15_spill] sm:$0xff] }
 0x257   : > { %9499 = vmatmul.mubr.msk.f32.gmra.mrb[20].mxu0 %vm304_vm1, %v11175_v3  ;;  %v4318_v3 = vld [vmem:[%s12969_s4 + $0x4] sm:$0xf] }
 0x258   : > { %9501 = vmatprep.mubr.msk.f32.mxu0 %vm304_vm1, %v13225_v32  ;;  %9516 = vmatprep.subr.msk.mxu1 %vm555_vm0, %v4318_v3  ;;  %v13256_v32 = vld [vmem:[#allocation3_spill] sm:$0xff] }
 0x259   : > { %9517 = vmatpush3.msk.msra.mxu1 %vm555_vm0, %v4318_v3  ;;  %v3953_v3 = vadd.f32 1e-08, %v3921_v6  ;;  %v13275_v6 = vld [vmem:[#allocation24_spill] sm:$0xff] }
 0x25a   : > { %9519 = vmatmul.mubr.msk.f32.vlgmr.msra.gmra.mrb[0].mxu1 %vm304_vm1, %v4287_v12  ;;  %9566 = vmatprep.subr.msk.mxu1 %vm555_vm0, %v4285_v17  ;;  %v3923_v12 = vadd.f32 %v3905_v21, %v13268_v11 }
 0x25b   : > { %9502 = vmatmul.mubr.msk.f32.gmra.mrb[22].mxu0 %vm304_vm1, %v11197_v25  ;;  %9567 = vmatpush3.msk.msra.mxu1 %vm555_vm0, %v4285_v17  ;;  %v3903_v25 = vld [vmem:[%s11911_s7] sm:$0xff]  ;;  %v3986_v17 = vsub.f32 0.0, %v3954_v55 }
 0x25c   : > { %9504 = vmatprep.mubr.msk.f32.mxu0 %vm304_vm1, %v13254_v1  ;;  %9616 = vmatprep.subr.msk.mxu1 %vm555_vm0, %v4999_v18  ;;  %v3911_v35 = vadd.f32 %v3903_v25, %v13256_v32  ;;  %v3915_v56 = vadd.f32 %v3903_v25, %v13260_v49  ;;  %v3917_v53 = vadd.f32 %v3903_v25, %v13262_v36  ;;  %v3956_v18 = vadd.f32 1e-08, %v3924_v28  ;;  %v11938_v49 = vld [vmem:[%s11911_s7 + $0x28] sm:$0xff] }
 0x25d   : > { %v3955_v32 = vadd.f32 1e-08, %v3923_v12 }
 0x25e   : > { %v3947_v10 = vadd.f32 1e-08, %v3915_v56  ;;  %v3949_v40 = vadd.f32 1e-08, %v3917_v53 }
 0x25f   : > { %9505 = vmatmul.mubr.msk.f32.gmra.mrb[24].mxu0 %vm304_vm1, %v11219_v50  ;;  %v3943_v50 = vadd.f32 1e-08, %v3911_v35  ;;  %v4029_v35 = vmul.f32 1.442695, %v3986_v17 }
 0x260   : > { %9507 = vmatprep.mubr.msk.f32.mxu0 %vm304_vm1, %v11233_v19  ;;  %v3904_v19 = vld [vmem:[%s11911_s7 + $0x8] sm:$0xff]  ;;  %v3979_v60 = vsub.f32 0.0, %v3947_v10  ;;  %v3981_v0 = vsub.f32 0.0, %v3949_v40 }
 0x261   : > { %v3912_v24 = vadd.f32 %v3904_v19, %v13255_v23  ;;  %v3914_v41 = vadd.f32 %v3904_v19, %v13257_v38  ;;  %v3918_v14 = vadd.f32 %v3904_v19, %v13261_v33  ;;  %v3975_v4 = vsub.f32 0.0, %v3943_v50  ;;  %v13269_v38 = vld [vmem:[#allocation18_spill] sm:$0xff]  ;;  %v11941_v33 = vld [vmem:[%s11911_s7 + $0x20] sm:$0xff] }
 0x262   : > { %v4015_v47 = vmul.f32 1.442695, %v3979_v60  ;;  %v4019_v34 = vmul.f32 1.442695, %v3981_v0 }
 0x263   : > { %9508 = vmatmul.mubr.msk.f32.gmra.mrb[26].mxu0 %vm304_vm1, %v11241_v46  ;;  %v3944_v37 = vadd.f32 1e-08, %v3912_v24  ;;  %v3913_v46 = vadd.f32 %v3903_v25, %v13258_v42  ;;  %v3946_v8 = vadd.f32 1e-08, %v3914_v41  ;;  %v4007_v39 = vmul.f32 1.442695, %v3975_v4 }
 0x264   : > { %9510 = vmatprep.mubr.msk.f32.mxu0 %vm304_vm1, %v11499_v54  ;;  %v3985_v25 = vsub.f32 0.0, %v3953_v3  ;;  %v3926_v41 = vadd.f32 %v3906_v57, %v13269_v38  ;;  %v13271_v4 = vld [vmem:[#allocation20_spill] sm:$0xff]  ;;  %v11958_v38 = vld [vmem:[%s12968_s3] ss:$0 sm:$0xff] }
 0x265   : > { %v3976_v7 = vsub.f32 0.0, %v3944_v37  ;;  %v3945_v54 = vadd.f32 1e-08, %v3913_v46  ;;  %v3978_v15 = vsub.f32 0.0, %v3946_v8  ;;  %v3988_v37 = vsub.f32 0.0, %v3956_v18  ;;  %v13276_v18 = vld [vmem:[#allocation23_spill] sm:$0xff] }
 0x266   : > { %v3958_v36 = vadd.f32 1e-08, %v3926_v41 }
 0x267   : > { %9511 = vmatmul.mubr.msk.f32.gmra.mrb[28].mxu0 %vm304_vm1, %v11507_v59  ;;  %v3916_v59 = vadd.f32 %v3904_v19, %v13259_v58  ;;  %v4009_v16 = vmul.f32 1.442695, %v3976_v7  ;;  %v3977_v27 = vsub.f32 0.0, %v3945_v54  ;;  %v4013_v48 = vmul.f32 1.442695, %v3978_v15  ;;  %v13270_v7 = vld [vmem:[#allocation17_spill] sm:$0xff] }
 0x268   : > { %9513 = vmatprep.mubr.msk.f32.mxu0 %vm304_vm1, %v11756_v31  ;;  %v3950_v31 = vadd.f32 1e-08, %v3918_v14  ;;  %v4025_v19 = vmul.f32 1.442695, %v3984_v29  ;;  %v4027_v58 = vmul.f32 1.442695, %v3985_v25  ;;  %v3925_v8 = vadd.f32 %v3905_v21, %v13270_v7 }
 0x269   : > { %v3948_v22 = vadd.f32 1e-08, %v3916_v59  ;;  %10487 = vpow2.f32 %v4009_v16  ;;  %v4011_v62 = vmul.f32 1.442695, %v3977_v27  ;;  %v3987_v59 = vsub.f32 0.0, %v3955_v32 }
 0x26a   : > { %v3982_v63 = vsub.f32 0.0, %v3950_v31  ;;  %10489 = vpow2.f32 %v4007_v39  ;;  %v4033_v54 = vmul.f32 1.442695, %v3988_v37  ;;  %v3957_v10 = vadd.f32 1e-08, %v3925_v8 }
 0x26b   : > { %9514 = vmatmul.mubr.msk.f32.gmra.mrb[30].mxu0 %vm304_vm1, %v11761_v44  ;;  %v3919_v44 = vadd.f32 %v3905_v21, %v13264_v43  ;;  %v3980_v26 = vsub.f32 0.0, %v3948_v22  ;;  %10491 = vpow2.f32 %v4013_v48  ;;  %v3928_v22 = vadd.f32 %v11938_v49, %v13271_v4  ;;  %v13272_v21 = vld [vmem:[#allocation19_spill] sm:$0xff]  ;;  %v13278_v4 = vld [vmem:[#allocation25_spill] sm:$0xff] }
 0x26c   : > { %10493 = vpow2.f32 %v4011_v62  ;;  %v4021_v30 = vmul.f32 1.442695, %v3982_v63  ;;  %v4031_v15 = vmul.f32 1.442695, %v3987_v59  ;;  %v3927_v9 = vadd.f32 %v11941_v33, %v13272_v21  ;;  %v13274_v63 = vld [vmem:[#allocation21_spill] sm:$0xff] }
 0x26d   : > { %v3951_v2 = vadd.f32 1e-08, %v3919_v44  ;;  %v4017_v52 = vmul.f32 1.442695, %v3980_v26  ;;  %v3990_v43 = vsub.f32 0.0, %v3958_v36  ;;  %v13273_v26 = vld [vmem:[#allocation22_spill] sm:$0xff]  ;;  %v3929_v0 = vadd.f32 %v11941_v33, %v13274_v63 }
 0x26e   : > { %v3960_v39 = vadd.f32 1e-08, %v3928_v22  ;;  %v3930_v5 = vadd.f32 %v11938_v49, %v13273_v26  ;;  %v3989_v60 = vsub.f32 0.0, %v3957_v10  ;;  %v3959_v61 = vadd.f32 1e-08, %v3927_v9  ;;  %v11971_v9 = vld [vmem:[%s11911_s7 + $0x38] sm:$0xff] }
 0x26f   : > { %v3983_v1 = vsub.f32 0.0, %v3951_v2  ;;  %10495 = vpow2.f32 %v4017_v52  ;;  %v4037_v51 = vmul.f32 1.442695, %v3990_v43  ;;  %v3932_v52 = vadd.f32 %v11938_v49, %v13275_v6 }
 0x270   : > { %10497 = vpow2.f32 %v4015_v47  ;;  %v3992_v28 = vsub.f32 0.0, %v3960_v39  ;;  %v3962_v47 = vadd.f32 1e-08, %v3930_v5  ;;  %v4035_v29 = vmul.f32 1.442695, %v3989_v60  ;;  %v11978_v39 = vld [vmem:[%s11911_s7 + $0x30] sm:$0xff] }
 0x271   : > { %10499 = vpow2.f32 %v4021_v30  ;;  %v4023_v24 = vmul.f32 1.442695, %v3983_v1  ;;  %v3991_v30 = vsub.f32 0.0, %v3959_v61  ;;  %v3961_v3 = vadd.f32 1e-08, %v3929_v0  ;;  %v13279_v61 = vld [vmem:[#allocation31_spill] sm:$0xff] }
 0x272   : > { %10501 = vpow2.f32 %v4019_v34  ;;  %v3964_v17 = vadd.f32 1e-08, %v3932_v52  ;;  %v3994_v25 = vsub.f32 0.0, %v3962_v47  ;;  %v3933_v22 = vadd.f32 %v11941_v33, %v13278_v4 }
 0x273   : > { %v10488_v23 = vpop.eup %10487  ;;  %10503 = vpow2.f32 %v4025_v19  ;;  %v3931_v19 = vadd.f32 %v11941_v33, %v13276_v18 }
 0x274   : > { %v10490_v42 = vpop.eup %10489  ;;  %v4072_v46 = vadd.f32 1.0, %v10488_v23  ;;  %10505 = vpow2.f32 %v4023_v24  ;;  %v4041_v24 = vmul.f32 1.442695, %v3992_v28  ;;  %v3965_v60 = vadd.f32 1e-08, %v3933_v22 }
 0x275   : > { %v10492_v50 = vpop.eup %10491  ;;  %10507 = vpow2.f32 %v4029_v35  ;;  %v4071_v14 = vadd.f32 1.0, %v10490_v42  ;;  %v4039_v35 = vmul.f32 1.442695, %v3991_v30  ;;  %v3993_v42 = vsub.f32 0.0, %v3961_v3 }
 0x276   : > { %v10494_v56 = vpop.eup %10493  ;;  %10509 = vrcp.f32 %v4072_v46  ;;  %v4074_v57 = vadd.f32 1.0, %v10492_v50  ;;  %v3963_v59 = vadd.f32 1e-08, %v3931_v19 }
 0x277   : > { %10511 = vpow2.f32 %v4027_v58  ;;  %v4073_v27 = vadd.f32 1.0, %v10494_v56  ;;  %v3996_v58 = vsub.f32 0.0, %v3964_v17  ;;  %v4045_v56 = vmul.f32 1.442695, %v3994_v25  ;;  %v13281_v25 = vld [vmem:[#allocation33_spill] sm:$0xff] }
 0x278   : > { %10513 = vpow2.f32 %v4033_v54  ;;  %v13277_v54 = vld [vmem:[#allocation26_spill] sm:$0xff]  ;;  %v4043_v21 = vmul.f32 1.442695, %v3993_v42  ;;  %v3997_v17 = vsub.f32 0.0, %v3965_v60 }
 0x279   : > { %v10496_v53 = vpop.eup %10495  ;;  %10515 = vrcp.f32 %v4071_v14  ;;  %v3934_v14 = vadd.f32 %v11938_v49, %v13277_v54 }
 0x27a   : > { %v10498_v16 = vpop.eup %10497  ;;  %v4076_v40 = vadd.f32 1.0, %v10496_v53  ;;  %10517 = vrcp.f32 %v4074_v57 }
 0x27b   : > { %v10500_v13 = vpop.eup %10499  ;;  %v4075_v44 = vadd.f32 1.0, %v10498_v16  ;;  %10519 = vpow2.f32 %v4031_v15 }
 0x27c   : > { %v10502_v31 = vpop.eup %10501  ;;  %v4078_v48 = vadd.f32 1.0, %v10500_v13  ;;  %10521 = vrcp.f32 %v4073_v27  ;;  %v4049_v27 = vmul.f32 1.442695, %v3996_v58 }
 0x27d   : > { %v10504_v45 = vpop.eup %10503  ;;  %v4077_v62 = vadd.f32 1.0, %v10502_v31  ;;  %10523 = vrcp.f32 %v4076_v40  ;;  %v3995_v31 = vsub.f32 0.0, %v3963_v59 }
 0x27e   : > { %v10506_v2 = vpop.eup %10505  ;;  %10525 = vrcp.f32 %v4075_v44  ;;  %v4080_v20 = vadd.f32 1.0, %v10504_v45  ;;  %v3966_v44 = vadd.f32 1e-08, %v3934_v14 }
 0x27f   : > { %v10508_v55 = vpop.eup %10507  ;;  %10527 = vrcp.f32 %v4078_v48  ;;  %v4079_v1 = vadd.f32 1.0, %v10506_v2  ;;  %v4047_v52 = vmul.f32 1.442695, %v3995_v31 }
 0x280   : > { %v10510_v34 = vpop.eup %10509  ;;  %10529 = vrcp.f32 %v4077_v62  ;;  %v4082_v12 = vadd.f32 1.0, %v10508_v55  ;;  %v3936_v62 = vadd.f32 %v11971_v9, %v13279_v61  ;;  %v13280_v55 = vld [vmem:[#allocation30_spill] sm:$0xff] }
 0x281   : > { %v10512_v11 = vpop.eup %10511  ;;  %10531 = vpow2.f32 %v4037_v51 }
 0x282   : > { %v10514_v23 = vpop.eup %10513  ;;  %10533 = vrcp.f32 %v4080_v20  ;;  %v4081_v41 = vadd.f32 1.0, %v10512_v11  ;;  %v3935_v20 = vadd.f32 %v11978_v39, %v13280_v55  ;;  %v3968_v18 = vadd.f32 1e-08, %v3936_v62 }
 0x283   : > { %v10516_v32 = vpop.eup %10515  ;;  %10535 = vpow2.f32 %v4035_v29  ;;  %v4084_v50 = vadd.f32 1.0, %v10514_v23 }
 0x284   : > { %v10518_v37 = vpop.eup %10517  ;;  %10537 = vrcp.f32 %v4079_v1  ;;  %v4000_v4 = vsub.f32 0.0, %v3968_v18 }
 0x285   : > { %v10520_v46 = vpop.eup %10519  ;;  %10539 = vrcp.f32 %v4082_v12 }
 0x286   : > { %v10522_v7 = vpop.eup %10521  ;;  %10541 = vpow2.f32 %v4041_v24  ;;  %v4083_v10 = vadd.f32 1.0, %v10520_v46 }
 0x287   : > { %v11962_v36 = vpop.eup %10523  ;;  %10543 = vpow2.f32 %v4039_v35  ;;  %v13282_v35 = vld [vmem:[#allocation32_spill] sm:$0xff] }
 0x288   : > { %v11967_v16 = vpop.eup %10525  ;;  %10545 = vrcp.f32 %v4081_v41  ;;  %v3937_v41 = vadd.f32 %v11978_v39, %v13282_v35 }
 0x289   : > { %v11973_v49 = vpop.eup %10527  ;;  %10547 = vrcp.f32 %v4084_v50  ;;  %v3967_v50 = vadd.f32 1e-08, %v3935_v20 }
 0x28a   : > { %v11975_v40 = vpop.eup %10529  ;;  %10549 = vpow2.f32 %v4045_v56 }
 0x28b   : > { %v10532_v26 = vpop.eup %10531  ;;  %10551 = vrcp.f32 %v4083_v10 }
 0x28c   : > { %v11983_v63 = vpop.eup %10533  ;;  %10553 = vpow2.f32 %v4043_v21  ;;  %v4086_v30 = vadd.f32 1.0, %v10532_v26 }
 0x28d   : > { %v10536_v51 = vpop.eup %10535  ;;  %10555 = vpow2.f32 %v4049_v27 }
 0x28e   : > { %v11989_v28 = vpop.eup %10537  ;;  %10557 = vpow2.f32 %v4047_v52 }
 0x28f   : > { %v11992_v1 = vpop.eup %10539  ;;  %10559 = vrcp.f32 %v4086_v30 }
 0x290   : > { %v10542_v19 = vpop.eup %10541 }
 0x291   : > { %v10544_v42 = vpop.eup %10543 }
 0x292   : > { %v12001_v58 = vpop.eup %10545 }
 0x293   : > { %v12004_v56 = vpop.eup %10547 }
 0x294   : > { %v10550_v22 = vpop.eup %10549 }
 0x302   : > { %v9470_v8 = vpop.f32.mrb[0].mxu0 }
 0x303   : > { %v3840_v53 = vadd.f32 %v9470_v8, %v11958_v38  ;;  %v3641_v57 = vpop.f32.mrb[1].mxu0 }
 0x304   : > { %v3839_v15 = vadd.f32 %v11958_v38, %v3641_v57  ;;  %v4051_v57 = vmul.f32 1.442695, %v3997_v17 }
 0x305   : > { %v3872_v13 = vmax.f32 %v3840_v53, 0.0 }
 0x306   : > { %v3871_v43 = vmax.f32 %v3839_v15, 0.0  ;;  %v9473_v33 = vpop.f32.mrb[2].mxu0 }
 0x307   : > { %v4136_v5 = vmul.f32 %v10510_v34, %v3872_v13  ;;  %v3842_v45 = vadd.f32 %v9473_v33, %v11958_v38  ;;  %v3651_v48 = vpop.f32.mrb[3].mxu0  ;;  %v3998_v34 = vsub.f32 0.0, %v3966_v44  ;;  %v3969_v13 = vadd.f32 1e-08, %v3937_v41  ;;  %v13283_v33 = vld [vmem:[#allocation35_spill] sm:$0xff]  ;;  %v12013_v44 = vpop.eup %10551 }
 0x308   : > { %v4135_v0 = vmul.f32 %v10516_v32, %v3871_v43  ;;  %v3841_v2 = vadd.f32 %v11958_v38, %v3651_v48  ;;  %v3938_v32 = vadd.f32 %v11971_v9, %v13281_v25  ;;  %v3999_v43 = vsub.f32 0.0, %v3967_v50  ;;  %v13284_v48 = vld [vmem:[#allocation34_spill] sm:$0xff]  ;;  %v10554_v61 = vpop.eup %10553 }
 0x309   : > { %4222 = vst.msk [vmem:[#allocation2 + $0x21] sm:$0xff] %vm304_vm1, %v4136_v5  ;;  %v3874_v6 = vmax.f32 %v3842_v45, 0.0  ;;  %v4053_v8 = vmul.f32 1.442695, %v3998_v34  ;;  %v4088_v45 = vadd.f32 1.0, %v10542_v19  ;;  %v3939_v60 = vadd.f32 %v11978_v39, %v13284_v48  ;;  %v10556_v52 = vpop.eup %10555 }
 0x30a   : > { %4221 = vst.msk [vmem:[#allocation2 + $0x19] sm:$0xff] %vm304_vm1, %v4135_v0  ;;  %v3873_v47 = vmax.f32 %v3841_v2, 0.0  ;;  %v9476_v29 = vpop.f32.mrb[4].mxu0  ;;  %v3970_v21 = vadd.f32 1e-08, %v3938_v32  ;;  %v10558_v25 = vpop.eup %10557 }
 0x30b   : > { %v4138_v3 = vmul.f32 %v10518_v37, %v3874_v6  ;;  %v3844_v11 = vadd.f32 %v9476_v29, %v11958_v38  ;;  %v3661_v12 = vpop.f32.mrb[5].mxu0  ;;  %v4085_v37 = vadd.f32 1.0, %v10536_v51  ;;  %v4087_v51 = vadd.f32 1.0, %v10544_v42  ;;  %v12037_v42 = vpop.eup %10559 }
 0x30c   : > { %v4137_v23 = vmul.f32 %v10522_v7, %v3873_v47  ;;  %v3843_v24 = vadd.f32 %v11958_v38, %v3661_v12  ;;  %v4057_v6 = vmul.f32 1.442695, %v4000_v4  ;;  %v4002_v47 = vsub.f32 0.0, %v3970_v21 }
 0x30d   : > { %4224 = vst.msk [vmem:[#allocation2 + $0x39] sm:$0xff] %vm304_vm1, %v4138_v3  ;;  %v3876_v46 = vmax.f32 %v3844_v11, 0.0  ;;  %10561 = vrcp.f32 %v4085_v37  ;;  %v4001_v29 = vsub.f32 0.0, %v3969_v13  ;;  %v4055_v3 = vmul.f32 1.442695, %v3999_v43  ;;  %v13285_v11 = vld [vmem:[#allocation69_spill] sm:$0xff] }
 0x30e   : > { %4223 = vst.msk [vmem:[#allocation2 + $0x31] sm:$0xff] %vm304_vm1, %v4137_v23  ;;  %v3875_v59 = vmax.f32 %v3843_v24, 0.0  ;;  %v9479_v7 = vpop.f32.mrb[6].mxu0  ;;  %10563 = vpow2.f32 %v4053_v8  ;;  %v3942_v12 = vadd.f32 %v11971_v9, %v13285_v11  ;;  %v3971_v19 = vadd.f32 1e-08, %v3939_v60  ;;  %v13286_v23 = vld [vmem:[#allocation68_spill] sm:$0xff] }
 0x30f   : > { %v4140_v54 = vmul.f32 %v11962_v36, %v3876_v46  ;;  %v3846_v14 = vadd.f32 %v9479_v7, %v11958_v38  ;;  %v3671_v53 = vpop.f32.mrb[7].mxu0  ;;  %v3940_v36 = vadd.f32 %v11971_v9, %v13283_v33  ;;  %10565 = vpow2.f32 %v4051_v57 }
 0x310   : > { %v4139_v15 = vmul.f32 %v11967_v16, %v3875_v59  ;;  %v3845_v10 = vadd.f32 %v11958_v38, %v3671_v53  ;;  %v4289_v16 = vld [vmem:[#allocation2 + $0x21] sm:$0xff]  ;;  %v3941_v24 = vadd.f32 %v11978_v39, %v13286_v23  ;;  %10567 = vrcp.f32 %v4088_v45 }
 0x311   : > { %4226 = vst.msk [vmem:[#allocation2 + $0x51] sm:$0xff] %vm304_vm1, %v4140_v54  ;;  %v3878_v27 = vmax.f32 %v3846_v14, 0.0  ;;  %v4288_v31 = vld [vmem:[#allocation2 + $0x19] sm:$0xff]  ;;  %v4090_v9 = vadd.f32 1.0, %v10550_v22  ;;  %v4061_v50 = vmul.f32 1.442695, %v4002_v47  ;;  %10569 = vpow2.f32 %v4057_v6 }
 0x312   : > { %4225 = vst.msk [vmem:[#allocation2 + $0x49] sm:$0xff] %vm304_vm1, %v4139_v15  ;;  %v3877_v26 = vmax.f32 %v3845_v10, 0.0  ;;  %v9482_v5 = vpop.f32.mrb[8].mxu0  ;;  %9521 = vmatprep.mubr.msk.f32.mxu1 %vm304_vm1, %v4288_v31  ;;  %v4059_v59 = vmul.f32 1.442695, %v4001_v29  ;;  %10571 = vpow2.f32 %v4055_v3  ;;  %v4003_v53 = vsub.f32 0.0, %v3971_v19 }
 0x313   : > { %v4142_v62 = vmul.f32 %v11973_v49, %v3878_v27  ;;  %v3848_v0 = vadd.f32 %v9482_v5, %v11958_v38  ;;  %v3681_v2 = vpop.f32.mrb[9].mxu0  ;;  %9522 = vmatmul.mubr.msk.f32.gmra.mrb[2].mxu1 %vm304_vm1, %v4289_v16  ;;  %v3972_v49 = vadd.f32 1e-08, %v3940_v36  ;;  %v3974_v8 = vadd.f32 1e-08, %v3942_v12 }
 0x314   : > { %v4141_v55 = vmul.f32 %v11975_v40, %v3877_v26  ;;  %v3847_v20 = vadd.f32 %v11958_v38, %v3681_v2  ;;  %v12029_v40 = vld [vmem:[#allocation2 + $0x39] sm:$0xff]  ;;  %v3973_v57 = vadd.f32 1e-08, %v3941_v24  ;;  %10573 = vrcp.f32 %v4087_v51 }
 0x315   : > { %4228 = vst.msk [vmem:[#allocation2 + $0x69] sm:$0xff] %vm304_vm1, %v4142_v62  ;;  %v3880_v30 = vmax.f32 %v3848_v0, 0.0  ;;  %v4290_v34 = vld [vmem:[#allocation2 + $0x31] sm:$0xff]  ;;  %v4004_v7 = vsub.f32 0.0, %v3972_v49  ;;  %v4089_v21 = vadd.f32 1.0, %v10554_v61  ;;  %10575 = vrcp.f32 %v4090_v9 }
 0x316   : > { %4227 = vst.msk [vmem:[#allocation2 + $0x61] sm:$0xff] %vm304_vm1, %v4141_v55  ;;  %v3879_v17 = vmax.f32 %v3847_v20, 0.0  ;;  %v9485_v18 = vpop.f32.mrb[10].mxu0  ;;  %9524 = vmatprep.mubr.msk.f32.mxu1 %vm304_vm1, %v4290_v34  ;;  %v4092_v43 = vadd.f32 1.0, %v10556_v52  ;;  %10577 = vpow2.f32 %v4061_v50  ;;  %v4006_v26 = vsub.f32 0.0, %v3974_v8 }
 0x317   : > { %v4144_v32 = vmul.f32 %v11983_v63, %v3880_v30  ;;  %v3850_v35 = vadd.f32 %v9485_v18, %v11958_v38  ;;  %v3691_v41 = vpop.f32.mrb[11].mxu0  ;;  %9525 = vmatmul.mubr.msk.f32.gmra.mrb[4].mxu1 %vm304_vm1, %v12029_v40  ;;  %v10562_v4 = vpop.eup %10561  ;;  %10579 = vpow2.f32 %v4059_v59  ;;  %v4063_v45 = vmul.f32 1.442695, %v4003_v53 }
 0x318   : > { %v4143_v46 = vmul.f32 %v11989_v28, %v3879_v17  ;;  %v3849_v37 = vadd.f32 %v11958_v38, %v3691_v41  ;;  %v12047_v28 = vld [vmem:[#allocation2 + $0x51] sm:$0xff]  ;;  %v10564_v13 = vpop.eup %10563  ;;  %v4005_v48 = vsub.f32 0.0, %v3973_v57  ;;  %10581 = vrcp.f32 %v4089_v21 }
 0x319   : > { %4230 = vst.msk [vmem:[#allocation2 + $0x81] sm:$0xff] %vm304_vm1, %v4144_v32  ;;  %v3882_v39 = vmax.f32 %v3850_v35, 0.0  ;;  %v12042_v63 = vld [vmem:[#allocation2 + $0x49] sm:$0xff]  ;;  %v4091_v0 = vadd.f32 1.0, %v10558_v25  ;;  %v10566_v2 = vpop.eup %10565  ;;  %10583 = vrcp.f32 %v4092_v43  ;;  %v4094_v52 = vadd.f32 1.0, %v10564_v13 }
 0x31a   : > { %4229 = vst.msk [vmem:[#allocation2 + $0x79] sm:$0xff] %vm304_vm1, %v4143_v46  ;;  %v3881_v54 = vmax.f32 %v3849_v37, 0.0  ;;  %v9488_v14 = vpop.f32.mrb[12].mxu0  ;;  %9527 = vmatprep.mubr.msk.f32.mxu1 %vm304_vm1, %v12042_v63  ;;  %v10568_v55 = vpop.eup %10567  ;;  %v4069_v47 = vmul.f32 1.442695, %v4006_v26  ;;  %v4093_v17 = vadd.f32 1.0, %v10566_v2 }
 0x31b   : > { %v4146_v22 = vmul.f32 %v11992_v1, %v3882_v39  ;;  %v3852_v15 = vadd.f32 %v9488_v14, %v11958_v38  ;;  %v3701_v10 = vpop.f32.mrb[13].mxu0  ;;  %9528 = vmatmul.mubr.msk.f32.gmra.mrb[6].mxu1 %vm304_vm1, %v12047_v28  ;;  %v4065_v1 = vmul.f32 1.442695, %v4004_v7  ;;  %v4067_v34 = vmul.f32 1.442695, %v4005_v48  ;;  %v10570_v3 = vpop.eup %10569 }
 0x31c   : > { %v4145_v27 = vmul.f32 %v12001_v58, %v3881_v54  ;;  %v3851_v31 = vadd.f32 %v11958_v38, %v3701_v10  ;;  %v12061_v58 = vld [vmem:[#allocation2 + $0x69] sm:$0xff]  ;;  %v10572_v18 = vpop.eup %10571  ;;  %v4096_v46 = vadd.f32 1.0, %v10570_v3 }
 0x31d   : > { %4232 = vst.msk [vmem:[#allocation2 + $0x99] sm:$0xff] %vm304_vm1, %v4146_v22  ;;  %v3884_v33 = vmax.f32 %v3852_v15, 0.0  ;;  %v12056_v36 = vld [vmem:[#allocation2 + $0x61] sm:$0xff]  ;;  %10585 = vpow2.f32 %v4065_v1  ;;  %v4095_v7 = vadd.f32 1.0, %v10572_v18 }
 0x31e   : > { %4231 = vst.msk [vmem:[#allocation2 + $0x91] sm:$0xff] %vm304_vm1, %v4145_v27  ;;  %v3883_v5 = vmax.f32 %v3851_v31, 0.0  ;;  %v9491_v16 = vpop.f32.mrb[14].mxu0  ;;  %9530 = vmatprep.mubr.msk.f32.mxu1 %vm304_vm1, %v12056_v36  ;;  %10587 = vpow2.f32 %v4063_v45  ;;  %v10574_v24 = vpop.eup %10573 }
 0x31f   : > { %v4148_v60 = vmul.f32 %v12004_v56, %v3884_v33  ;;  %v3854_v61 = vadd.f32 %v9491_v16, %v11958_v38  ;;  %v3711_v62 = vpop.f32.mrb[15].mxu0  ;;  %9531 = vmatmul.mubr.msk.f32.gmra.mrb[8].mxu1 %vm304_vm1, %v12061_v58  ;;  %10589 = vrcp.f32 %v4091_v0  ;;  %v10576_v35 = vpop.eup %10575 }
 0x320   : > { %v4147_v51 = vmul.f32 %v12013_v44, %v3883_v5  ;;  %v3853_v6 = vadd.f32 %v11958_v38, %v3711_v62  ;;  %v12075_v44 = vld [vmem:[#allocation2 + $0x81] sm:$0xff]  ;;  %10591 = vrcp.f32 %v4094_v52  ;;  %v10578_v37 = vpop.eup %10577 }
 0x321   : > { %4234 = vst.msk [vmem:[#allocation2 + $0xb1] sm:$0xff] %vm304_vm1, %v4148_v60  ;;  %v3886_v20 = vmax.f32 %v3854_v61, 0.0  ;;  %v12070_v56 = vld [vmem:[#allocation2 + $0x79] sm:$0xff]  ;;  %10593 = vpow2.f32 %v4069_v47  ;;  %v10580_v8 = vpop.eup %10579  ;;  %v4098_v13 = vadd.f32 1.0, %v10578_v37 }
 0x322   : > { %4233 = vst.msk [vmem:[#allocation2 + $0xa9] sm:$0xff] %vm304_vm1, %v4147_v51  ;;  %v3885_v29 = vmax.f32 %v3853_v6, 0.0  ;;  %v9494_v30 = vpop.f32.mrb[16].mxu0  ;;  %9533 = vmatprep.mubr.msk.f32.mxu1 %vm304_vm1, %v12070_v56  ;;  %10595 = vpow2.f32 %v4067_v34  ;;  %v10582_v53 = vpop.eup %10581  ;;  %v4097_v1 = vadd.f32 1.0, %v10580_v8 }
 0x323   : > { %v4150_v49 = vmul.f32 %v12037_v42, %v3886_v20  ;;  %v3856_v11 = vadd.f32 %v9494_v30, %v11958_v38  ;;  %v3721_v12 = vpop.f32.mrb[17].mxu0  ;;  %9534 = vmatmul.mubr.msk.f32.gmra.mrb[10].mxu1 %vm304_vm1, %v12075_v44  ;;  %10597 = vrcp.f32 %v4093_v17  ;;  %v10584_v22 = vpop.eup %10583 }
 0x324   : > { %v4149_v19 = vmul.f32 %v10562_v4, %v3885_v29  ;;  %v3855_v23 = vadd.f32 %v11958_v38, %v3721_v12  ;;  %v12088_v42 = vld [vmem:[#allocation2 + $0x99] sm:$0xff]  ;;  %10599 = vrcp.f32 %v4096_v46 }
 0x325   : > { %4236 = vst.msk [vmem:[#allocation2 + $0xc9] sm:$0xff] %vm304_vm1, %v4150_v49  ;;  %v3888_v25 = vmax.f32 %v3856_v11, 0.0  ;;  %v12083_v32 = vld [vmem:[#allocation2 + $0x91] sm:$0xff]  ;;  %10601 = vrcp.f32 %v4095_v7 }
 0x326   : > { %4235 = vst.msk [vmem:[#allocation2 + $0xc1] sm:$0xff] %vm304_vm1, %v4149_v19  ;;  %v3887_v41 = vmax.f32 %v3855_v23, 0.0  ;;  %v9497_v9 = vpop.f32.mrb[18].mxu0  ;;  %9536 = vmatprep.mubr.msk.f32.mxu1 %vm304_vm1, %v12083_v32  ;;  %10603 = vrcp.f32 %v4098_v13 }
 0x327   : > { %v4152_v50 = vmul.f32 %v10568_v55, %v3888_v25  ;;  %v3858_v59 = vadd.f32 %v9497_v9, %v11958_v38  ;;  %v3731_v39 = vpop.f32.mrb[19].mxu0  ;;  %9537 = vmatmul.mubr.msk.f32.gmra.mrb[12].mxu1 %vm304_vm1, %v12088_v42  ;;  %v10586_v27 = vpop.eup %10585  ;;  %10605 = vrcp.f32 %v4097_v1 }
 0x328   : > { %v4151_v54 = vmul.f32 %v10574_v24, %v3887_v41  ;;  %v3857_v14 = vadd.f32 %v11958_v38, %v3731_v39  ;;  %v12100_v21 = vld [vmem:[#allocation2 + $0xb1] sm:$0xff]  ;;  %v10588_v26 = vpop.eup %10587  ;;  %v4100_v51 = vadd.f32 1.0, %v10586_v27 }
 0x329   : > { %4238 = vst.msk [vmem:[#allocation2 + $0xe1] sm:$0xff] %vm304_vm1, %v4152_v50  ;;  %v3890_v57 = vmax.f32 %v3858_v59, 0.0  ;;  %v12095_v4 = vld [vmem:[#allocation2 + $0xa9] sm:$0xff]  ;;  %v10590_v45 = vpop.eup %10589  ;;  %v4099_v47 = vadd.f32 1.0, %v10588_v26 }
 0x32a   : > { %4237 = vst.msk [vmem:[#allocation2 + $0xd9] sm:$0xff] %vm304_vm1, %v4151_v54  ;;  %v3889_v15 = vmax.f32 %v3857_v14, 0.0  ;;  %v9500_v10 = vpop.f32.mrb[20].mxu0  ;;  %9539 = vmatprep.mubr.msk.f32.mxu1 %vm304_vm1, %v12095_v4  ;;  %v10592_v61 = vpop.eup %10591  ;;  %10607 = vrcp.f32 %v4100_v51 }
 0x32b   : > { %v4154_v31 = vmul.f32 %v10576_v35, %v3890_v57  ;;  %v3860_v43 = vadd.f32 %v9500_v10, %v11958_v38  ;;  %v3741_v33 = vpop.f32.mrb[21].mxu0  ;;  %9540 = vmatmul.mubr.msk.f32.gmra.mrb[14].mxu1 %vm304_vm1, %v12100_v21  ;;  %v10594_v6 = vpop.eup %10593  ;;  %10609 = vrcp.f32 %v4099_v47 }
 0x32c   : > { %v4153_v5 = vmul.f32 %v10582_v53, %v3889_v15  ;;  %v3859_v16 = vadd.f32 %v11958_v38, %v3741_v33  ;;  %v12112_v2 = vld [vmem:[#allocation2 + $0xc9] sm:$0xff]  ;;  %v10596_v29 = vpop.eup %10595  ;;  %v4102_v19 = vadd.f32 1.0, %v10594_v6 }
 0x32d   : > { %4240 = vst.msk [vmem:[#allocation2 + $0xf9] sm:$0xff] %vm304_vm1, %v4154_v31  ;;  %v3892_v48 = vmax.f32 %v3860_v43, 0.0  ;;  %v12107_v60 = vld [vmem:[#allocation2 + $0xc1] sm:$0xff]  ;;  %v10598_v3 = vpop.eup %10597  ;;  %v4101_v35 = vadd.f32 1.0, %v10596_v29 }
 0x32e   : > { %4239 = vst.msk [vmem:[#allocation2 + $0xf1] sm:$0xff] %vm304_vm1, %v4153_v5  ;;  %v3891_v62 = vmax.f32 %v3859_v16, 0.0  ;;  %v9503_v0 = vpop.f32.mrb[22].mxu0  ;;  %9542 = vmatprep.mubr.msk.f32.mxu1 %vm304_vm1, %v12107_v60  ;;  %v10600_v41 = vpop.eup %10599  ;;  %10611 = vrcp.f32 %v4102_v19 }
 0x32f   : > { %v4156_v52 = vmul.f32 %v10584_v22, %v3892_v48  ;;  %v3862_v55 = vadd.f32 %v9503_v0, %v11958_v38  ;;  %v3751_v20 = vpop.f32.mrb[23].mxu0  ;;  %9543 = vmatmul.mubr.msk.f32.gmra.mrb[16].mxu1 %vm304_vm1, %v12112_v2  ;;  %v10602_v37 = vpop.eup %10601  ;;  %10613 = vrcp.f32 %v4101_v35 }
 0x330   : > { %v4155_v30 = vmul.f32 %v10590_v45, %v3891_v62  ;;  %v3861_v34 = vadd.f32 %v11958_v38, %v3751_v20  ;;  %v12124_v18 = vld [vmem:[#allocation2 + $0xe1] sm:$0xff]  ;;  %v10604_v57 = vpop.eup %10603 }
 0x331   : > { %4242 = vst.msk [vmem:[#allocation2 + $0x111] sm:$0xff] %vm304_vm1, %v4156_v52  ;;  %v3894_v49 = vmax.f32 %v3862_v55, 0.0  ;;  %v12119_v11 = vld [vmem:[#allocation2 + $0xd9] sm:$0xff]  ;;  %v10606_v10 = vpop.eup %10605 }
 0x332   : > { %4241 = vst.msk [vmem:[#allocation2 + $0x109] sm:$0xff] %vm304_vm1, %v4155_v30  ;;  %v3893_v12 = vmax.f32 %v3861_v34, 0.0  ;;  %v9506_v17 = vpop.f32.mrb[24].mxu0  ;;  %9545 = vmatprep.mubr.msk.f32.mxu1 %vm304_vm1, %v12119_v11 }
 0x333   : > { %v4158_v23 = vmul.f32 %v10592_v61, %v3894_v49  ;;  %v3864_v24 = vadd.f32 %v9506_v17, %v11958_v38  ;;  %v3761_v25 = vpop.f32.mrb[25].mxu0  ;;  %9546 = vmatmul.mubr.msk.f32.gmra.mrb[18].mxu1 %vm304_vm1, %v12124_v18 }
 0x334   : > { %v4157_v9 = vmul.f32 %v10598_v3, %v3893_v12  ;;  %v3863_v46 = vadd.f32 %v11958_v38, %v3761_v25  ;;  %v12136_v8 = vld [vmem:[#allocation2 + $0xf9] sm:$0xff]  ;;  %v10608_v16 = vpop.eup %10607 }
 0x335   : > { %4244 = vst.msk [vmem:[#allocation2 + $0x129] sm:$0xff] %vm304_vm1, %v4158_v23  ;;  %v3896_v50 = vmax.f32 %v3864_v24, 0.0  ;;  %v12131_v59 = vld [vmem:[#allocation2 + $0xf1] sm:$0xff]  ;;  %v10610_v61 = vpop.eup %10609 }
 0x336   : > { %4243 = vst.msk [vmem:[#allocation2 + $0x121] sm:$0xff] %vm304_vm1, %v4157_v9  ;;  %v3895_v39 = vmax.f32 %v3863_v46, 0.0  ;;  %v9509_v7 = vpop.f32.mrb[26].mxu0  ;;  %9548 = vmatprep.mubr.msk.f32.mxu1 %vm304_vm1, %v12131_v59  ;;  %v4254_v46 = vld [vmem:[#allocation2 + $0x8] sm:$0xff] }
 0x337   : > { %v4160_v54 = vmul.f32 %v10600_v41, %v3896_v50  ;;  %v3866_v14 = vadd.f32 %v9509_v7, %v11958_v38  ;;  %v3771_v53 = vpop.f32.mrb[27].mxu0  ;;  %9549 = vmatmul.mubr.msk.f32.gmra.mrb[20].mxu1 %vm304_vm1, %v12136_v8  ;;  %v4253_v41 = vld [vmem:[#allocation2] sm:$0xff]  ;;  %v12201_v50 = vld [vmem:[#allocation2 + $0x18] sm:$0xff] }
 0x338   : > { %v4159_v22 = vmul.f32 %v10602_v37, %v3895_v39  ;;  %v3865_v15 = vadd.f32 %v11958_v38, %v3771_v53  ;;  %v12148_v33 = vld [vmem:[#allocation2 + $0x111] sm:$0xff]  ;;  %v10612_v29 = vpop.eup %10611  ;;  %v12198_v37 = vld [vmem:[%s12969_s4 + $0xc] sm:$0xf]  ;;  %v10615_v39 = vld [vmem:[%s12969_s4 + $0x8] sm:$0xf] }
 0x339   : > { %4246 = vst.msk [vmem:[#allocation2 + $0x141] sm:$0xff] %vm304_vm1, %v4160_v54  ;;  %v3898_v13 = vmax.f32 %v3866_v14, 0.0  ;;  %v12143_v27 = vld [vmem:[#allocation2 + $0x109] sm:$0xff]  ;;  %v10614_v3 = vpop.eup %10613  ;;  %v12211_v7 = vld [vmem:[#allocation2 + $0x20] sm:$0xff]  ;;  %v12219_v14 = vld [vmem:[#allocation2 + $0x38] sm:$0xff] }
 0x33a   : > { %4245 = vst.msk [vmem:[#allocation2 + $0x139] sm:$0xff] %vm304_vm1, %v4159_v22  ;;  %v3897_v31 = vmax.f32 %v3865_v15, 0.0  ;;  %v9512_v43 = vpop.f32.mrb[28].mxu0  ;;  %9551 = vmatprep.mubr.msk.f32.mxu1 %vm304_vm1, %v12143_v27  ;;  %v12215_v54 = vld [vmem:[#allocation2 + $0x30] sm:$0xff]  ;;  %v12223_v53 = vld [vmem:[#allocation2 + $0x48] sm:$0xff]  ;;  %v12231_v22 = vld [vmem:[#allocation2 + $0x60] sm:$0xff] }
 0x33b   : > { %v4162_v1 = vmul.f32 %v10604_v57, %v3898_v13  ;;  %v3868_v26 = vadd.f32 %v9512_v43, %v11958_v38  ;;  %v3781_v5 = vpop.f32.mrb[29].mxu0  ;;  %9552 = vmatmul.mubr.msk.f32.gmra.mrb[22].mxu1 %vm304_vm1, %v12148_v33  ;;  %v12227_v57 = vld [vmem:[#allocation2 + $0x50] sm:$0xff]  ;;  %v12235_v15 = vld [vmem:[#allocation2 + $0x68] sm:$0xff]  ;;  %v12243_v13 = vld [vmem:[#allocation2 + $0x80] sm:$0xff] }
 0x33c   : > { %v4161_v45 = vmul.f32 %v10606_v10, %v3897_v31  ;;  %v3867_v48 = vadd.f32 %v11958_v38, %v3781_v5  ;;  %v12160_v52 = vld [vmem:[#allocation2 + $0x129] sm:$0xff]  ;;  %v12239_v10 = vld [vmem:[#allocation2 + $0x78] sm:$0xff]  ;;  %v12263_v5 = vld [vmem:[#allocation2 + $0xc0] sm:$0xff] }
 0x33d   : > { %4248 = vst.msk [vmem:[#allocation2 + $0x159] sm:$0xff] %vm304_vm1, %v4162_v1  ;;  %v3900_v62 = vmax.f32 %v3868_v26, 0.0  ;;  %v12155_v0 = vld [vmem:[#allocation2 + $0x121] sm:$0xff]  ;;  %v12247_v31 = vld [vmem:[#allocation2 + $0x90] sm:$0xff]  ;;  %v12251_v43 = vld [vmem:[#allocation2 + $0x98] sm:$0xff] }
 0x33e   : > { %4247 = vst.msk [vmem:[#allocation2 + $0x151] sm:$0xff] %vm304_vm1, %v4161_v45  ;;  %v3899_v51 = vmax.f32 %v3867_v48, 0.0  ;;  %v9515_v6 = vpop.f32.mrb[30].mxu0  ;;  %9554 = vmatprep.mubr.msk.f32.mxu1 %vm304_vm1, %v12155_v0  ;;  %v12255_v1 = vld [vmem:[#allocation2 + $0xa8] sm:$0xff]  ;;  %v12259_v26 = vld [vmem:[#allocation2 + $0xb0] sm:$0xff]  ;;  %v12271_v45 = vld [vmem:[#allocation2 + $0xd8] sm:$0xff] }
 0x33f   : > { %v4164_v55 = vmul.f32 %v10608_v16, %v3900_v62  ;;  %v3870_v20 = vadd.f32 %v9515_v6, %v11958_v38  ;;  %v3791_v47 = vpop.f32.mrb[31].mxu0  ;;  %9555 = vmatmul.mubr.msk.f32.gmra.mrb[24].mxu1 %vm304_vm1, %v12160_v52  ;;  %v12267_v16 = vld [vmem:[#allocation2 + $0xc8] sm:$0xff]  ;;  %v12275_v48 = vld [vmem:[#allocation2 + $0xe0] sm:$0xff]  ;;  %v12283_v62 = vld [vmem:[#allocation2 + $0xf8] sm:$0xff] }
 0x340   : > { %v4163_v30 = vmul.f32 %v10610_v61, %v3899_v51  ;;  %v3869_v34 = vadd.f32 %v11958_v38, %v3791_v47  ;;  %v12172_v19 = vld [vmem:[#allocation2 + $0x141] sm:$0xff]  ;;  %v12279_v61 = vld [vmem:[#allocation2 + $0xf0] sm:$0xff] }
 0x341   : > { %4250 = vst.msk [vmem:[#allocation2 + $0x171] sm:$0xff] %vm304_vm1, %v4164_v55  ;;  %v3902_v49 = vmax.f32 %v3870_v20, 0.0  ;;  %v12167_v12 = vld [vmem:[#allocation2 + $0x139] sm:$0xff]  ;;  %v12287_v51 = vld [vmem:[#allocation2 + $0x108] sm:$0xff]  ;;  %v12291_v6 = vld [vmem:[#allocation2 + $0x110] sm:$0xff] }
 0x342   : > { %4249 = vst.msk [vmem:[#allocation2 + $0x169] sm:$0xff] %vm304_vm1, %v4163_v30  ;;  %v3901_v17 = vmax.f32 %v3869_v34, 0.0  ;;  %9557 = vmatprep.mubr.msk.f32.mxu1 %vm304_vm1, %v12167_v12  ;;  %v12295_v55 = vld [vmem:[#allocation2 + $0x120] sm:$0xff]  ;;  %v12299_v20 = vld [vmem:[#allocation2 + $0x128] sm:$0xff]  ;;  %v12303_v47 = vld [vmem:[#allocation2 + $0x138] sm:$0xff] }
 0x343   : > { %v4166_v23 = vmul.f32 %v10612_v29, %v3902_v49  ;;  %9558 = vmatmul.mubr.msk.f32.gmra.mrb[26].mxu1 %vm304_vm1, %v12172_v19  ;;  %v12307_v29 = vld [vmem:[#allocation2 + $0x140] sm:$0xff] }
 0x344   : > { %v4165_v24 = vmul.f32 %v10614_v3, %v3901_v17  ;;  %v12182_v25 = vld [vmem:[#allocation2 + $0x159] sm:$0xff]  ;;  %v4967_v49 = vld [vmem:[#allocation2 + $0x2] sm:$0xff] }
 0x345   : > { %4252 = vst.msk [vmem:[#allocation2 + $0x189] sm:$0xff] %vm304_vm1, %v4166_v23  ;;  %v12177_v38 = vld [vmem:[#allocation2 + $0x151] sm:$0xff] }
 0x346   : > { %4251 = vst.msk [vmem:[#allocation2 + $0x181] sm:$0xff] %vm304_vm1, %v4165_v24  ;;  %9560 = vmatprep.mubr.msk.f32.mxu1 %vm304_vm1, %v12177_v38  ;;  %v12311_v30 = vld [vmem:[#allocation2 + $0x150] sm:$0xff]  ;;  %v12315_v34 = vld [vmem:[#allocation2 + $0x158] sm:$0xff] }
 0x347   : > { %9561 = vmatmul.mubr.msk.f32.gmra.mrb[28].mxu1 %vm304_vm1, %v12182_v25  ;;  %13287 = vst [vmem:[#allocation27_spill] sm:$0xff] %v12315_v34  ;;  %v4968_v23 = vld [vmem:[#allocation2 + $0xa] sm:$0xff] }
 0x348   : > { %v12190_v9 = vld [vmem:[#allocation2 + $0x171] sm:$0xff] }
 0x349   : > { %v12186_v35 = vld [vmem:[#allocation2 + $0x169] sm:$0xff] }
 0x34a   : > { %9563 = vmatprep.mubr.msk.f32.mxu1 %vm304_vm1, %v12186_v35  ;;  %v12319_v3 = vld [vmem:[#allocation2 + $0x168] sm:$0xff]  ;;  %v12323_v17 = vld [vmem:[#allocation2 + $0x170] sm:$0xff] }
 0x34b   : > { %9564 = vmatmul.mubr.msk.f32.gmra.mrb[30].mxu1 %vm304_vm1, %v12190_v9  ;;  %13288 = vst [vmem:[#allocation28_spill] sm:$0xff] %v12319_v3  ;;  %13289 = vst [vmem:[#allocation29_spill] sm:$0xff] %v12323_v17  ;;  %v12331_v24 = vld [vmem:[%s12969_s4 + $0x10] sm:$0xf] }
 0x34c   : > { %9568 = vmatprep.mubr.msk.f32.mxu1 %vm304_vm1, %v4253_v41  ;;  %v12334_v41 = vld [vmem:[#allocation2 + $0x1a] sm:$0xff] }
 0x34f   : > { %9569 = vmatmul.mubr.msk.f32.vlgmr.msra.gmra.mrb[0].mxu1 %vm304_vm1, %v4254_v46  ;;  %v12342_v46 = vld [vmem:[#allocation2 + $0x22] sm:$0xff] }
 0x350   : > { %9617 = vmatpush3.msk.msra.mxu1 %vm555_vm0, %v10615_v39  ;;  %9571 = vmatprep.mubr.msk.f32.mxu1 %vm304_vm1, %v12201_v50  ;;  %13290 = vst [vmem:[#allocation36_spill] sm:$0xff] %v12342_v46  ;;  %v12346_v39 = vld [vmem:[#allocation2 + $0x32] sm:$0xff] }
 0x351   : > { %9666 = vmatprep.subr.msk.mxu1 %vm555_vm0, %v12198_v37  ;;  %13291 = vst [vmem:[#allocation37_spill] sm:$0xff] %v12346_v39 }
 0x353   : > { %9572 = vmatmul.mubr.msk.f32.gmra.mrb[2].mxu1 %vm304_vm1, %v12211_v7 }
 0x354   : > { %9574 = vmatprep.mubr.msk.f32.mxu1 %vm304_vm1, %v12215_v54 }
 0x357   : > { %9575 = vmatmul.mubr.msk.f32.gmra.mrb[4].mxu1 %vm304_vm1, %v12219_v14 }
 0x358   : > { %9577 = vmatprep.mubr.msk.f32.mxu1 %vm304_vm1, %v12223_v53 }
 0x35b   : > { %9578 = vmatmul.mubr.msk.f32.gmra.mrb[6].mxu1 %vm304_vm1, %v12227_v57 }
 0x35c   : > { %9580 = vmatprep.mubr.msk.f32.mxu1 %vm304_vm1, %v12231_v22 }
 0x35f   : > { %9581 = vmatmul.mubr.msk.f32.gmra.mrb[8].mxu1 %vm304_vm1, %v12235_v15 }
 0x360   : > { %9583 = vmatprep.mubr.msk.f32.mxu1 %vm304_vm1, %v12239_v10 }
 0x363   : > { %9584 = vmatmul.mubr.msk.f32.gmra.mrb[10].mxu1 %vm304_vm1, %v12243_v13 }
 0x364   : > { %9586 = vmatprep.mubr.msk.f32.mxu1 %vm304_vm1, %v12247_v31 }
 0x367   : > { %9587 = vmatmul.mubr.msk.f32.gmra.mrb[12].mxu1 %vm304_vm1, %v12251_v43 }
 0x368   : > { %9589 = vmatprep.mubr.msk.f32.mxu1 %vm304_vm1, %v12255_v1 }
 0x36b   : > { %9590 = vmatmul.mubr.msk.f32.gmra.mrb[14].mxu1 %vm304_vm1, %v12259_v26 }
 0x36c   : > { %9592 = vmatprep.mubr.msk.f32.mxu1 %vm304_vm1, %v12263_v5 }
 0x36f   : > { %9593 = vmatmul.mubr.msk.f32.gmra.mrb[16].mxu1 %vm304_vm1, %v12267_v16 }
 0x370   : > { %9595 = vmatprep.mubr.msk.f32.mxu1 %vm304_vm1, %v12271_v45 }
 0x373   : > { %9596 = vmatmul.mubr.msk.f32.gmra.mrb[18].mxu1 %vm304_vm1, %v12275_v48 }
 0x374   : > { %9598 = vmatprep.mubr.msk.f32.mxu1 %vm304_vm1, %v12279_v61 }
 0x377   : > { %9599 = vmatmul.mubr.msk.f32.gmra.mrb[20].mxu1 %vm304_vm1, %v12283_v62 }
 0x378   : > { %9601 = vmatprep.mubr.msk.f32.mxu1 %vm304_vm1, %v12287_v51 }
 0x37b   : > { %9602 = vmatmul.mubr.msk.f32.gmra.mrb[22].mxu1 %vm304_vm1, %v12291_v6 }
 0x37c   : > { %9604 = vmatprep.mubr.msk.f32.mxu1 %vm304_vm1, %v12295_v55 }
 0x37f   : > { %9605 = vmatmul.mubr.msk.f32.gmra.mrb[24].mxu1 %vm304_vm1, %v12299_v20 }
 0x380   : > { %9607 = vmatprep.mubr.msk.f32.mxu1 %vm304_vm1, %v12303_v47 }
 0x383   : > { %9608 = vmatmul.mubr.msk.f32.gmra.mrb[26].mxu1 %vm304_vm1, %v12307_v29 }
 0x384   : > { %9610 = vmatprep.mubr.msk.f32.mxu1 %vm304_vm1, %v12311_v30 }
 0x387   : > { %9611 = vmatmul.mubr.msk.f32.gmra.mrb[28].mxu1 %vm304_vm1, %v12315_v34 }
 0x388   : > { %9613 = vmatprep.mubr.msk.f32.mxu1 %vm304_vm1, %v12319_v3 }
 0x38b   : > { %9614 = vmatmul.mubr.msk.f32.gmra.mrb[30].mxu1 %vm304_vm1, %v12323_v17 }
 0x38c   : > { %9618 = vmatprep.mubr.msk.f32.mxu1 %vm304_vm1, %v4967_v49  ;;  %v12350_v49 = vld [vmem:[#allocation2 + $0x3a] sm:$0xff] }
 0x38d   : > { %13292 = vst [vmem:[#allocation53_spill] sm:$0xff] %v12350_v49 }
 0x38f   : > { %9619 = vmatmul.mubr.msk.f32.vlgmr.msra.gmra.mrb[0].mxu1 %vm304_vm1, %v4968_v23  ;;  %v12358_v23 = vld [vmem:[#allocation2 + $0x52] sm:$0xff] }
 0x390   : > { %9667 = vmatpush3.msk.msra.mxu1 %vm555_vm0, %v12198_v37  ;;  %9621 = vmatprep.mubr.msk.f32.mxu1 %vm304_vm1, %v12334_v41  ;;  %v12354_v37 = vld [vmem:[#allocation2 + $0x4a] sm:$0xff]  ;;  %13294 = vst [vmem:[#allocation57_spill] sm:$0xff] %v12358_v23 }
 0x391   : > { %9716 = vmatprep.subr.msk.mxu1 %vm555_vm0, %v12331_v24  ;;  %13293 = vst [vmem:[#allocation54_spill] sm:$0xff] %v12354_v37 }
 0x393   : > { %9622 = vmatmul.mubr.msk.f32.gmra.mrb[2].mxu1 %vm304_vm1, %v12342_v46  ;;  %v12362_v46 = vld [vmem:[#allocation2 + $0x62] sm:$0xff] }
 0x394   : > { %9624 = vmatprep.mubr.msk.f32.mxu1 %vm304_vm1, %v12346_v39  ;;  %13295 = vst [vmem:[#allocation62_spill] sm:$0xff] %v12362_v46  ;;  %v12366_v39 = vld [vmem:[#allocation2 + $0x6a] sm:$0xff] }
 0x395   : > { %13296 = vst [vmem:[#allocation44_spill] sm:$0xff] %v12366_v39 }
 0x397   : > { %9625 = vmatmul.mubr.msk.f32.gmra.mrb[4].mxu1 %vm304_vm1, %v12350_v49  ;;  %v12370_v49 = vld [vmem:[#allocation2 + $0x7a] sm:$0xff] }
 0x398   : > { %9627 = vmatprep.mubr.msk.f32.mxu1 %vm304_vm1, %v12354_v37  ;;  %13297 = vst [vmem:[#allocation70_spill] sm:$0xff] %v12370_v49  ;;  %v12374_v37 = vld [vmem:[#allocation2 + $0x82] sm:$0xff] }
 0x399   : > { %13298 = vst [vmem:[#allocation56_spill] sm:$0xff] %v12374_v37 }
 0x39b   : > { %9628 = vmatmul.mubr.msk.f32.gmra.mrb[6].mxu1 %vm304_vm1, %v12358_v23  ;;  %v12378_v23 = vld [vmem:[#allocation2 + $0x92] sm:$0xff] }
 0x39c   : > { %9630 = vmatprep.mubr.msk.f32.mxu1 %vm304_vm1, %v12362_v46  ;;  %13299 = vst [vmem:[#allocation58_spill] sm:$0xff] %v12378_v23  ;;  %v12382_v46 = vld [vmem:[#allocation2 + $0x9a] sm:$0xff] }
 0x39d   : > { %13300 = vst [vmem:[#allocation60_spill] sm:$0xff] %v12382_v46 }
 0x39f   : > { %9631 = vmatmul.mubr.msk.f32.gmra.mrb[8].mxu1 %vm304_vm1, %v12366_v39  ;;  %v12386_v39 = vld [vmem:[#allocation2 + $0xaa] sm:$0xff] }
 0x3a0   : > { %9633 = vmatprep.mubr.msk.f32.mxu1 %vm304_vm1, %v12370_v49  ;;  %13301 = vst [vmem:[#allocation63_spill] sm:$0xff] %v12386_v39  ;;  %v12390_v49 = vld [vmem:[#allocation2 + $0xb2] sm:$0xff] }
 0x3a1   : > { %13302 = vst [vmem:[#allocation65_spill] sm:$0xff] %v12390_v49 }
 0x3a3   : > { %9634 = vmatmul.mubr.msk.f32.gmra.mrb[10].mxu1 %vm304_vm1, %v12374_v37  ;;  %v12394_v37 = vld [vmem:[#allocation2 + $0xc2] sm:$0xff] }
 0x3a4   : > { %9636 = vmatprep.mubr.msk.f32.mxu1 %vm304_vm1, %v12378_v23  ;;  %13303 = vst [vmem:[#allocation67_spill] sm:$0xff] %v12394_v37  ;;  %v12398_v23 = vld [vmem:[#allocation2 + $0xca] sm:$0xff] }
 0x3a5   : > { %13304 = vst [vmem:[#allocation72_spill] sm:$0xff] %v12398_v23 }
 0x3a7   : > { %9637 = vmatmul.mubr.msk.f32.gmra.mrb[12].mxu1 %vm304_vm1, %v12382_v46  ;;  %v12402_v46 = vld [vmem:[#allocation2 + $0xda] sm:$0xff] }
 0x3a8   : > { %9639 = vmatprep.mubr.msk.f32.mxu1 %vm304_vm1, %v12386_v39  ;;  %13305 = vst [vmem:[#allocation74_spill] sm:$0xff] %v12402_v46  ;;  %v12406_v39 = vld [vmem:[#allocation2 + $0xe2] sm:$0xff] }
 0x3a9   : > { %13306 = vst [vmem:[#allocation38_spill] sm:$0xff] %v12406_v39 }
 0x3ab   : > { %9640 = vmatmul.mubr.msk.f32.gmra.mrb[14].mxu1 %vm304_vm1, %v12390_v49  ;;  %v12410_v49 = vld [vmem:[#allocation2 + $0xf2] sm:$0xff] }
 0x3ac   : > { %9642 = vmatprep.mubr.msk.f32.mxu1 %vm304_vm1, %v12394_v37  ;;  %13307 = vst [vmem:[#allocation39_spill] sm:$0xff] %v12410_v49  ;;  %v12414_v37 = vld [vmem:[#allocation2 + $0xfa] sm:$0xff] }
 0x3ad   : > { %13308 = vst [vmem:[#allocation40_spill] sm:$0xff] %v12414_v37 }
 0x3af   : > { %9643 = vmatmul.mubr.msk.f32.gmra.mrb[16].mxu1 %vm304_vm1, %v12398_v23  ;;  %v12418_v23 = vld [vmem:[#allocation2 + $0x10a] sm:$0xff] }
 0x3b0   : > { %9645 = vmatprep.mubr.msk.f32.mxu1 %vm304_vm1, %v12402_v46  ;;  %13309 = vst [vmem:[#allocation41_spill] sm:$0xff] %v12418_v23  ;;  %v12422_v46 = vld [vmem:[#allocation2 + $0x112] sm:$0xff] }
 0x3b1   : > { %13310 = vst [vmem:[#allocation42_spill] sm:$0xff] %v12422_v46 }
 0x3b3   : > { %9646 = vmatmul.mubr.msk.f32.gmra.mrb[18].mxu1 %vm304_vm1, %v12406_v39  ;;  %v12426_v39 = vld [vmem:[#allocation2 + $0x122] sm:$0xff] }
 0x3b4   : > { %9648 = vmatprep.mubr.msk.f32.mxu1 %vm304_vm1, %v12410_v49  ;;  %13311 = vst [vmem:[#allocation43_spill] sm:$0xff] %v12426_v39  ;;  %v12430_v49 = vld [vmem:[#allocation2 + $0x12a] sm:$0xff] }
 0x3b5   : > { %13312 = vst [vmem:[#allocation45_spill] sm:$0xff] %v12430_v49 }
 0x3b7   : > { %9649 = vmatmul.mubr.msk.f32.gmra.mrb[20].mxu1 %vm304_vm1, %v12414_v37  ;;  %v12434_v37 = vld [vmem:[#allocation2 + $0x13a] sm:$0xff] }
 0x3b8   : > { %9651 = vmatprep.mubr.msk.f32.mxu1 %vm304_vm1, %v12418_v23  ;;  %13313 = vst [vmem:[#allocation46_spill] sm:$0xff] %v12434_v37  ;;  %v12438_v23 = vld [vmem:[#allocation2 + $0x142] sm:$0xff] }
 0x3bb   : > { %9652 = vmatmul.mubr.msk.f32.gmra.mrb[22].mxu1 %vm304_vm1, %v12422_v46  ;;  %v12442_v46 = vld [vmem:[#allocation2 + $0x152] sm:$0xff] }
 0x3bc   : > { %9654 = vmatprep.mubr.msk.f32.mxu1 %vm304_vm1, %v12426_v39  ;;  %13314 = vst [vmem:[#allocation48_spill] sm:$0xff] %v12442_v46  ;;  %v12446_v39 = vld [vmem:[#allocation2 + $0x15a] sm:$0xff] }
 0x3bf   : > { %9655 = vmatmul.mubr.msk.f32.gmra.mrb[24].mxu1 %vm304_vm1, %v12430_v49  ;;  %v12450_v49 = vld [vmem:[#allocation2 + $0x16a] sm:$0xff] }
 0x3c0   : > { %9657 = vmatprep.mubr.msk.f32.mxu1 %vm304_vm1, %v12434_v37  ;;  %13315 = vst [vmem:[#allocation49_spill] sm:$0xff] %v12450_v49  ;;  %v12454_v37 = vld [vmem:[#allocation2 + $0x172] sm:$0xff] }
 0x3c3   : > { %9658 = vmatmul.mubr.msk.f32.gmra.mrb[26].mxu1 %vm304_vm1, %v12438_v23 }
 0x3c4   : > { %9660 = vmatprep.mubr.msk.f32.mxu1 %vm304_vm1, %v12442_v46  ;;  %v6166_v46 = vld [vmem:[%s12969_s4 + $0x14] sm:$0xf] }
 0x3c7   : > { %9661 = vmatmul.mubr.msk.f32.gmra.mrb[28].mxu1 %vm304_vm1, %v12446_v39 }
 0x3c8   : > { %9663 = vmatprep.mubr.msk.f32.mxu1 %vm304_vm1, %v12450_v49 }
 0x3cb   : > { %9664 = vmatmul.mubr.msk.f32.gmra.mrb[30].mxu1 %vm304_vm1, %v12454_v37 }
 0x3cc   : > { %9668 = vmatprep.mubr.msk.f32.mxu1 %vm304_vm1, %v12201_v50  ;;  %v12524_v50 = vld [vmem:[#allocation2 + $0x180] sm:$0xff] }
 0x3cf   : > { %9669 = vmatmul.mubr.msk.f32.vlgmr.msra.gmra.mrb[0].mxu1 %vm304_vm1, %v12211_v7  ;;  %v12528_v7 = vld [vmem:[#allocation2 + $0x188] sm:$0xff] }
 0x3d0   : > { %9717 = vmatpush3.msk.msra.mxu1 %vm555_vm0, %v12331_v24  ;;  %9671 = vmatprep.mubr.msk.f32.mxu1 %vm304_vm1, %v12215_v54  ;;  %v5745_v24 = vld [vmem:[#allocation2 + $0x19] sm:$0xff] }
 0x3d1   : > { %9766 = vmatprep.subr.msk.mxu1 %vm555_vm0, %v6166_v46 }
 0x3d3   : > { %9672 = vmatmul.mubr.msk.f32.gmra.mrb[2].mxu1 %vm304_vm1, %v12219_v14 }
 0x3d4   : > { %9674 = vmatprep.mubr.msk.f32.mxu1 %vm304_vm1, %v12223_v53 }
 0x3d7   : > { %9675 = vmatmul.mubr.msk.f32.gmra.mrb[4].mxu1 %vm304_vm1, %v12227_v57 }
 0x3d8   : > { %9677 = vmatprep.mubr.msk.f32.mxu1 %vm304_vm1, %v12231_v22 }
 0x3db   : > { %9678 = vmatmul.mubr.msk.f32.gmra.mrb[6].mxu1 %vm304_vm1, %v12235_v15 }
 0x3dc   : > { %9680 = vmatprep.mubr.msk.f32.mxu1 %vm304_vm1, %v12239_v10 }
 0x3df   : > { %9681 = vmatmul.mubr.msk.f32.gmra.mrb[8].mxu1 %vm304_vm1, %v12243_v13 }
 0x3e0   : > { %9683 = vmatprep.mubr.msk.f32.mxu1 %vm304_vm1, %v12247_v31 }
 0x3e3   : > { %9684 = vmatmul.mubr.msk.f32.gmra.mrb[10].mxu1 %vm304_vm1, %v12251_v43 }
 0x3e4   : > { %9686 = vmatprep.mubr.msk.f32.mxu1 %vm304_vm1, %v12255_v1 }
 0x3e7   : > { %9687 = vmatmul.mubr.msk.f32.gmra.mrb[12].mxu1 %vm304_vm1, %v12259_v26 }
 0x3e8   : > { %9689 = vmatprep.mubr.msk.f32.mxu1 %vm304_vm1, %v12263_v5 }
 0x3eb   : > { %9690 = vmatmul.mubr.msk.f32.gmra.mrb[14].mxu1 %vm304_vm1, %v12267_v16 }
 0x3ec   : > { %9692 = vmatprep.mubr.msk.f32.mxu1 %vm304_vm1, %v12271_v45 }
 0x3ef   : > { %9693 = vmatmul.mubr.msk.f32.gmra.mrb[16].mxu1 %vm304_vm1, %v12275_v48 }
 0x3f0   : > { %9695 = vmatprep.mubr.msk.f32.mxu1 %vm304_vm1, %v12279_v61 }
 0x3f3   : > { %9696 = vmatmul.mubr.msk.f32.gmra.mrb[18].mxu1 %vm304_vm1, %v12283_v62 }
 0x3f4   : > { %9698 = vmatprep.mubr.msk.f32.mxu1 %vm304_vm1, %v12287_v51 }
 0x3f7   : > { %9699 = vmatmul.mubr.msk.f32.gmra.mrb[20].mxu1 %vm304_vm1, %v12291_v6 }
 0x3f8   : > { %9701 = vmatprep.mubr.msk.f32.mxu1 %vm304_vm1, %v12295_v55 }
 0x3fb   : > { %9702 = vmatmul.mubr.msk.f32.gmra.mrb[22].mxu1 %vm304_vm1, %v12299_v20 }
 0x3fc   : > { %9704 = vmatprep.mubr.msk.f32.mxu1 %vm304_vm1, %v12303_v47 }
 0x3ff   : > { %9705 = vmatmul.mubr.msk.f32.gmra.mrb[24].mxu1 %vm304_vm1, %v12307_v29 }
 0x400   : > { %9707 = vmatprep.mubr.msk.f32.mxu1 %vm304_vm1, %v12311_v30 }
 0x403   : > { %9708 = vmatmul.mubr.msk.f32.gmra.mrb[26].mxu1 %vm304_vm1, %v12315_v34  ;;  %v5746_v34 = vld [vmem:[#allocation2 + $0x21] sm:$0xff] }
 0x404   : > { %9710 = vmatprep.mubr.msk.f32.mxu1 %vm304_vm1, %v12319_v3  ;;  %v6555_v3 = vld [vmem:[%s12969_s4 + $0x18] sm:$0xf] }
 0x407   : > { %9711 = vmatmul.mubr.msk.f32.gmra.mrb[28].mxu1 %vm304_vm1, %v12323_v17  ;;  %v12537_v17 = vld [vmem:[#allocation2 + $0x31] sm:$0xff] }
 0x408   : > { %9713 = vmatprep.mubr.msk.f32.mxu1 %vm304_vm1, %v12524_v50 }
 0x40b   : > { %9714 = vmatmul.mubr.msk.f32.gmra.mrb[30].mxu1 %vm304_vm1, %v12528_v7 }
 0x40c   : > { %9718 = vmatprep.mubr.msk.f32.mxu1 %vm304_vm1, %v5745_v24  ;;  %v13333_v24 = vld [vmem:[#allocation39_spill] sm:$0xff] }
 0x40f   : > { %9719 = vmatmul.mubr.msk.f32.vlgmr.msra.gmra.mrb[0].mxu1 %vm304_vm1, %v5746_v34  ;;  %v13329_v34 = vld [vmem:[#allocation67_spill] sm:$0xff] }
 0x410   : > { %9767 = vmatpush3.msk.msra.mxu1 %vm555_vm0, %v6166_v46  ;;  %9721 = vmatprep.mubr.msk.f32.mxu1 %vm304_vm1, %v12537_v17  ;;  %v13332_v46 = vld [vmem:[#allocation38_spill] sm:$0xff] }
 0x411   : > { %9816 = vmatprep.subr.msk.mxu1 %vm555_vm0, %v6555_v3 }
 0x413   : > { %9722 = vmatmul.mubr.msk.f32.gmra.mrb[2].mxu1 %vm304_vm1, %v12029_v40  ;;  %v12597_v40 = vld [vmem:[#allocation2 + $0x181] sm:$0xff] }
 0x414   : > { %9724 = vmatprep.mubr.msk.f32.mxu1 %vm304_vm1, %v12042_v63  ;;  %v12601_v63 = vld [vmem:[#allocation2 + $0x189] sm:$0xff] }
 0x417   : > { %9725 = vmatmul.mubr.msk.f32.gmra.mrb[4].mxu1 %vm304_vm1, %v12047_v28  ;;  %v6944_v28 = vld [vmem:[%s12969_s4 + $0x1c] sm:$0xf] }
 0x418   : > { %9727 = vmatprep.mubr.msk.f32.mxu1 %vm304_vm1, %v12056_v36  ;;  %v13316_v36 = vld [vmem:[#allocation36_spill] sm:$0xff] }
 0x41b   : > { %9728 = vmatmul.mubr.msk.f32.gmra.mrb[6].mxu1 %vm304_vm1, %v12061_v58  ;;  %v13317_v58 = vld [vmem:[#allocation37_spill] sm:$0xff] }
 0x41c   : > { %9730 = vmatprep.mubr.msk.f32.mxu1 %vm304_vm1, %v12070_v56  ;;  %v13318_v56 = vld [vmem:[#allocation53_spill] sm:$0xff] }
 0x41f   : > { %9731 = vmatmul.mubr.msk.f32.gmra.mrb[8].mxu1 %vm304_vm1, %v12075_v44  ;;  %v13319_v44 = vld [vmem:[#allocation54_spill] sm:$0xff] }
 0x420   : > { %9733 = vmatprep.mubr.msk.f32.mxu1 %vm304_vm1, %v12083_v32  ;;  %v13320_v32 = vld [vmem:[#allocation57_spill] sm:$0xff] }
 0x423   : > { %9734 = vmatmul.mubr.msk.f32.gmra.mrb[10].mxu1 %vm304_vm1, %v12088_v42  ;;  %v13321_v42 = vld [vmem:[#allocation62_spill] sm:$0xff] }
 0x424   : > { %9736 = vmatprep.mubr.msk.f32.mxu1 %vm304_vm1, %v12095_v4  ;;  %v13322_v4 = vld [vmem:[#allocation44_spill] sm:$0xff] }
 0x427   : > { %9737 = vmatmul.mubr.msk.f32.gmra.mrb[12].mxu1 %vm304_vm1, %v12100_v21  ;;  %v13323_v21 = vld [vmem:[#allocation70_spill] sm:$0xff] }
 0x428   : > { %9739 = vmatprep.mubr.msk.f32.mxu1 %vm304_vm1, %v12107_v60  ;;  %v13324_v60 = vld [vmem:[#allocation56_spill] sm:$0xff] }
 0x42b   : > { %9740 = vmatmul.mubr.msk.f32.gmra.mrb[14].mxu1 %vm304_vm1, %v12112_v2  ;;  %v13325_v2 = vld [vmem:[#allocation58_spill] sm:$0xff] }
 0x42c   : > { %9742 = vmatprep.mubr.msk.f32.mxu1 %vm304_vm1, %v12119_v11  ;;  %v13326_v11 = vld [vmem:[#allocation60_spill] sm:$0xff] }
 0x42f   : > { %9743 = vmatmul.mubr.msk.f32.gmra.mrb[16].mxu1 %vm304_vm1, %v12124_v18  ;;  %v13327_v18 = vld [vmem:[#allocation63_spill] sm:$0xff] }
 0x430   : > { %9745 = vmatprep.mubr.msk.f32.mxu1 %vm304_vm1, %v12131_v59  ;;  %v13328_v59 = vld [vmem:[#allocation65_spill] sm:$0xff] }
 0x433   : > { %9746 = vmatmul.mubr.msk.f32.gmra.mrb[18].mxu1 %vm304_vm1, %v12136_v8 }
 0x434   : > { %9748 = vmatprep.mubr.msk.f32.mxu1 %vm304_vm1, %v12143_v27 }
 0x437   : > { %9749 = vmatmul.mubr.msk.f32.gmra.mrb[20].mxu1 %vm304_vm1, %v12148_v33 }
 0x438   : > { %9751 = vmatprep.mubr.msk.f32.mxu1 %vm304_vm1, %v12155_v0 }
 0x43b   : > { %9752 = vmatmul.mubr.msk.f32.gmra.mrb[22].mxu1 %vm304_vm1, %v12160_v52 }
 0x43c   : > { %9754 = vmatprep.mubr.msk.f32.mxu1 %vm304_vm1, %v12167_v12 }
 0x43f   : > { %9755 = vmatmul.mubr.msk.f32.gmra.mrb[24].mxu1 %vm304_vm1, %v12172_v19 }
 0x440   : > { %9757 = vmatprep.mubr.msk.f32.mxu1 %vm304_vm1, %v12177_v38 }
 0x443   : > { %9758 = vmatmul.mubr.msk.f32.gmra.mrb[26].mxu1 %vm304_vm1, %v12182_v25 }
 0x444   : > { %9760 = vmatprep.mubr.msk.f32.mxu1 %vm304_vm1, %v12186_v35 }
 0x447   : > { %9761 = vmatmul.mubr.msk.f32.gmra.mrb[28].mxu1 %vm304_vm1, %v12190_v9 }
 0x448   : > { %9763 = vmatprep.mubr.msk.f32.mxu1 %vm304_vm1, %v12597_v40 }
 0x44b   : > { %9764 = vmatmul.mubr.msk.f32.gmra.mrb[30].mxu1 %vm304_vm1, %v12601_v63 }
 0x44c   : > { %9768 = vmatprep.mubr.msk.f32.mxu1 %vm304_vm1, %v12334_v41  ;;  %v13331_v41 = vld [vmem:[#allocation74_spill] sm:$0xff] }
 0x44f   : > { %9769 = vmatmul.mubr.msk.f32.vlgmr.msra.gmra.mrb[0].mxu1 %vm304_vm1, %v13316_v36  ;;  %v13334_v36 = vld [vmem:[#allocation40_spill] sm:$0xff] }
 0x450   : > { %9817 = vmatpush3.msk.msra.mxu1 %vm555_vm0, %v6555_v3  ;;  %9771 = vmatprep.mubr.msk.f32.mxu1 %vm304_vm1, %v13317_v58  ;;  %v13330_v3 = vld [vmem:[#allocation72_spill] sm:$0xff] }
 0x451   : > { %9866 = vmatprep.subr.msk.mxu1 %vm555_vm0, %v6944_v28 }
 0x453   : > { %9772 = vmatmul.mubr.msk.f32.gmra.mrb[2].mxu1 %vm304_vm1, %v13318_v56 }
 0x454   : > { %9774 = vmatprep.mubr.msk.f32.mxu1 %vm304_vm1, %v13319_v44 }
 0x457   : > { %9775 = vmatmul.mubr.msk.f32.gmra.mrb[4].mxu1 %vm304_vm1, %v13320_v32 }
 0x458   : > { %9777 = vmatprep.mubr.msk.f32.mxu1 %vm304_vm1, %v13321_v42 }
 0x45b   : > { %9778 = vmatmul.mubr.msk.f32.gmra.mrb[6].mxu1 %vm304_vm1, %v13322_v4 }
 0x45c   : > { %9780 = vmatprep.mubr.msk.f32.mxu1 %vm304_vm1, %v13323_v21 }
 0x45f   : > { %9781 = vmatmul.mubr.msk.f32.gmra.mrb[8].mxu1 %vm304_vm1, %v13324_v60 }
 0x460   : > { %9783 = vmatprep.mubr.msk.f32.mxu1 %vm304_vm1, %v13325_v2 }
 0x463   : > { %9784 = vmatmul.mubr.msk.f32.gmra.mrb[10].mxu1 %vm304_vm1, %v13326_v11 }
 0x464   : > { %9786 = vmatprep.mubr.msk.f32.mxu1 %vm304_vm1, %v13327_v18  ;;  %v13335_v18 = vld [vmem:[#allocation41_spill] sm:$0xff] }
 0x467   : > { %9787 = vmatmul.mubr.msk.f32.gmra.mrb[12].mxu1 %vm304_vm1, %v13328_v59  ;;  %v13336_v59 = vld [vmem:[#allocation42_spill] sm:$0xff] }
 0x468   : > { %9789 = vmatprep.mubr.msk.f32.mxu1 %vm304_vm1, %v13329_v34  ;;  %v13337_v34 = vld [vmem:[#allocation43_spill] sm:$0xff] }
 0x46b   : > { %9790 = vmatmul.mubr.msk.f32.gmra.mrb[14].mxu1 %vm304_vm1, %v13330_v3  ;;  %v13338_v3 = vld [vmem:[#allocation45_spill] sm:$0xff] }
 0x46c   : > { %9792 = vmatprep.mubr.msk.f32.mxu1 %vm304_vm1, %v13331_v41  ;;  %v13339_v41 = vld [vmem:[#allocation46_spill] sm:$0xff] }
 0x46f   : > { %9793 = vmatmul.mubr.msk.f32.gmra.mrb[16].mxu1 %vm304_vm1, %v13332_v46 }
 0x470   : > { %9795 = vmatprep.mubr.msk.f32.mxu1 %vm304_vm1, %v13333_v24  ;;  %v13340_v24 = vld [vmem:[#allocation48_spill] sm:$0xff] }
 0x473   : > { %9796 = vmatmul.mubr.msk.f32.gmra.mrb[18].mxu1 %vm304_vm1, %v13334_v36 }
 0x474   : > { %9798 = vmatprep.mubr.msk.f32.mxu1 %vm304_vm1, %v13335_v18 }
 0x477   : > { %9799 = vmatmul.mubr.msk.f32.gmra.mrb[20].mxu1 %vm304_vm1, %v13336_v59 }
 0x478   : > { %9801 = vmatprep.mubr.msk.f32.mxu1 %vm304_vm1, %v13337_v34  ;;  %v12670_v34 = vld [vmem:[#allocation2 + $0x182] sm:$0xff] }
 0x47b   : > { %9802 = vmatmul.mubr.msk.f32.gmra.mrb[22].mxu1 %vm304_vm1, %v13338_v3 }
 0x47c   : > { %9804 = vmatprep.mubr.msk.f32.mxu1 %vm304_vm1, %v13339_v41  ;;  %v12674_v41 = vld [vmem:[#allocation2 + $0x18a] sm:$0xff] }
 0x47f   : > { %9805 = vmatmul.mubr.msk.f32.gmra.mrb[24].mxu1 %vm304_vm1, %v12438_v23 }
 0x480   : > { %9807 = vmatprep.mubr.msk.f32.mxu1 %vm304_vm1, %v13340_v24 }
 0x483   : > { %9808 = vmatmul.mubr.msk.f32.gmra.mrb[26].mxu1 %vm304_vm1, %v12446_v39 }
 0x484   : > { %9810 = vmatprep.mubr.msk.f32.mxu1 %vm304_vm1, %v12450_v49  ;;  %v7333_v49 = vld [vmem:[%s12969_s4 + $0x20] sm:$0xf] }
 0x487   : > { %9811 = vmatmul.mubr.msk.f32.gmra.mrb[28].mxu1 %vm304_vm1, %v12454_v37 }
 0x488   : > { %9813 = vmatprep.mubr.msk.f32.mxu1 %vm304_vm1, %v12670_v34 }
 0x48b   : > { %9814 = vmatmul.mubr.msk.f32.gmra.mrb[30].mxu1 %vm304_vm1, %v12674_v41 }
 0x48c   : > { %9818 = vmatprep.mubr.msk.f32.mxu1 %vm304_vm1, %v12215_v54  ;;  %v13341_v54 = vld [vmem:[#allocation27_spill] sm:$0xff] }
 0x48f   : > { %9819 = vmatmul.mubr.msk.f32.vlgmr.msra.gmra.mrb[0].mxu1 %vm304_vm1, %v12219_v14  ;;  %v13342_v14 = vld [vmem:[#allocation28_spill] sm:$0xff] }
 0x490   : > { %9867 = vmatpush3.msk.msra.mxu1 %vm555_vm0, %v6944_v28  ;;  %9821 = vmatprep.mubr.msk.f32.mxu1 %vm304_vm1, %v12223_v53  ;;  %v13343_v53 = vld [vmem:[#allocation29_spill] sm:$0xff] }
 0x491   : > { %9916 = vmatprep.subr.msk.mxu1 %vm555_vm0, %v7333_v49 }
 0x493   : > { %9822 = vmatmul.mubr.msk.f32.gmra.mrb[2].mxu1 %vm304_vm1, %v12227_v57  ;;  %v6553_v57 = vld [vmem:[#allocation2 + $0x198] sm:$0xff] }
 0x494   : > { %9824 = vmatprep.mubr.msk.f32.mxu1 %vm304_vm1, %v12231_v22  ;;  %v6554_v22 = vld [vmem:[#allocation2 + $0x1a0] sm:$0xff] }
 0x497   : > { %9825 = vmatmul.mubr.msk.f32.gmra.mrb[4].mxu1 %vm304_vm1, %v12235_v15  ;;  %v6913_v15 = vld [vmem:[#allocation2 + $0x39] sm:$0xff] }
 0x498   : > { %9827 = vmatprep.mubr.msk.f32.mxu1 %vm304_vm1, %v12239_v10  ;;  %v6914_v10 = vld [vmem:[#allocation2 + $0x49] sm:$0xff] }
 0x49b   : > { %9828 = vmatmul.mubr.msk.f32.gmra.mrb[6].mxu1 %vm304_vm1, %v12243_v13  ;;  %v6915_v13 = vld [vmem:[#allocation2 + $0x51] sm:$0xff] }
 0x49c   : > { %9830 = vmatprep.mubr.msk.f32.mxu1 %vm304_vm1, %v12247_v31  ;;  %v6916_v31 = vld [vmem:[#allocation2 + $0x61] sm:$0xff] }
 0x49f   : > { %9831 = vmatmul.mubr.msk.f32.gmra.mrb[8].mxu1 %vm304_vm1, %v12251_v43  ;;  %v6917_v43 = vld [vmem:[#allocation2 + $0x69] sm:$0xff] }
 0x4a0   : > { %9833 = vmatprep.mubr.msk.f32.mxu1 %vm304_vm1, %v12255_v1  ;;  %v6918_v1 = vld [vmem:[#allocation2 + $0x79] sm:$0xff] }
 0x4a3   : > { %9834 = vmatmul.mubr.msk.f32.gmra.mrb[10].mxu1 %vm304_vm1, %v12259_v26  ;;  %v6919_v26 = vld [vmem:[#allocation2 + $0x81] sm:$0xff] }
 0x4a4   : > { %9836 = vmatprep.mubr.msk.f32.mxu1 %vm304_vm1, %v12263_v5  ;;  %v6920_v5 = vld [vmem:[#allocation2 + $0x91] sm:$0xff] }
 0x4a7   : > { %9837 = vmatmul.mubr.msk.f32.gmra.mrb[12].mxu1 %vm304_vm1, %v12267_v16  ;;  %v6921_v16 = vld [vmem:[#allocation2 + $0x99] sm:$0xff] }
 0x4a8   : > { %9839 = vmatprep.mubr.msk.f32.mxu1 %vm304_vm1, %v12271_v45  ;;  %v6922_v45 = vld [vmem:[#allocation2 + $0xa9] sm:$0xff] }
 0x4ab   : > { %9840 = vmatmul.mubr.msk.f32.gmra.mrb[14].mxu1 %vm304_vm1, %v12275_v48  ;;  %v6923_v48 = vld [vmem:[#allocation2 + $0xb1] sm:$0xff] }
 0x4ac   : > { %9842 = vmatprep.mubr.msk.f32.mxu1 %vm304_vm1, %v12279_v61  ;;  %v6924_v61 = vld [vmem:[#allocation2 + $0xc1] sm:$0xff] }
 0x4af   : > { %9843 = vmatmul.mubr.msk.f32.gmra.mrb[16].mxu1 %vm304_vm1, %v12283_v62  ;;  %v6925_v62 = vld [vmem:[#allocation2 + $0xc9] sm:$0xff] }
 0x4b0   : > { %9845 = vmatprep.mubr.msk.f32.mxu1 %vm304_vm1, %v12287_v51  ;;  %v6926_v51 = vld [vmem:[#allocation2 + $0xd9] sm:$0xff] }
 0x4b3   : > { %9846 = vmatmul.mubr.msk.f32.gmra.mrb[18].mxu1 %vm304_vm1, %v12291_v6  ;;  %v6927_v6 = vld [vmem:[#allocation2 + $0xe1] sm:$0xff] }
 0x4b4   : > { %9848 = vmatprep.mubr.msk.f32.mxu1 %vm304_vm1, %v12295_v55  ;;  %v6928_v55 = vld [vmem:[#allocation2 + $0xf1] sm:$0xff] }
 0x4b7   : > { %9849 = vmatmul.mubr.msk.f32.gmra.mrb[20].mxu1 %vm304_vm1, %v12299_v20  ;;  %v7331_v20 = vld [vmem:[#allocation2 + $0x19a] sm:$0xff] }
 0x4b8   : > { %9851 = vmatprep.mubr.msk.f32.mxu1 %vm304_vm1, %v12303_v47  ;;  %v7332_v47 = vld [vmem:[#allocation2 + $0x1a2] sm:$0xff] }
 0x4bb   : > { %9852 = vmatmul.mubr.msk.f32.gmra.mrb[22].mxu1 %vm304_vm1, %v12307_v29  ;;  %v12857_v29 = vld [vmem:[%s12970_s5] ss:$0 sm:$0xff] }
 0x4bc   : > { %9854 = vmatprep.mubr.msk.f32.mxu1 %vm304_vm1, %v12311_v30 }
 0x4bf   : > { %9855 = vmatmul.mubr.msk.f32.gmra.mrb[24].mxu1 %vm304_vm1, %v13341_v54 }
 0x4c0   : > { %9857 = vmatprep.mubr.msk.f32.mxu1 %vm304_vm1, %v13342_v14 }
 0x4c3   : > { %9858 = vmatmul.mubr.msk.f32.gmra.mrb[26].mxu1 %vm304_vm1, %v13343_v53 }
 0x4c4   : > { %9860 = vmatprep.mubr.msk.f32.mxu1 %vm304_vm1, %v12524_v50 }
 0x4c7   : > { %9861 = vmatmul.mubr.msk.f32.gmra.mrb[28].mxu1 %vm304_vm1, %v12528_v7 }
 0x4c8   : > { %9863 = vmatprep.mubr.msk.f32.mxu1 %vm304_vm1, %v6553_v57 }
 0x4cb   : > { %9864 = vmatmul.mubr.msk.f32.gmra.mrb[30].mxu1 %vm304_vm1, %v6554_v22 }
 0x4cc   : > { %9868 = vmatprep.mubr.msk.f32.mxu1 %vm304_vm1, %v12537_v17 }
 0x4cf   : > { %9869 = vmatmul.mubr.msk.f32.vlgmr.msra.gmra.mrb[0].mxu1 %vm304_vm1, %v6913_v15 }
 0x4d0   : > { %9917 = vmatpush3.msk.msra.mxu1 %vm555_vm0, %v7333_v49  ;;  %9871 = vmatprep.mubr.msk.f32.mxu1 %vm304_vm1, %v6914_v10 }
 0x4d3   : > { %9872 = vmatmul.mubr.msk.f32.gmra.mrb[2].mxu1 %vm304_vm1, %v6915_v13 }
 0x4d4   : > { %9874 = vmatprep.mubr.msk.f32.mxu1 %vm304_vm1, %v6916_v31 }
 0x4d7   : > { %9875 = vmatmul.mubr.msk.f32.gmra.mrb[4].mxu1 %vm304_vm1, %v6917_v43 }
 0x4d8   : > { %9877 = vmatprep.mubr.msk.f32.mxu1 %vm304_vm1, %v6918_v1 }
 0x4db   : > { %9878 = vmatmul.mubr.msk.f32.gmra.mrb[6].mxu1 %vm304_vm1, %v6919_v26 }
 0x4dc   : > { %9880 = vmatprep.mubr.msk.f32.mxu1 %vm304_vm1, %v6920_v5 }
 0x4df   : > { %9881 = vmatmul.mubr.msk.f32.gmra.mrb[8].mxu1 %vm304_vm1, %v6921_v16 }
 0x4e0   : > { %9883 = vmatprep.mubr.msk.f32.mxu1 %vm304_vm1, %v6922_v45 }
 0x4e3   : > { %9884 = vmatmul.mubr.msk.f32.gmra.mrb[10].mxu1 %vm304_vm1, %v6923_v48 }
 0x4e4   : > { %9886 = vmatprep.mubr.msk.f32.mxu1 %vm304_vm1, %v6924_v61 }
 0x4e7   : > { %9887 = vmatmul.mubr.msk.f32.gmra.mrb[12].mxu1 %vm304_vm1, %v6925_v62 }
 0x4e8   : > { %9889 = vmatprep.mubr.msk.f32.mxu1 %vm304_vm1, %v6926_v51 }
 0x4eb   : > { %9890 = vmatmul.mubr.msk.f32.gmra.mrb[14].mxu1 %vm304_vm1, %v6927_v6 }
 0x4ec   : > { %9892 = vmatprep.mubr.msk.f32.mxu1 %vm304_vm1, %v6928_v55 }
 0x4ef   : > { %9893 = vmatmul.mubr.msk.f32.gmra.mrb[16].mxu1 %vm304_vm1, %v12136_v8  ;;  %v6942_v8 = vld [vmem:[#allocation2 + $0x199] sm:$0xff] }
 0x4f0   : > { %9895 = vmatprep.mubr.msk.f32.mxu1 %vm304_vm1, %v12143_v27  ;;  %v6943_v27 = vld [vmem:[#allocation2 + $0x1a1] sm:$0xff] }
 0x4f3   : > { %9896 = vmatmul.mubr.msk.f32.gmra.mrb[18].mxu1 %vm304_vm1, %v12148_v33  ;;  %v13344_v33 = vld [vmem:[#allocation63_spill] sm:$0xff] }
 0x4f4   : > { %9898 = vmatprep.mubr.msk.f32.mxu1 %vm304_vm1, %v12155_v0  ;;  %v13345_v0 = vld [vmem:[#allocation65_spill] sm:$0xff] }
 0x4f7   : > { %9899 = vmatmul.mubr.msk.f32.gmra.mrb[20].mxu1 %vm304_vm1, %v12160_v52  ;;  %v13346_v52 = vld [vmem:[#allocation67_spill] sm:$0xff] }
 0x4f8   : > { %9901 = vmatprep.mubr.msk.f32.mxu1 %vm304_vm1, %v12167_v12  ;;  %v13347_v12 = vld [vmem:[#allocation72_spill] sm:$0xff] }
 0x4fb   : > { %9902 = vmatmul.mubr.msk.f32.gmra.mrb[22].mxu1 %vm304_vm1, %v12172_v19  ;;  %v13348_v19 = vld [vmem:[#allocation74_spill] sm:$0xff] }
 0x4fc   : > { %9904 = vmatprep.mubr.msk.f32.mxu1 %vm304_vm1, %v12177_v38  ;;  %v13349_v38 = vld [vmem:[#allocation39_spill] sm:$0xff] }
 0x4ff   : > { %9905 = vmatmul.mubr.msk.f32.gmra.mrb[24].mxu1 %vm304_vm1, %v12182_v25  ;;  %v13350_v25 = vld [vmem:[#allocation43_spill] sm:$0xff] }
 0x500   : > { %9907 = vmatprep.mubr.msk.f32.mxu1 %vm304_vm1, %v12186_v35  ;;  %v13351_v35 = vld [vmem:[#allocation46_spill] sm:$0xff] }
 0x503   : > { %9908 = vmatmul.mubr.msk.f32.gmra.mrb[26].mxu1 %vm304_vm1, %v12190_v9  ;;  %v13352_v9 = vld [vmem:[#allocation49_spill] sm:$0xff] }
 0x504   : > { %9910 = vmatprep.mubr.msk.f32.mxu1 %vm304_vm1, %v12597_v40 }
 0x507   : > { %9911 = vmatmul.mubr.msk.f32.gmra.mrb[28].mxu1 %vm304_vm1, %v12601_v63 }
 0x508   : > { %9913 = vmatprep.mubr.msk.f32.mxu1 %vm304_vm1, %v6942_v8 }
 0x50b   : > { %9914 = vmatmul.mubr.msk.f32.gmra.mrb[30].mxu1 %vm304_vm1, %v6943_v27 }
 0x50c   : > { %9918 = vmatprep.mubr.msk.f32.mxu1 %vm304_vm1, %v13317_v58 }
 0x50f   : > { %9919 = vmatmul.mubr.msk.f32.vlgmr.msra.gmra.mrb[0].mxu1 %vm304_vm1, %v13318_v56 }
 0x510   : > { %9921 = vmatprep.mubr.msk.f32.mxu1 %vm304_vm1, %v13319_v44 }
 0x513   : > { %9922 = vmatmul.mubr.msk.f32.gmra.mrb[2].mxu1 %vm304_vm1, %v13320_v32 }
 0x514   : > { %9924 = vmatprep.mubr.msk.f32.mxu1 %vm304_vm1, %v13321_v42 }
 0x517   : > { %9925 = vmatmul.mubr.msk.f32.gmra.mrb[4].mxu1 %vm304_vm1, %v13322_v4 }
 0x518   : > { %9927 = vmatprep.mubr.msk.f32.mxu1 %vm304_vm1, %v13323_v21 }
 0x51b   : > { %9928 = vmatmul.mubr.msk.f32.gmra.mrb[6].mxu1 %vm304_vm1, %v13324_v60 }
 0x51c   : > { %9930 = vmatprep.mubr.msk.f32.mxu1 %vm304_vm1, %v13325_v2 }
 0x51f   : > { %9931 = vmatmul.mubr.msk.f32.gmra.mrb[8].mxu1 %vm304_vm1, %v13326_v11 }
 0x520   : > { %9933 = vmatprep.mubr.msk.f32.mxu1 %vm304_vm1, %v13344_v33 }
 0x523   : > { %9934 = vmatmul.mubr.msk.f32.gmra.mrb[10].mxu1 %vm304_vm1, %v13345_v0 }
 0x524   : > { %9936 = vmatprep.mubr.msk.f32.mxu1 %vm304_vm1, %v13346_v52 }
 0x527   : > { %9937 = vmatmul.mubr.msk.f32.gmra.mrb[12].mxu1 %vm304_vm1, %v13347_v12 }
 0x528   : > { %9939 = vmatprep.mubr.msk.f32.mxu1 %vm304_vm1, %v13348_v19 }
 0x52b   : > { %9940 = vmatmul.mubr.msk.f32.gmra.mrb[14].mxu1 %vm304_vm1, %v13332_v46 }
 0x52c   : > { %9942 = vmatprep.mubr.msk.f32.mxu1 %vm304_vm1, %v13349_v38 }
 0x52f   : > { %9943 = vmatmul.mubr.msk.f32.gmra.mrb[16].mxu1 %vm304_vm1, %v13334_v36 }
 0x530   : > { %9945 = vmatprep.mubr.msk.f32.mxu1 %vm304_vm1, %v13335_v18 }
 0x533   : > { %9946 = vmatmul.mubr.msk.f32.gmra.mrb[18].mxu1 %vm304_vm1, %v13336_v59 }
 0x534   : > { %9948 = vmatprep.mubr.msk.f32.mxu1 %vm304_vm1, %v13350_v25 }
 0x537   : > { %9949 = vmatmul.mubr.msk.f32.gmra.mrb[20].mxu1 %vm304_vm1, %v13338_v3 }
 0x538   : > { %9951 = vmatprep.mubr.msk.f32.mxu1 %vm304_vm1, %v13351_v35 }
 0x53b   : > { %9952 = vmatmul.mubr.msk.f32.gmra.mrb[22].mxu1 %vm304_vm1, %v12438_v23 }
 0x53c   : > { %9954 = vmatprep.mubr.msk.f32.mxu1 %vm304_vm1, %v13340_v24 }
 0x53f   : > { %9955 = vmatmul.mubr.msk.f32.gmra.mrb[24].mxu1 %vm304_vm1, %v12446_v39 }
 0x540   : > { %9957 = vmatprep.mubr.msk.f32.mxu1 %vm304_vm1, %v13352_v9 }
 0x543   : > { %9958 = vmatmul.mubr.msk.f32.gmra.mrb[26].mxu1 %vm304_vm1, %v12454_v37 }
 0x544   : > { %9960 = vmatprep.mubr.msk.f32.mxu1 %vm304_vm1, %v12670_v34 }
 0x547   : > { %9961 = vmatmul.mubr.msk.f32.gmra.mrb[28].mxu1 %vm304_vm1, %v12674_v41 }
 0x548   : > { %9963 = vmatprep.mubr.msk.f32.mxu1 %vm304_vm1, %v7331_v20 }
 0x54b   : > { %9964 = vmatmul.mubr.msk.f32.gmra.mrb[30].mxu1 %vm304_vm1, %v7332_v47 }
 0x5e2   : > { %v9920_v30 = vpop.f32.mrb[0].mxu1 }
 0x5e3   : > { %v7698_v17 = vadd.f32 %v9920_v30, %v12857_v29  ;;  %v7499_v39 = vpop.f32.mrb[1].mxu1 }
 0x5e4   : > { %v7697_v49 = vadd.f32 %v12857_v29, %v7499_v39 }
 0x5e5   : > { %v7730_v37 = vmax.f32 %v7698_v17, 0.0 }
 0x5e6   : > { %v7729_v23 = vmax.f32 %v7697_v49, 0.0  ;;  %v9923_v50 = vpop.f32.mrb[2].mxu1 }
 0x5e7   : > { %7762 = vst.msk [vmem:[%s12865_s9 + $0x8] sm:$0xff] %vm304_vm1, %v7730_v37  ;;  %v7700_v7 = vadd.f32 %v9923_v50, %v12857_v29  ;;  %v7509_v40 = vpop.f32.mrb[3].mxu1 }
 0x5e8   : > { %7761 = vst.msk [vmem:[%s12865_s9] sm:$0xff] %vm304_vm1, %v7729_v23  ;;  %v7699_v63 = vadd.f32 %v12857_v29, %v7509_v40 }
 0x5e9   : > { %v7732_v28 = vmax.f32 %v7700_v7, 0.0 }
 0x5ea   : > { %v7731_v58 = vmax.f32 %v7699_v63, 0.0  ;;  %v9926_v56 = vpop.f32.mrb[4].mxu1 }
 0x5eb   : > { %7764 = vst.msk [vmem:[%s12865_s9 + $0x18] sm:$0xff] %vm304_vm1, %v7732_v28  ;;  %v7702_v44 = vadd.f32 %v9926_v56, %v12857_v29  ;;  %v7519_v32 = vpop.f32.mrb[5].mxu1 }
 0x5ec   : > { %7763 = vst.msk [vmem:[%s12865_s9 + $0x10] sm:$0xff] %vm304_vm1, %v7731_v58  ;;  %v7701_v42 = vadd.f32 %v12857_v29, %v7519_v32 }
 0x5ed   : > { %v7734_v4 = vmax.f32 %v7702_v44, 0.0 }
 0x5ee   : > { %v7733_v21 = vmax.f32 %v7701_v42, 0.0  ;;  %v9929_v60 = vpop.f32.mrb[6].mxu1 }
 0x5ef   : > { %7766 = vst.msk [vmem:[%s12865_s9 + $0x28] sm:$0xff] %vm304_vm1, %v7734_v4  ;;  %v7704_v2 = vadd.f32 %v9929_v60, %v12857_v29  ;;  %v7529_v11 = vpop.f32.mrb[7].mxu1 }
 0x5f0   : > { %7765 = vst.msk [vmem:[%s12865_s9 + $0x20] sm:$0xff] %vm304_vm1, %v7733_v21  ;;  %v7703_v18 = vadd.f32 %v12857_v29, %v7529_v11 }
 0x5f1   : > { %v7736_v59 = vmax.f32 %v7704_v2, 0.0 }
 0x5f2   : > { %v7735_v34 = vmax.f32 %v7703_v18, 0.0  ;;  %v9932_v3 = vpop.f32.mrb[8].mxu1 }
 0x5f3   : > { %7768 = vst.msk [vmem:[%s12865_s9 + $0x38] sm:$0xff] %vm304_vm1, %v7736_v59  ;;  %v7706_v41 = vadd.f32 %v9932_v3, %v12857_v29  ;;  %v7539_v46 = vpop.f32.mrb[9].mxu1 }
 0x5f4   : > { %7767 = vst.msk [vmem:[%s12865_s9 + $0x30] sm:$0xff] %vm304_vm1, %v7735_v34  ;;  %v7705_v24 = vadd.f32 %v12857_v29, %v7539_v46 }
 0x5f5   : > { %v7738_v36 = vmax.f32 %v7706_v41, 0.0 }
 0x5f6   : > { %v7737_v54 = vmax.f32 %v7705_v24, 0.0  ;;  %v9935_v14 = vpop.f32.mrb[10].mxu1 }
 0x5f7   : > { %7770 = vst.msk [vmem:[%s12865_s9 + $0x48] sm:$0xff] %vm304_vm1, %v7738_v36  ;;  %v7708_v53 = vadd.f32 %v9935_v14, %v12857_v29  ;;  %v7549_v57 = vpop.f32.mrb[11].mxu1 }
 0x5f8   : > { %7769 = vst.msk [vmem:[%s12865_s9 + $0x40] sm:$0xff] %vm304_vm1, %v7737_v54  ;;  %v7707_v22 = vadd.f32 %v12857_v29, %v7549_v57 }
 0x5f9   : > { %v7740_v15 = vmax.f32 %v7708_v53, 0.0 }
 0x5fa   : > { %v7739_v10 = vmax.f32 %v7707_v22, 0.0  ;;  %v9938_v13 = vpop.f32.mrb[12].mxu1 }
 0x5fb   : > { %7772 = vst.msk [vmem:[%s12865_s9 + $0x58] sm:$0xff] %vm304_vm1, %v7740_v15  ;;  %v7710_v31 = vadd.f32 %v9938_v13, %v12857_v29  ;;  %v7559_v43 = vpop.f32.mrb[13].mxu1 }
 0x5fc   : > { %7771 = vst.msk [vmem:[%s12865_s9 + $0x50] sm:$0xff] %vm304_vm1, %v7739_v10  ;;  %v7709_v1 = vadd.f32 %v12857_v29, %v7559_v43 }
 0x5fd   : > { %v7742_v26 = vmax.f32 %v7710_v31, 0.0 }
 0x5fe   : > { %v7741_v5 = vmax.f32 %v7709_v1, 0.0  ;;  %v9941_v16 = vpop.f32.mrb[14].mxu1 }
 0x5ff   : > { %7774 = vst.msk [vmem:[%s12865_s9 + $0x68] sm:$0xff] %vm304_vm1, %v7742_v26  ;;  %v7712_v45 = vadd.f32 %v9941_v16, %v12857_v29  ;;  %v7569_v48 = vpop.f32.mrb[15].mxu1 }
 0x600   : > { %7773 = vst.msk [vmem:[%s12865_s9 + $0x60] sm:$0xff] %vm304_vm1, %v7741_v5  ;;  %v7711_v61 = vadd.f32 %v12857_v29, %v7569_v48 }
 0x601   : > { %v7744_v62 = vmax.f32 %v7712_v45, 0.0 }
 0x602   : > { %v7743_v51 = vmax.f32 %v7711_v61, 0.0  ;;  %v9944_v6 = vpop.f32.mrb[16].mxu1 }
 0x603   : > { %7776 = vst.msk [vmem:[%s12865_s9 + $0x78] sm:$0xff] %vm304_vm1, %v7744_v62  ;;  %v7714_v55 = vadd.f32 %v9944_v6, %v12857_v29  ;;  %v7579_v8 = vpop.f32.mrb[17].mxu1 }
 0x604   : > { %7775 = vst.msk [vmem:[%s12865_s9 + $0x70] sm:$0xff] %vm304_vm1, %v7743_v51  ;;  %v7713_v27 = vadd.f32 %v12857_v29, %v7579_v8 }
 0x605   : > { %v7746_v33 = vmax.f32 %v7714_v55, 0.0 }
 0x606   : > { %v7745_v0 = vmax.f32 %v7713_v27, 0.0  ;;  %v9947_v52 = vpop.f32.mrb[18].mxu1 }
 0x607   : > { %7778 = vst.msk [vmem:[%s12865_s9 + $0x88] sm:$0xff] %vm304_vm1, %v7746_v33  ;;  %v7716_v12 = vadd.f32 %v9947_v52, %v12857_v29  ;;  %v7589_v19 = vpop.f32.mrb[19].mxu1 }
 0x608   : > { %7777 = vst.msk [vmem:[%s12865_s9 + $0x80] sm:$0xff] %vm304_vm1, %v7745_v0  ;;  %v7715_v38 = vadd.f32 %v12857_v29, %v7589_v19 }
 0x609   : > { %v7748_v25 = vmax.f32 %v7716_v12, 0.0 }
 0x60a   : > { %v7747_v35 = vmax.f32 %v7715_v38, 0.0  ;;  %v9950_v9 = vpop.f32.mrb[20].mxu1 }
 0x60b   : > { %7780 = vst.msk [vmem:[%s12865_s9 + $0x98] sm:$0xff] %vm304_vm1, %v7748_v25  ;;  %v7718_v20 = vadd.f32 %v9950_v9, %v12857_v29  ;;  %v7599_v47 = vpop.f32.mrb[21].mxu1 }
 0x60c   : > { %7779 = vst.msk [vmem:[%s12865_s9 + $0x90] sm:$0xff] %vm304_vm1, %v7747_v35  ;;  %v7717_v30 = vadd.f32 %v12857_v29, %v7599_v47 }
 0x60d   : > { %v7750_v17 = vmax.f32 %v7718_v20, 0.0 }
 0x60e   : > { %v7749_v39 = vmax.f32 %v7717_v30, 0.0  ;;  %v9953_v49 = vpop.f32.mrb[22].mxu1 }
 0x60f   : > { %7782 = vst.msk [vmem:[%s12865_s9 + $0xa8] sm:$0xff] %vm304_vm1, %v7750_v17  ;;  %v7720_v37 = vadd.f32 %v9953_v49, %v12857_v29  ;;  %v7609_v23 = vpop.f32.mrb[23].mxu1 }
 0x610   : > { %7781 = vst.msk [vmem:[%s12865_s9 + $0xa0] sm:$0xff] %vm304_vm1, %v7749_v39  ;;  %v7719_v50 = vadd.f32 %v12857_v29, %v7609_v23 }
 0x611   : > { %v7752_v7 = vmax.f32 %v7720_v37, 0.0 }
 0x612   : > { %v7751_v40 = vmax.f32 %v7719_v50, 0.0  ;;  %v9956_v63 = vpop.f32.mrb[24].mxu1 }
 0x613   : > { %7784 = vst.msk [vmem:[%s12865_s9 + $0xb8] sm:$0xff] %vm304_vm1, %v7752_v7  ;;  %v7722_v28 = vadd.f32 %v9956_v63, %v12857_v29  ;;  %v7619_v58 = vpop.f32.mrb[25].mxu1 }
 0x614   : > { %7783 = vst.msk [vmem:[%s12865_s9 + $0xb0] sm:$0xff] %vm304_vm1, %v7751_v40  ;;  %v7721_v56 = vadd.f32 %v12857_v29, %v7619_v58 }
 0x615   : > { %v7754_v44 = vmax.f32 %v7722_v28, 0.0 }
 0x616   : > { %v7753_v32 = vmax.f32 %v7721_v56, 0.0  ;;  %v9959_v42 = vpop.f32.mrb[26].mxu1 }
 0x617   : > { %7786 = vst.msk [vmem:[%s12865_s9 + $0xc8] sm:$0xff] %vm304_vm1, %v7754_v44  ;;  %v7724_v4 = vadd.f32 %v9959_v42, %v12857_v29  ;;  %v7629_v21 = vpop.f32.mrb[27].mxu1 }
 0x618   : > { %7785 = vst.msk [vmem:[%s12865_s9 + $0xc0] sm:$0xff] %vm304_vm1, %v7753_v32  ;;  %v7723_v60 = vadd.f32 %v12857_v29, %v7629_v21 }
 0x619   : > { %v7756_v2 = vmax.f32 %v7724_v4, 0.0 }
 0x61a   : > { %v7755_v11 = vmax.f32 %v7723_v60, 0.0  ;;  %v9962_v18 = vpop.f32.mrb[28].mxu1 }
 0x61b   : > { %7788 = vst.msk [vmem:[%s12865_s9 + $0xd8] sm:$0xff] %vm304_vm1, %v7756_v2  ;;  %v7726_v59 = vadd.f32 %v9962_v18, %v12857_v29  ;;  %v7639_v34 = vpop.f32.mrb[29].mxu1 }
 0x61c   : > { %7787 = vst.msk [vmem:[%s12865_s9 + $0xd0] sm:$0xff] %vm304_vm1, %v7755_v11  ;;  %v7725_v3 = vadd.f32 %v12857_v29, %v7639_v34 }
 0x61d   : > { %v7758_v41 = vmax.f32 %v7726_v59, 0.0 }
 0x61e   : > { %v7757_v46 = vmax.f32 %v7725_v3, 0.0  ;;  %v9965_v24 = vpop.f32.mrb[30].mxu1 }
 0x61f   : > { %7790 = vst.msk [vmem:[%s12865_s9 + $0xe8] sm:$0xff] %vm304_vm1, %v7758_v41  ;;  %v7728_v36 = vadd.f32 %v9965_v24, %v12857_v29  ;;  %v7649_v54 = vpop.f32.mrb[31].mxu1 }
 0x620   : > { %7789 = vst.msk [vmem:[%s12865_s9 + $0xe0] sm:$0xff] %vm304_vm1, %v7757_v46  ;;  %v7727_v14 = vadd.f32 %v12857_v29, %v7649_v54 }
 0x621   : > { %v7760_v53 = vmax.f32 %v7728_v36, 0.0 }
 0x622   : > { %v7759_v57 = vmax.f32 %v7727_v14, 0.0 }
 0x623   : > { %7792 = vst.msk [vmem:[%s12865_s9 + $0xf8] sm:$0xff] %vm304_vm1, %v7760_v53 }
 0x624   : > { %7791 = vst.msk [vmem:[%s12865_s9 + $0xf0] sm:$0xff] %vm304_vm1, %v7759_v57 }
 0x625 PF: > { %s16_s21 = sadd.s32 1, %s10622_s21  }
 0x626   : > { %p13_p4 = scmp.ge.s32.totalorder %s16_s21, 4  }
 0x628   :  { %15 = sbr.rel (!%p13_p4) target bundleno = 1 (0x1), region = 79 }

</bundles_post_ra>
